<compile_context>
chip_gen: v7x
topology: tpu7x:2x2x1
jax: 0.10.0
libtpu: 0.0.40
codegen_flags: <defaults>
</compile_context>

<pallas_src>
import functools

import numpy as np
import jax
import jax.numpy as jnp
from jax.experimental import pallas as pl
from jax.experimental.pallas import tpu as pltpu


NUM_CLASSES = 10
IN_CHANNELS = 3

LANE = 128       # TPU lane width
SUBLANE = 8      # TPU sublane quantum
MAX_TM = 512     # row-tile size (large tiles amortize ~0.35 us/grid-step)

# Miniature YOLOv3 model_config using the same grammar as the reference
# (tuple = CNNBlock, ["B", n] = ResidualBlock, "S" = scale head, "U" = upsample).
MODEL_CONFIG = [
    (8, 3, 1),
    (16, 3, 2),
    ["B", 1],
    (32, 3, 2),
    ["B", 8],          # -> route connection 1
    (64, 3, 2),
    ["B", 8],          # -> route connection 2
    (128, 3, 2),
    ["B", 1],
    (64, 1, 1),
    (128, 3, 1),
    "S",
    (32, 1, 1),
    "U",
    (32, 1, 1),
    (64, 3, 1),
    "S",
    (16, 1, 1),
    "U",
    (16, 1, 1),
    (32, 3, 1),
    "S",
]


def _round_up(x, m):
    return (x + m - 1) // m * m


# ----------------------------- Pallas kernel ------------------------------
def _conv_mm_kernel(*refs, leaky, has_res):
    """bf16 patches[TM,K] @ bf16 w[K,TN] -> f32, + shift (+LeakyReLU) (+res)."""
    if has_res:
        p_ref, w_ref, b_ref, r_ref, o_ref = refs
    else:
        p_ref, w_ref, b_ref, o_ref = refs
        r_ref = None
    y = jnp.dot(p_ref[...], w_ref[...], preferred_element_type=jnp.float32)
    y = y + b_ref[...]
    if leaky:
        y = jnp.where(y > 0.0, y, 0.1 * y)
    if has_res:
        y = y + r_ref[...]
    o_ref[...] = y.astype(o_ref.dtype)


def _im2col(x, k, stride, padding):
    """NHWC -> (N*Ho*Wo, k*k*C) patches; feature order is (di, dj, c)."""
    N, H, W, C = x.shape
    if padding:
        x = jnp.pad(x, ((0, 0), (padding, padding), (padding, padding), (0, 0)))
    Ho = (H + 2 * padding - k) // stride + 1
    Wo = (W + 2 * padding - k) // stride + 1
    cols = []
    for di in range(k):
        for dj in range(k):
            cols.append(x[:, di:di + Ho * stride:stride,
                          dj:dj + Wo * stride:stride, :])
    pat = cols[0] if len(cols) == 1 else jnp.concatenate(cols, axis=-1)
    return pat.reshape(N * Ho * Wo, k * k * C), (N, Ho, Wo)


def conv_block_pallas(x, p, residual=None):
    """CNNBlock forward (conv [+BN-fold] [+LeakyReLU] [+residual]) via Pallas."""
    # bf16 activations into the matmul (halves im2col + DMA traffic, bf16 MXU).
    patches, (N, Ho, Wo) = _im2col(x.astype(jnp.bfloat16), p["k"],
                                   p["stride"], p["padding"])
    M, K = patches.shape
    cout, c_pad = p["cout"], p["cout_pad"]

    # Tile sizes: big lane-dense tiles; TN=256 keeps v6e/v7x 256-wide MXU full.
    TM = min(MAX_TM, _round_up(M, SUBLANE))
    M_pad = _round_up(M, TM)
    TN = 256 if c_pad % 256 == 0 else LANE

    if M_pad != M:
        patches = jnp.pad(patches, ((0, M_pad - M), (0, 0)))

    args = [patches, p["w"], p["shift"]]
    in_specs = [
        pl.BlockSpec((TM, K), lambda i, j: (i, 0)),     # patch rows
        pl.BlockSpec((K, TN), lambda i, j: (0, j)),     # weight columns
        pl.BlockSpec((1, TN), lambda i, j: (0, j)),     # shift (BN folded)
    ]
    has_res = residual is not None
    if has_res:
        r = jnp.pad(residual.reshape(M, cout),
                    ((0, M_pad - M), (0, c_pad - cout)))
        args.append(r)
        in_specs.append(pl.BlockSpec((TM, TN), lambda i, j: (i, j)))

    kernel = functools.partial(_conv_mm_kernel, leaky=p["leaky"],
                               has_res=has_res)
    y = pl.pallas_call(
        kernel,
        out_shape=jax.ShapeDtypeStruct((M_pad, c_pad), jnp.float32),
        grid=(M_pad // TM, c_pad // TN),
        in_specs=in_specs,
        out_specs=pl.BlockSpec((TM, TN), lambda i, j: (i, j)),
        compiler_params=pltpu.CompilerParams(
            dimension_semantics=("parallel", "parallel"),
            vmem_limit_bytes=32 * 1024 * 1024),   # fits v5e/v6e/v7x scoped VMEM
    )(*args)

    if M_pad != M or c_pad != cout:
        y = y[:M, :cout]
    return y.reshape(N, Ho, Wo, cout)


# --------------------------- pure-JAX reference ---------------------------
def conv_block_ref(x, p, residual=None):
    cout = p["cout"]
    w = p["w"][:, :cout].reshape(p["k"], p["k"], p["cin"], cout)   # bf16, folded
    y = jax.lax.conv_general_dilated(
        x.astype(jnp.bfloat16), w, (p["stride"], p["stride"]),
        [(p["padding"], p["padding"])] * 2,
        dimension_numbers=("NHWC", "HWIO", "NHWC"),
        preferred_element_type=jnp.float32)
    y = y + p["shift"][:, :cout].reshape(1, 1, 1, cout)
    if p["leaky"]:
        y = jnp.where(y > 0.0, y, 0.1 * y)
    if residual is not None:
        y = y + residual
    return y


# ------------------------------ parameters --------------------------------
def make_cnn(key, cin, cout, k, stride=1, bn_act=True):
    """Deterministic CNNBlock params.  BatchNorm (eval mode) is pre-folded:
    its scale multiplies the weight columns, leaving a `+ shift` epilogue.
    Weights are stored bf16 with cout padded to a multiple of 128 (lane-dense
    MXU output / unmasked stores); shift stays f32."""
    kw, k1, k2 = jax.random.split(key, 3)
    w = jax.random.normal(kw, (k * k * cin, cout), jnp.float32) / np.sqrt(k * k * cin)
    if bn_act:
        scale = 1.0 + 0.1 * jax.random.normal(k1, (cout,), jnp.float32)
        shift = 0.05 * jax.random.normal(k2, (cout,), jnp.float32)
    else:
        scale = jnp.ones((cout,), jnp.float32)
        shift = 0.01 * jax.random.normal(k1, (cout,), jnp.float32)   # conv bias
    w = w * scale[None, :]                      # fold BN scale into weights
    c_pad = _round_up(cout, LANE)
    w_p = jnp.zeros((k * k * cin, c_pad), jnp.bfloat16)
    w_p = w_p.at[:, :cout].set(w.astype(jnp.bfloat16))
    shift_p = jnp.zeros((1, c_pad), jnp.float32).at[:, :cout].set(shift[None, :])
    return dict(w=w_p, shift=shift_p, k=k, cin=cin, cout=cout, cout_pad=c_pad,
                stride=stride, padding=1 if k == 3 else 0, leaky=bn_act)


def build_layers(key, config, in_channels, num_classes):
    """Mirror of YOLOv3._create_conv_layers producing layer descriptors."""
    layers = []
    c = in_channels
    for module in config:
        key, sk = jax.random.split(key)
        if isinstance(module, tuple):
            cout, k, s = module
            layers.append(dict(kind="cnn", p=make_cnn(sk, c, cout, k, stride=s)))
            c = cout
        elif isinstance(module, list):
            nrep = module[1]
            blocks = []
            for _ in range(nrep):
                k1, k2, sk = jax.random.split(sk, 3)
                blocks.append((make_cnn(k1, c, c // 2, 1),
                               make_cnn(k2, c // 2, c, 3)))
            layers.append(dict(kind="residual", blocks=blocks,
                               use_residual=True, num_repeats=nrep))
        elif module == "S":
            k1, k2, k3, ka, kb = jax.random.split(sk, 5)
            layers.append(dict(kind="residual",
                               blocks=[(make_cnn(k1, c, c // 2, 1),
                                        make_cnn(k2, c // 2, c, 3))],
                               use_residual=False, num_repeats=1))
            layers.append(dict(kind="cnn", p=make_cnn(k3, c, c // 2, 1)))
            sp_in = c // 2
            layers.append(dict(kind="scale_pred",
                               blocks=[make_cnn(ka, sp_in, 2 * sp_in, 3),
                                       make_cnn(kb, 2 * sp_in,
                                                (num_classes + 5) * 3, 1,
                                                bn_act=False)],
                               num_classes=num_classes))
            c = c // 2
        elif module == "U":
            layers.append(dict(kind="upsample"))
            c = c * 3
    return layers


# -------------------------------- forward ---------------------------------
def yolo_forward(layers, x, conv_fn):
    outputs = []
    routes = []
    for layer in layers:
        kind = layer["kind"]
        if kind == "scale_pred":
            p1, p2 = layer["blocks"]
            y = conv_fn(x, p1)
            y = conv_fn(y, p2)
            N, H, W, _ = y.shape
            nca = layer["num_classes"] + 5
            # NHWC (N,H,W,3*nca) -> (N,3,H,W,nca): matches the torch permute.
            outputs.append(jnp.transpose(y.reshape(N, H, W, 3, nca),
                                         (0, 3, 1, 2, 4)))
            continue
        if kind == "cnn":
            x = conv_fn(x, layer["p"])
        elif kind == "residual":
            for pa, pb in layer["blocks"]:
                y = conv_fn(x, pa)
                x = conv_fn(y, pb,
                            residual=x if layer["use_residual"] else None)
            if layer["num_repeats"] == 8:
                routes.append(x)
        elif kind == "upsample":
            # nn.Upsample(scale_factor=2), mode='nearest', then torch.cat(dim=1)
            x = jnp.repeat(jnp.repeat(x, 2, axis=1), 2, axis=2)
            x = jnp.concatenate([x, routes[-1]], axis=-1)
            routes.pop()
    return outputs


# ---------------------------------- main -----------------------------------
if __name__ == "__main__":
    key = jax.random.PRNGKey(0)
    kparam, kx = jax.random.split(key)

    layers = build_layers(kparam, MODEL_CONFIG, IN_CHANNELS, NUM_CLASSES)

    x_nchw = jax.random.normal(kx, (2, IN_CHANNELS, 16, 16), jnp.float32)
    x = jnp.transpose(x_nchw, (0, 2, 3, 1))  # NCHW -> NHWC

    fwd_pallas = jax.jit(lambda inp: yolo_forward(layers, inp, conv_block_pallas))
    fwd_ref = jax.jit(lambda inp: yolo_forward(layers, inp, conv_block_ref))

    outs = jax.block_until_ready(fwd_pallas(x))
    refs = jax.block_until_ready(fwd_ref(x))

    expected_shapes = [(2, 3, 1, 1, NUM_CLASSES + 5),
                       (2, 3, 2, 2, NUM_CLASSES + 5),
                       (2, 3, 4, 4, NUM_CLASSES + 5)]
    assert len(outs) == 3
    for o, r, es in zip(outs, refs, expected_shapes):
        assert o.shape == es and r.shape == es, (o.shape, r.shape, es)
        np.testing.assert_allclose(np.asarray(o), np.asarray(r),
                                   rtol=2e-2, atol=2e-2)

    print("KERNEL_OK")
</pallas_src>

<mosaic_0001>
module attributes {stable_mosaic.version = 11 : i64} {
  func.func @_conv_mm_kernel(%arg0: i32, %arg1: i32, %arg2: memref<512x27xbf16, #tpu.memory_space<vmem>>, %arg3: memref<27x128xbf16, #tpu.memory_space<vmem>>, %arg4: memref<1x128xf32, #tpu.memory_space<vmem>>, %arg5: memref<512x128xf32, #tpu.memory_space<vmem>>) attributes {dimension_semantics = [#tpu.dimension_semantics<parallel>, #tpu.dimension_semantics<parallel>], iteration_bounds = array<i64: 1, 1>, scalar_prefetch = 0 : i64, scratch_operands = 0 : i64, tpu.core_type = #tpu.core_type<tc>, window_params = [{transform_indices = @transform_0, window_bounds = array<i64: 512, 27>}, {transform_indices = @transform_1, window_bounds = array<i64: 27, 128>}, {transform_indices = @transform_2, window_bounds = array<i64: 1, 128>}, {transform_indices = @transform_3, window_bounds = array<i64: 512, 128>}]} {
    %c0 = arith.constant 0 : index
    %c0_0 = arith.constant 0 : index
    %0 = vector.load %arg2[%c0, %c0_0] : memref<512x27xbf16, #tpu.memory_space<vmem>>, vector<512x27xbf16>
    %c0_1 = arith.constant 0 : index
    %c0_2 = arith.constant 0 : index
    %1 = vector.load %arg3[%c0_1, %c0_2] : memref<27x128xbf16, #tpu.memory_space<vmem>>, vector<27x128xbf16>
    %cst = arith.constant dense<0.000000e+00> : vector<512x128xf32>
    %2 = tpu.matmul %0, %1, %cst {dimension_numbers = #tpu.dot_dimension_numbers<[1], [0], [0], [1], [0, 0, 1, 1], [], []>} : vector<512x27xbf16>, vector<27x128xbf16>, vector<512x128xf32> -> vector<512x128xf32>
    %c0_3 = arith.constant 0 : index
    %c0_4 = arith.constant 0 : index
    %3 = vector.load %arg4[%c0_3, %c0_4] : memref<1x128xf32, #tpu.memory_space<vmem>>, vector<1x128xf32>
    %4 = vector.broadcast %3 : vector<1x128xf32> to vector<512x128xf32>
    %5 = arith.addf %2, %4 : vector<512x128xf32>
    %cst_5 = arith.constant 0.000000e+00 : f32
    %6 = vector.broadcast %cst_5 : f32 to vector<512x128xf32>
    %7 = arith.cmpf ogt, %5, %6 : vector<512x128xf32>
    %cst_6 = arith.constant 1.000000e-01 : f32
    %8 = vector.broadcast %cst_6 : f32 to vector<512x128xf32>
    %9 = arith.mulf %8, %5 : vector<512x128xf32>
    %10 = arith.select %7, %5, %9 : vector<512x128xi1>, vector<512x128xf32>
    %c0_7 = arith.constant 0 : index
    %c0_8 = arith.constant 0 : index
    %11 = vector.load %arg5[%c0_7, %c0_8] : memref<512x128xf32, #tpu.memory_space<vmem>>, vector<512x128xf32>
    tpu.vector_store %arg5[%c0_7, %c0_8], %10 {strides = array<i32>} : memref<512x128xf32, #tpu.memory_space<vmem>>, vector<512x128xf32>,
    return
  }
  func.func @transform_0(%arg0: i32, %arg1: i32) -> (i32, i32) {
    %c0_i32 = arith.constant 0 : i32
    %c0_i32_0 = arith.constant 0 : i32
    return %arg0, %c0_i32 : i32, i32
  }
  func.func @transform_1(%arg0: i32, %arg1: i32) -> (i32, i32) {
    %c0_i32 = arith.constant 0 : i32
    %c0_i32_0 = arith.constant 0 : i32
    return %c0_i32, %arg1 : i32, i32
  }
  func.func @transform_2(%arg0: i32, %arg1: i32) -> (i32, i32) {
    %c0_i32 = arith.constant 0 : i32
    %c0_i32_0 = arith.constant 0 : i32
    return %c0_i32, %arg1 : i32, i32
  }
  func.func @transform_3(%arg0: i32, %arg1: i32) -> (i32, i32) {
    %c0_i32 = arith.constant 0 : i32
    return %arg0, %arg1 : i32, i32
  }
}

module attributes {stable_mosaic.version = 11 : i64} {
  func.func @_conv_mm_kernel(%arg0: i32, %arg1: i32, %arg2: memref<128x72xbf16, #tpu.memory_space<vmem>>, %arg3: memref<72x128xbf16, #tpu.memory_space<vmem>>, %arg4: memref<1x128xf32, #tpu.memory_space<vmem>>, %arg5: memref<128x128xf32, #tpu.memory_space<vmem>>) attributes {dimension_semantics = [#tpu.dimension_semantics<parallel>, #tpu.dimension_semantics<parallel>], iteration_bounds = array<i64: 1, 1>, scalar_prefetch = 0 : i64, scratch_operands = 0 : i64, tpu.core_type = #tpu.core_type<tc>, window_params = [{transform_indices = @transform_0, window_bounds = array<i64: 128, 72>}, {transform_indices = @transform_1, window_bounds = array<i64: 72, 128>}, {transform_indices = @transform_2, window_bounds = array<i64: 1, 128>}, {transform_indices = @transform_3, window_bounds = array<i64: 128, 128>}]} {
    %c0 = arith.constant 0 : index
    %c0_0 = arith.constant 0 : index
    %0 = vector.load %arg2[%c0, %c0_0] : memref<128x72xbf16, #tpu.memory_space<vmem>>, vector<128x72xbf16>
    %c0_1 = arith.constant 0 : index
    %c0_2 = arith.constant 0 : index
    %1 = vector.load %arg3[%c0_1, %c0_2] : memref<72x128xbf16, #tpu.memory_space<vmem>>, vector<72x128xbf16>
    %cst = arith.constant dense<0.000000e+00> : vector<128x128xf32>
    %2 = tpu.matmul %0, %1, %cst {dimension_numbers = #tpu.dot_dimension_numbers<[1], [0], [0], [1], [0, 0, 1, 1], [], []>} : vector<128x72xbf16>, vector<72x128xbf16>, vector<128x128xf32> -> vector<128x128xf32>
    %c0_3 = arith.constant 0 : index
    %c0_4 = arith.constant 0 : index
    %3 = vector.load %arg4[%c0_3, %c0_4] : memref<1x128xf32, #tpu.memory_space<vmem>>, vector<1x128xf32>
    %4 = vector.broadcast %3 : vector<1x128xf32> to vector<128x128xf32>
    %5 = arith.addf %2, %4 : vector<128x128xf32>
    %cst_5 = arith.constant 0.000000e+00 : f32
    %6 = vector.broadcast %cst_5 : f32 to vector<128x128xf32>
    %7 = arith.cmpf ogt, %5, %6 : vector<128x128xf32>
    %cst_6 = arith.constant 1.000000e-01 : f32
    %8 = vector.broadcast %cst_6 : f32 to vector<128x128xf32>
    %9 = arith.mulf %8, %5 : vector<128x128xf32>
    %10 = arith.select %7, %5, %9 : vector<128x128xi1>, vector<128x128xf32>
    %c0_7 = arith.constant 0 : index
    %c0_8 = arith.constant 0 : index
    %11 = vector.load %arg5[%c0_7, %c0_8] : memref<128x128xf32, #tpu.memory_space<vmem>>, vector<128x128xf32>
    tpu.vector_store %arg5[%c0_7, %c0_8], %10 {strides = array<i32>} : memref<128x128xf32, #tpu.memory_space<vmem>>, vector<128x128xf32>,
    return
  }
  func.func @transform_0(%arg0: i32, %arg1: i32) -> (i32, i32) {
    %c0_i32 = arith.constant 0 : i32
    %c0_i32_0 = arith.constant 0 : i32
    return %arg0, %c0_i32 : i32, i32
  }
  func.func @transform_1(%arg0: i32, %arg1: i32) -> (i32, i32) {
    %c0_i32 = arith.constant 0 : i32
    %c0_i32_0 = arith.constant 0 : i32
    return %c0_i32, %arg1 : i32, i32
  }
  func.func @transform_2(%arg0: i32, %arg1: i32) -> (i32, i32) {
    %c0_i32 = arith.constant 0 : i32
    %c0_i32_0 = arith.constant 0 : i32
    return %c0_i32, %arg1 : i32, i32
  }
  func.func @transform_3(%arg0: i32, %arg1: i32) -> (i32, i32) {
    %c0_i32 = arith.constant 0 : i32
    return %arg0, %arg1 : i32, i32
  }
}

module attributes {stable_mosaic.version = 11 : i64} {
  func.func @_conv_mm_kernel(%arg0: i32, %arg1: i32, %arg2: memref<128x16xbf16, #tpu.memory_space<vmem>>, %arg3: memref<16x128xbf16, #tpu.memory_space<vmem>>, %arg4: memref<1x128xf32, #tpu.memory_space<vmem>>, %arg5: memref<128x128xf32, #tpu.memory_space<vmem>>) attributes {dimension_semantics = [#tpu.dimension_semantics<parallel>, #tpu.dimension_semantics<parallel>], iteration_bounds = array<i64: 1, 1>, scalar_prefetch = 0 : i64, scratch_operands = 0 : i64, tpu.core_type = #tpu.core_type<tc>, window_params = [{transform_indices = @transform_0, window_bounds = array<i64: 128, 16>}, {transform_indices = @transform_1, window_bounds = array<i64: 16, 128>}, {transform_indices = @transform_2, window_bounds = array<i64: 1, 128>}, {transform_indices = @transform_3, window_bounds = array<i64: 128, 128>}]} {
    %c0 = arith.constant 0 : index
    %c0_0 = arith.constant 0 : index
    %0 = vector.load %arg2[%c0, %c0_0] : memref<128x16xbf16, #tpu.memory_space<vmem>>, vector<128x16xbf16>
    %c0_1 = arith.constant 0 : index
    %c0_2 = arith.constant 0 : index
    %1 = vector.load %arg3[%c0_1, %c0_2] : memref<16x128xbf16, #tpu.memory_space<vmem>>, vector<16x128xbf16>
    %cst = arith.constant dense<0.000000e+00> : vector<128x128xf32>
    %2 = tpu.matmul %0, %1, %cst {dimension_numbers = #tpu.dot_dimension_numbers<[1], [0], [0], [1], [0, 0, 1, 1], [], []>} : vector<128x16xbf16>, vector<16x128xbf16>, vector<128x128xf32> -> vector<128x128xf32>
    %c0_3 = arith.constant 0 : index
    %c0_4 = arith.constant 0 : index
    %3 = vector.load %arg4[%c0_3, %c0_4] : memref<1x128xf32, #tpu.memory_space<vmem>>, vector<1x128xf32>
    %4 = vector.broadcast %3 : vector<1x128xf32> to vector<128x128xf32>
    %5 = arith.addf %2, %4 : vector<128x128xf32>
    %cst_5 = arith.constant 0.000000e+00 : f32
    %6 = vector.broadcast %cst_5 : f32 to vector<128x128xf32>
    %7 = arith.cmpf ogt, %5, %6 : vector<128x128xf32>
    %cst_6 = arith.constant 1.000000e-01 : f32
    %8 = vector.broadcast %cst_6 : f32 to vector<128x128xf32>
    %9 = arith.mulf %8, %5 : vector<128x128xf32>
    %10 = arith.select %7, %5, %9 : vector<128x128xi1>, vector<128x128xf32>
    %c0_7 = arith.constant 0 : index
    %c0_8 = arith.constant 0 : index
    %11 = vector.load %arg5[%c0_7, %c0_8] : memref<128x128xf32, #tpu.memory_space<vmem>>, vector<128x128xf32>
    tpu.vector_store %arg5[%c0_7, %c0_8], %10 {strides = array<i32>} : memref<128x128xf32, #tpu.memory_space<vmem>>, vector<128x128xf32>,
    return
  }
  func.func @transform_0(%arg0: i32, %arg1: i32) -> (i32, i32) {
    %c0_i32 = arith.constant 0 : i32
    %c0_i32_0 = arith.constant 0 : i32
    return %arg0, %c0_i32 : i32, i32
  }
  func.func @transform_1(%arg0: i32, %arg1: i32) -> (i32, i32) {
    %c0_i32 = arith.constant 0 : i32
    %c0_i32_0 = arith.constant 0 : i32
    return %c0_i32, %arg1 : i32, i32
  }
  func.func @transform_2(%arg0: i32, %arg1: i32) -> (i32, i32) {
    %c0_i32 = arith.constant 0 : i32
    %c0_i32_0 = arith.constant 0 : i32
    return %c0_i32, %arg1 : i32, i32
  }
  func.func @transform_3(%arg0: i32, %arg1: i32) -> (i32, i32) {
    %c0_i32 = arith.constant 0 : i32
    return %arg0, %arg1 : i32, i32
  }
}

module attributes {stable_mosaic.version = 11 : i64} {
  func.func @_conv_mm_kernel(%arg0: i32, %arg1: i32, %arg2: memref<128x72xbf16, #tpu.memory_space<vmem>>, %arg3: memref<72x128xbf16, #tpu.memory_space<vmem>>, %arg4: memref<1x128xf32, #tpu.memory_space<vmem>>, %arg5: memref<128x128xf32, #tpu.memory_space<vmem>>, %arg6: memref<128x128xf32, #tpu.memory_space<vmem>>) attributes {dimension_semantics = [#tpu.dimension_semantics<parallel>, #tpu.dimension_semantics<parallel>], iteration_bounds = array<i64: 1, 1>, scalar_prefetch = 0 : i64, scratch_operands = 0 : i64, tpu.core_type = #tpu.core_type<tc>, window_params = [{transform_indices = @transform_0, window_bounds = array<i64: 128, 72>}, {transform_indices = @transform_1, window_bounds = array<i64: 72, 128>}, {transform_indices = @transform_2, window_bounds = array<i64: 1, 128>}, {transform_indices = @transform_3, window_bounds = array<i64: 128, 128>}, {transform_indices = @transform_4, window_bounds = array<i64: 128, 128>}]} {
    %c0 = arith.constant 0 : index
    %c0_0 = arith.constant 0 : index
    %0 = vector.load %arg2[%c0, %c0_0] : memref<128x72xbf16, #tpu.memory_space<vmem>>, vector<128x72xbf16>
    %c0_1 = arith.constant 0 : index
    %c0_2 = arith.constant 0 : index
    %1 = vector.load %arg3[%c0_1, %c0_2] : memref<72x128xbf16, #tpu.memory_space<vmem>>, vector<72x128xbf16>
    %cst = arith.constant dense<0.000000e+00> : vector<128x128xf32>
    %2 = tpu.matmul %0, %1, %cst {dimension_numbers = #tpu.dot_dimension_numbers<[1], [0], [0], [1], [0, 0, 1, 1], [], []>} : vector<128x72xbf16>, vector<72x128xbf16>, vector<128x128xf32> -> vector<128x128xf32>
    %c0_3 = arith.constant 0 : index
    %c0_4 = arith.constant 0 : index
    %3 = vector.load %arg4[%c0_3, %c0_4] : memref<1x128xf32, #tpu.memory_space<vmem>>, vector<1x128xf32>
    %4 = vector.broadcast %3 : vector<1x128xf32> to vector<128x128xf32>
    %5 = arith.addf %2, %4 : vector<128x128xf32>
    %cst_5 = arith.constant 0.000000e+00 : f32
    %6 = vector.broadcast %cst_5 : f32 to vector<128x128xf32>
    %7 = arith.cmpf ogt, %5, %6 : vector<128x128xf32>
    %cst_6 = arith.constant 1.000000e-01 : f32
    %8 = vector.broadcast %cst_6 : f32 to vector<128x128xf32>
    %9 = arith.mulf %8, %5 : vector<128x128xf32>
    %10 = arith.select %7, %5, %9 : vector<128x128xi1>, vector<128x128xf32>
    %c0_7 = arith.constant 0 : index
    %c0_8 = arith.constant 0 : index
    %11 = vector.load %arg5[%c0_7, %c0_8] : memref<128x128xf32, #tpu.memory_space<vmem>>, vector<128x128xf32>
    %12 = arith.addf %10, %11 : vector<128x128xf32>
    %c0_9 = arith.constant 0 : index
    %c0_10 = arith.constant 0 : index
    %13 = vector.load %arg6[%c0_9, %c0_10] : memref<128x128xf32, #tpu.memory_space<vmem>>, vector<128x128xf32>
    tpu.vector_store %arg6[%c0_9, %c0_10], %12 {strides = array<i32>} : memref<128x128xf32, #tpu.memory_space<vmem>>, vector<128x128xf32>,
    return
  }
  func.func @transform_0(%arg0: i32, %arg1: i32) -> (i32, i32) {
    %c0_i32 = arith.constant 0 : i32
    %c0_i32_0 = arith.constant 0 : i32
    return %arg0, %c0_i32 : i32, i32
  }
  func.func @transform_1(%arg0: i32, %arg1: i32) -> (i32, i32) {
    %c0_i32 = arith.constant 0 : i32
    %c0_i32_0 = arith.constant 0 : i32
    return %c0_i32, %arg1 : i32, i32
  }
  func.func @transform_2(%arg0: i32, %arg1: i32) -> (i32, i32) {
    %c0_i32 = arith.constant 0 : i32
    %c0_i32_0 = arith.constant 0 : i32
    return %c0_i32, %arg1 : i32, i32
  }
  func.func @transform_3(%arg0: i32, %arg1: i32) -> (i32, i32) {
    %c0_i32 = arith.constant 0 : i32
    return %arg0, %arg1 : i32, i32
  }
  func.func @transform_4(%arg0: i32, %arg1: i32) -> (i32, i32) {
    %c0_i32 = arith.constant 0 : i32
    return %arg0, %arg1 : i32, i32
  }
}

module attributes {stable_mosaic.version = 11 : i64} {
  func.func @_conv_mm_kernel(%arg0: i32, %arg1: i32, %arg2: memref<32x144xbf16, #tpu.memory_space<vmem>>, %arg3: memref<144x128xbf16, #tpu.memory_space<vmem>>, %arg4: memref<1x128xf32, #tpu.memory_space<vmem>>, %arg5: memref<32x128xf32, #tpu.memory_space<vmem>>) attributes {dimension_semantics = [#tpu.dimension_semantics<parallel>, #tpu.dimension_semantics<parallel>], iteration_bounds = array<i64: 1, 1>, scalar_prefetch = 0 : i64, scratch_operands = 0 : i64, tpu.core_type = #tpu.core_type<tc>, window_params = [{transform_indices = @transform_0, window_bounds = array<i64: 32, 144>}, {transform_indices = @transform_1, window_bounds = array<i64: 144, 128>}, {transform_indices = @transform_2, window_bounds = array<i64: 1, 128>}, {transform_indices = @transform_3, window_bounds = array<i64: 32, 128>}]} {
    %c0 = arith.constant 0 : index
    %c0_0 = arith.constant 0 : index
    %0 = vector.load %arg2[%c0, %c0_0] : memref<32x144xbf16, #tpu.memory_space<vmem>>, vector<32x144xbf16>
    %c0_1 = arith.constant 0 : index
    %c0_2 = arith.constant 0 : index
    %1 = vector.load %arg3[%c0_1, %c0_2] : memref<144x128xbf16, #tpu.memory_space<vmem>>, vector<144x128xbf16>
    %cst = arith.constant dense<0.000000e+00> : vector<32x128xf32>
    %2 = tpu.matmul %0, %1, %cst {dimension_numbers = #tpu.dot_dimension_numbers<[1], [0], [0], [1], [0, 0, 1, 1], [], []>} : vector<32x144xbf16>, vector<144x128xbf16>, vector<32x128xf32> -> vector<32x128xf32>
    %c0_3 = arith.constant 0 : index
    %c0_4 = arith.constant 0 : index
    %3 = vector.load %arg4[%c0_3, %c0_4] : memref<1x128xf32, #tpu.memory_space<vmem>>, vector<1x128xf32>
    %4 = vector.broadcast %3 : vector<1x128xf32> to vector<32x128xf32>
    %5 = arith.addf %2, %4 : vector<32x128xf32>
    %cst_5 = arith.constant 0.000000e+00 : f32
    %6 = vector.broadcast %cst_5 : f32 to vector<32x128xf32>
    %7 = arith.cmpf ogt, %5, %6 : vector<32x128xf32>
    %cst_6 = arith.constant 1.000000e-01 : f32
    %8 = vector.broadcast %cst_6 : f32 to vector<32x128xf32>
    %9 = arith.mulf %8, %5 : vector<32x128xf32>
    %10 = arith.select %7, %5, %9 : vector<32x128xi1>, vector<32x128xf32>
    %c0_7 = arith.constant 0 : index
    %c0_8 = arith.constant 0 : index
    %11 = vector.load %arg5[%c0_7, %c0_8] : memref<32x128xf32, #tpu.memory_space<vmem>>, vector<32x128xf32>
    tpu.vector_store %arg5[%c0_7, %c0_8], %10 {strides = array<i32>} : memref<32x128xf32, #tpu.memory_space<vmem>>, vector<32x128xf32>,
    return
  }
  func.func @transform_0(%arg0: i32, %arg1: i32) -> (i32, i32) {
    %c0_i32 = arith.constant 0 : i32
    %c0_i32_0 = arith.constant 0 : i32
    return %arg0, %c0_i32 : i32, i32
  }
  func.func @transform_1(%arg0: i32, %arg1: i32) -> (i32, i32) {
    %c0_i32 = arith.constant 0 : i32
    %c0_i32_0 = arith.constant 0 : i32
    return %c0_i32, %arg1 : i32, i32
  }
  func.func @transform_2(%arg0: i32, %arg1: i32) -> (i32, i32) {
    %c0_i32 = arith.constant 0 : i32
    %c0_i32_0 = arith.constant 0 : i32
    return %c0_i32, %arg1 : i32, i32
  }
  func.func @transform_3(%arg0: i32, %arg1: i32) -> (i32, i32) {
    %c0_i32 = arith.constant 0 : i32
    return %arg0, %arg1 : i32, i32
  }
}

module attributes {stable_mosaic.version = 11 : i64} {
  func.func @_conv_mm_kernel(%arg0: i32, %arg1: i32, %arg2: memref<32x32xbf16, #tpu.memory_space<vmem>>, %arg3: memref<32x128xbf16, #tpu.memory_space<vmem>>, %arg4: memref<1x128xf32, #tpu.memory_space<vmem>>, %arg5: memref<32x128xf32, #tpu.memory_space<vmem>>) attributes {dimension_semantics = [#tpu.dimension_semantics<parallel>, #tpu.dimension_semantics<parallel>], iteration_bounds = array<i64: 1, 1>, scalar_prefetch = 0 : i64, scratch_operands = 0 : i64, tpu.core_type = #tpu.core_type<tc>, window_params = [{transform_indices = @transform_0, window_bounds = array<i64: 32, 32>}, {transform_indices = @transform_1, window_bounds = array<i64: 32, 128>}, {transform_indices = @transform_2, window_bounds = array<i64: 1, 128>}, {transform_indices = @transform_3, window_bounds = array<i64: 32, 128>}]} {
    %c0 = arith.constant 0 : index
    %c0_0 = arith.constant 0 : index
    %0 = vector.load %arg2[%c0, %c0_0] : memref<32x32xbf16, #tpu.memory_space<vmem>>, vector<32x32xbf16>
    %c0_1 = arith.constant 0 : index
    %c0_2 = arith.constant 0 : index
    %1 = vector.load %arg3[%c0_1, %c0_2] : memref<32x128xbf16, #tpu.memory_space<vmem>>, vector<32x128xbf16>
    %cst = arith.constant dense<0.000000e+00> : vector<32x128xf32>
    %2 = tpu.matmul %0, %1, %cst {dimension_numbers = #tpu.dot_dimension_numbers<[1], [0], [0], [1], [0, 0, 1, 1], [], []>} : vector<32x32xbf16>, vector<32x128xbf16>, vector<32x128xf32> -> vector<32x128xf32>
    %c0_3 = arith.constant 0 : index
    %c0_4 = arith.constant 0 : index
    %3 = vector.load %arg4[%c0_3, %c0_4] : memref<1x128xf32, #tpu.memory_space<vmem>>, vector<1x128xf32>
    %4 = vector.broadcast %3 : vector<1x128xf32> to vector<32x128xf32>
    %5 = arith.addf %2, %4 : vector<32x128xf32>
    %cst_5 = arith.constant 0.000000e+00 : f32
    %6 = vector.broadcast %cst_5 : f32 to vector<32x128xf32>
    %7 = arith.cmpf ogt, %5, %6 : vector<32x128xf32>
    %cst_6 = arith.constant 1.000000e-01 : f32
    %8 = vector.broadcast %cst_6 : f32 to vector<32x128xf32>
    %9 = arith.mulf %8, %5 : vector<32x128xf32>
    %10 = arith.select %7, %5, %9 : vector<32x128xi1>, vector<32x128xf32>
    %c0_7 = arith.constant 0 : index
    %c0_8 = arith.constant 0 : index
    %11 = vector.load %arg5[%c0_7, %c0_8] : memref<32x128xf32, #tpu.memory_space<vmem>>, vector<32x128xf32>
    tpu.vector_store %arg5[%c0_7, %c0_8], %10 {strides = array<i32>} : memref<32x128xf32, #tpu.memory_space<vmem>>, vector<32x128xf32>,
    return
  }
  func.func @transform_0(%arg0: i32, %arg1: i32) -> (i32, i32) {
    %c0_i32 = arith.constant 0 : i32
    %c0_i32_0 = arith.constant 0 : i32
    return %arg0, %c0_i32 : i32, i32
  }
  func.func @transform_1(%arg0: i32, %arg1: i32) -> (i32, i32) {
    %c0_i32 = arith.constant 0 : i32
    %c0_i32_0 = arith.constant 0 : i32
    return %c0_i32, %arg1 : i32, i32
  }
  func.func @transform_2(%arg0: i32, %arg1: i32) -> (i32, i32) {
    %c0_i32 = arith.constant 0 : i32
    %c0_i32_0 = arith.constant 0 : i32
    return %c0_i32, %arg1 : i32, i32
  }
  func.func @transform_3(%arg0: i32, %arg1: i32) -> (i32, i32) {
    %c0_i32 = arith.constant 0 : i32
    return %arg0, %arg1 : i32, i32
  }
}

module attributes {stable_mosaic.version = 11 : i64} {
  func.func @_conv_mm_kernel(%arg0: i32, %arg1: i32, %arg2: memref<32x144xbf16, #tpu.memory_space<vmem>>, %arg3: memref<144x128xbf16, #tpu.memory_space<vmem>>, %arg4: memref<1x128xf32, #tpu.memory_space<vmem>>, %arg5: memref<32x128xf32, #tpu.memory_space<vmem>>, %arg6: memref<32x128xf32, #tpu.memory_space<vmem>>) attributes {dimension_semantics = [#tpu.dimension_semantics<parallel>, #tpu.dimension_semantics<parallel>], iteration_bounds = array<i64: 1, 1>, scalar_prefetch = 0 : i64, scratch_operands = 0 : i64, tpu.core_type = #tpu.core_type<tc>, window_params = [{transform_indices = @transform_0, window_bounds = array<i64: 32, 144>}, {transform_indices = @transform_1, window_bounds = array<i64: 144, 128>}, {transform_indices = @transform_2, window_bounds = array<i64: 1, 128>}, {transform_indices = @transform_3, window_bounds = array<i64: 32, 128>}, {transform_indices = @transform_4, window_bounds = array<i64: 32, 128>}]} {
    %c0 = arith.constant 0 : index
    %c0_0 = arith.constant 0 : index
    %0 = vector.load %arg2[%c0, %c0_0] : memref<32x144xbf16, #tpu.memory_space<vmem>>, vector<32x144xbf16>
    %c0_1 = arith.constant 0 : index
    %c0_2 = arith.constant 0 : index
    %1 = vector.load %arg3[%c0_1, %c0_2] : memref<144x128xbf16, #tpu.memory_space<vmem>>, vector<144x128xbf16>
    %cst = arith.constant dense<0.000000e+00> : vector<32x128xf32>
    %2 = tpu.matmul %0, %1, %cst {dimension_numbers = #tpu.dot_dimension_numbers<[1], [0], [0], [1], [0, 0, 1, 1], [], []>} : vector<32x144xbf16>, vector<144x128xbf16>, vector<32x128xf32> -> vector<32x128xf32>
    %c0_3 = arith.constant 0 : index
    %c0_4 = arith.constant 0 : index
    %3 = vector.load %arg4[%c0_3, %c0_4] : memref<1x128xf32, #tpu.memory_space<vmem>>, vector<1x128xf32>
    %4 = vector.broadcast %3 : vector<1x128xf32> to vector<32x128xf32>
    %5 = arith.addf %2, %4 : vector<32x128xf32>
    %cst_5 = arith.constant 0.000000e+00 : f32
    %6 = vector.broadcast %cst_5 : f32 to vector<32x128xf32>
    %7 = arith.cmpf ogt, %5, %6 : vector<32x128xf32>
    %cst_6 = arith.constant 1.000000e-01 : f32
    %8 = vector.broadcast %cst_6 : f32 to vector<32x128xf32>
    %9 = arith.mulf %8, %5 : vector<32x128xf32>
    %10 = arith.select %7, %5, %9 : vector<32x128xi1>, vector<32x128xf32>
    %c0_7 = arith.constant 0 : index
    %c0_8 = arith.constant 0 : index
    %11 = vector.load %arg5[%c0_7, %c0_8] : memref<32x128xf32, #tpu.memory_space<vmem>>, vector<32x128xf32>
    %12 = arith.addf %10, %11 : vector<32x128xf32>
    %c0_9 = arith.constant 0 : index
    %c0_10 = arith.constant 0 : index
    %13 = vector.load %arg6[%c0_9, %c0_10] : memref<32x128xf32, #tpu.memory_space<vmem>>, vector<32x128xf32>
    tpu.vector_store %arg6[%c0_9, %c0_10], %12 {strides = array<i32>} : memref<32x128xf32, #tpu.memory_space<vmem>>, vector<32x128xf32>,
    return
  }
  func.func @transform_0(%arg0: i32, %arg1: i32) -> (i32, i32) {
    %c0_i32 = arith.constant 0 : i32
    %c0_i32_0 = arith.constant 0 : i32
    return %arg0, %c0_i32 : i32, i32
  }
  func.func @transform_1(%arg0: i32, %arg1: i32) -> (i32, i32) {
    %c0_i32 = arith.constant 0 : i32
    %c0_i32_0 = arith.constant 0 : i32
    return %c0_i32, %arg1 : i32, i32
  }
  func.func @transform_2(%arg0: i32, %arg1: i32) -> (i32, i32) {
    %c0_i32 = arith.constant 0 : i32
    %c0_i32_0 = arith.constant 0 : i32
    return %c0_i32, %arg1 : i32, i32
  }
  func.func @transform_3(%arg0: i32, %arg1: i32) -> (i32, i32) {
    %c0_i32 = arith.constant 0 : i32
    return %arg0, %arg1 : i32, i32
  }
  func.func @transform_4(%arg0: i32, %arg1: i32) -> (i32, i32) {
    %c0_i32 = arith.constant 0 : i32
    return %arg0, %arg1 : i32, i32
  }
}

module attributes {stable_mosaic.version = 11 : i64} {
  func.func @_conv_mm_kernel(%arg0: i32, %arg1: i32, %arg2: memref<8x288xbf16, #tpu.memory_space<vmem>>, %arg3: memref<288x128xbf16, #tpu.memory_space<vmem>>, %arg4: memref<1x128xf32, #tpu.memory_space<vmem>>, %arg5: memref<8x128xf32, #tpu.memory_space<vmem>>) attributes {dimension_semantics = [#tpu.dimension_semantics<parallel>, #tpu.dimension_semantics<parallel>], iteration_bounds = array<i64: 1, 1>, scalar_prefetch = 0 : i64, scratch_operands = 0 : i64, tpu.core_type = #tpu.core_type<tc>, window_params = [{transform_indices = @transform_0, window_bounds = array<i64: 8, 288>}, {transform_indices = @transform_1, window_bounds = array<i64: 288, 128>}, {transform_indices = @transform_2, window_bounds = array<i64: 1, 128>}, {transform_indices = @transform_3, window_bounds = array<i64: 8, 128>}]} {
    %c0 = arith.constant 0 : index
    %c0_0 = arith.constant 0 : index
    %0 = vector.load %arg2[%c0, %c0_0] : memref<8x288xbf16, #tpu.memory_space<vmem>>, vector<8x288xbf16>
    %c0_1 = arith.constant 0 : index
    %c0_2 = arith.constant 0 : index
    %1 = vector.load %arg3[%c0_1, %c0_2] : memref<288x128xbf16, #tpu.memory_space<vmem>>, vector<288x128xbf16>
    %cst = arith.constant dense<0.000000e+00> : vector<8x128xf32>
    %2 = tpu.matmul %0, %1, %cst {dimension_numbers = #tpu.dot_dimension_numbers<[1], [0], [0], [1], [0, 0, 1, 1], [], []>} : vector<8x288xbf16>, vector<288x128xbf16>, vector<8x128xf32> -> vector<8x128xf32>
    %c0_3 = arith.constant 0 : index
    %c0_4 = arith.constant 0 : index
    %3 = vector.load %arg4[%c0_3, %c0_4] : memref<1x128xf32, #tpu.memory_space<vmem>>, vector<1x128xf32>
    %4 = vector.broadcast %3 : vector<1x128xf32> to vector<8x128xf32>
    %5 = arith.addf %2, %4 : vector<8x128xf32>
    %cst_5 = arith.constant 0.000000e+00 : f32
    %6 = vector.broadcast %cst_5 : f32 to vector<8x128xf32>
    %7 = arith.cmpf ogt, %5, %6 : vector<8x128xf32>
    %cst_6 = arith.constant 1.000000e-01 : f32
    %8 = vector.broadcast %cst_6 : f32 to vector<8x128xf32>
    %9 = arith.mulf %8, %5 : vector<8x128xf32>
    %10 = arith.select %7, %5, %9 : vector<8x128xi1>, vector<8x128xf32>
    %c0_7 = arith.constant 0 : index
    %c0_8 = arith.constant 0 : index
    %11 = vector.load %arg5[%c0_7, %c0_8] : memref<8x128xf32, #tpu.memory_space<vmem>>, vector<8x128xf32>
    tpu.vector_store %arg5[%c0_7, %c0_8], %10 {strides = array<i32>} : memref<8x128xf32, #tpu.memory_space<vmem>>, vector<8x128xf32>,
    return
  }
  func.func @transform_0(%arg0: i32, %arg1: i32) -> (i32, i32) {
    %c0_i32 = arith.constant 0 : i32
    %c0_i32_0 = arith.constant 0 : i32
    return %arg0, %c0_i32 : i32, i32
  }
  func.func @transform_1(%arg0: i32, %arg1: i32) -> (i32, i32) {
    %c0_i32 = arith.constant 0 : i32
    %c0_i32_0 = arith.constant 0 : i32
    return %c0_i32, %arg1 : i32, i32
  }
  func.func @transform_2(%arg0: i32, %arg1: i32) -> (i32, i32) {
    %c0_i32 = arith.constant 0 : i32
    %c0_i32_0 = arith.constant 0 : i32
    return %c0_i32, %arg1 : i32, i32
  }
  func.func @transform_3(%arg0: i32, %arg1: i32) -> (i32, i32) {
    %c0_i32 = arith.constant 0 : i32
    return %arg0, %arg1 : i32, i32
  }
}

module attributes {stable_mosaic.version = 11 : i64} {
  func.func @_conv_mm_kernel(%arg0: i32, %arg1: i32, %arg2: memref<8x64xbf16, #tpu.memory_space<vmem>>, %arg3: memref<64x128xbf16, #tpu.memory_space<vmem>>, %arg4: memref<1x128xf32, #tpu.memory_space<vmem>>, %arg5: memref<8x128xf32, #tpu.memory_space<vmem>>) attributes {dimension_semantics = [#tpu.dimension_semantics<parallel>, #tpu.dimension_semantics<parallel>], iteration_bounds = array<i64: 1, 1>, scalar_prefetch = 0 : i64, scratch_operands = 0 : i64, tpu.core_type = #tpu.core_type<tc>, window_params = [{transform_indices = @transform_0, window_bounds = array<i64: 8, 64>}, {transform_indices = @transform_1, window_bounds = array<i64: 64, 128>}, {transform_indices = @transform_2, window_bounds = array<i64: 1, 128>}, {transform_indices = @transform_3, window_bounds = array<i64: 8, 128>}]} {
    %c0 = arith.constant 0 : index
    %c0_0 = arith.constant 0 : index
    %0 = vector.load %arg2[%c0, %c0_0] : memref<8x64xbf16, #tpu.memory_space<vmem>>, vector<8x64xbf16>
    %c0_1 = arith.constant 0 : index
    %c0_2 = arith.constant 0 : index
    %1 = vector.load %arg3[%c0_1, %c0_2] : memref<64x128xbf16, #tpu.memory_space<vmem>>, vector<64x128xbf16>
    %cst = arith.constant dense<0.000000e+00> : vector<8x128xf32>
    %2 = tpu.matmul %0, %1, %cst {dimension_numbers = #tpu.dot_dimension_numbers<[1], [0], [0], [1], [0, 0, 1, 1], [], []>} : vector<8x64xbf16>, vector<64x128xbf16>, vector<8x128xf32> -> vector<8x128xf32>
    %c0_3 = arith.constant 0 : index
    %c0_4 = arith.constant 0 : index
    %3 = vector.load %arg4[%c0_3, %c0_4] : memref<1x128xf32, #tpu.memory_space<vmem>>, vector<1x128xf32>
    %4 = vector.broadcast %3 : vector<1x128xf32> to vector<8x128xf32>
    %5 = arith.addf %2, %4 : vector<8x128xf32>
    %cst_5 = arith.constant 0.000000e+00 : f32
    %6 = vector.broadcast %cst_5 : f32 to vector<8x128xf32>
    %7 = arith.cmpf ogt, %5, %6 : vector<8x128xf32>
    %cst_6 = arith.constant 1.000000e-01 : f32
    %8 = vector.broadcast %cst_6 : f32 to vector<8x128xf32>
    %9 = arith.mulf %8, %5 : vector<8x128xf32>
    %10 = arith.select %7, %5, %9 : vector<8x128xi1>, vector<8x128xf32>
    %c0_7 = arith.constant 0 : index
    %c0_8 = arith.constant 0 : index
    %11 = vector.load %arg5[%c0_7, %c0_8] : memref<8x128xf32, #tpu.memory_space<vmem>>, vector<8x128xf32>
    tpu.vector_store %arg5[%c0_7, %c0_8], %10 {strides = array<i32>} : memref<8x128xf32, #tpu.memory_space<vmem>>, vector<8x128xf32>,
    return
  }
  func.func @transform_0(%arg0: i32, %arg1: i32) -> (i32, i32) {
    %c0_i32 = arith.constant 0 : i32
    %c0_i32_0 = arith.constant 0 : i32
    return %arg0, %c0_i32 : i32, i32
  }
  func.func @transform_1(%arg0: i32, %arg1: i32) -> (i32, i32) {
    %c0_i32 = arith.constant 0 : i32
    %c0_i32_0 = arith.constant 0 : i32
    return %c0_i32, %arg1 : i32, i32
  }
  func.func @transform_2(%arg0: i32, %arg1: i32) -> (i32, i32) {
    %c0_i32 = arith.constant 0 : i32
    %c0_i32_0 = arith.constant 0 : i32
    return %c0_i32, %arg1 : i32, i32
  }
  func.func @transform_3(%arg0: i32, %arg1: i32) -> (i32, i32) {
    %c0_i32 = arith.constant 0 : i32
    return %arg0, %arg1 : i32, i32
  }
}

module attributes {stable_mosaic.version = 11 : i64} {
  func.func @_conv_mm_kernel(%arg0: i32, %arg1: i32, %arg2: memref<8x288xbf16, #tpu.memory_space<vmem>>, %arg3: memref<288x128xbf16, #tpu.memory_space<vmem>>, %arg4: memref<1x128xf32, #tpu.memory_space<vmem>>, %arg5: memref<8x128xf32, #tpu.memory_space<vmem>>, %arg6: memref<8x128xf32, #tpu.memory_space<vmem>>) attributes {dimension_semantics = [#tpu.dimension_semantics<parallel>, #tpu.dimension_semantics<parallel>], iteration_bounds = array<i64: 1, 1>, scalar_prefetch = 0 : i64, scratch_operands = 0 : i64, tpu.core_type = #tpu.core_type<tc>, window_params = [{transform_indices = @transform_0, window_bounds = array<i64: 8, 288>}, {transform_indices = @transform_1, window_bounds = array<i64: 288, 128>}, {transform_indices = @transform_2, window_bounds = array<i64: 1, 128>}, {transform_indices = @transform_3, window_bounds = array<i64: 8, 128>}, {transform_indices = @transform_4, window_bounds = array<i64: 8, 128>}]} {
    %c0 = arith.constant 0 : index
    %c0_0 = arith.constant 0 : index
    %0 = vector.load %arg2[%c0, %c0_0] : memref<8x288xbf16, #tpu.memory_space<vmem>>, vector<8x288xbf16>
    %c0_1 = arith.constant 0 : index
    %c0_2 = arith.constant 0 : index
    %1 = vector.load %arg3[%c0_1, %c0_2] : memref<288x128xbf16, #tpu.memory_space<vmem>>, vector<288x128xbf16>
    %cst = arith.constant dense<0.000000e+00> : vector<8x128xf32>
    %2 = tpu.matmul %0, %1, %cst {dimension_numbers = #tpu.dot_dimension_numbers<[1], [0], [0], [1], [0, 0, 1, 1], [], []>} : vector<8x288xbf16>, vector<288x128xbf16>, vector<8x128xf32> -> vector<8x128xf32>
    %c0_3 = arith.constant 0 : index
    %c0_4 = arith.constant 0 : index
    %3 = vector.load %arg4[%c0_3, %c0_4] : memref<1x128xf32, #tpu.memory_space<vmem>>, vector<1x128xf32>
    %4 = vector.broadcast %3 : vector<1x128xf32> to vector<8x128xf32>
    %5 = arith.addf %2, %4 : vector<8x128xf32>
    %cst_5 = arith.constant 0.000000e+00 : f32
    %6 = vector.broadcast %cst_5 : f32 to vector<8x128xf32>
    %7 = arith.cmpf ogt, %5, %6 : vector<8x128xf32>
    %cst_6 = arith.constant 1.000000e-01 : f32
    %8 = vector.broadcast %cst_6 : f32 to vector<8x128xf32>
    %9 = arith.mulf %8, %5 : vector<8x128xf32>
    %10 = arith.select %7, %5, %9 : vector<8x128xi1>, vector<8x128xf32>
    %c0_7 = arith.constant 0 : index
    %c0_8 = arith.constant 0 : index
    %11 = vector.load %arg5[%c0_7, %c0_8] : memref<8x128xf32, #tpu.memory_space<vmem>>, vector<8x128xf32>
    %12 = arith.addf %10, %11 : vector<8x128xf32>
    %c0_9 = arith.constant 0 : index
    %c0_10 = arith.constant 0 : index
    %13 = vector.load %arg6[%c0_9, %c0_10] : memref<8x128xf32, #tpu.memory_space<vmem>>, vector<8x128xf32>
    tpu.vector_store %arg6[%c0_9, %c0_10], %12 {strides = array<i32>} : memref<8x128xf32, #tpu.memory_space<vmem>>, vector<8x128xf32>,
    return
  }
  func.func @transform_0(%arg0: i32, %arg1: i32) -> (i32, i32) {
    %c0_i32 = arith.constant 0 : i32
    %c0_i32_0 = arith.constant 0 : i32
    return %arg0, %c0_i32 : i32, i32
  }
  func.func @transform_1(%arg0: i32, %arg1: i32) -> (i32, i32) {
    %c0_i32 = arith.constant 0 : i32
    %c0_i32_0 = arith.constant 0 : i32
    return %c0_i32, %arg1 : i32, i32
  }
  func.func @transform_2(%arg0: i32, %arg1: i32) -> (i32, i32) {
    %c0_i32 = arith.constant 0 : i32
    %c0_i32_0 = arith.constant 0 : i32
    return %c0_i32, %arg1 : i32, i32
  }
  func.func @transform_3(%arg0: i32, %arg1: i32) -> (i32, i32) {
    %c0_i32 = arith.constant 0 : i32
    return %arg0, %arg1 : i32, i32
  }
  func.func @transform_4(%arg0: i32, %arg1: i32) -> (i32, i32) {
    %c0_i32 = arith.constant 0 : i32
    return %arg0, %arg1 : i32, i32
  }
}

module attributes {stable_mosaic.version = 11 : i64} {
  func.func @_conv_mm_kernel(%arg0: i32, %arg1: i32, %arg2: memref<8x576xbf16, #tpu.memory_space<vmem>>, %arg3: memref<576x128xbf16, #tpu.memory_space<vmem>>, %arg4: memref<1x128xf32, #tpu.memory_space<vmem>>, %arg5: memref<8x128xf32, #tpu.memory_space<vmem>>) attributes {dimension_semantics = [#tpu.dimension_semantics<parallel>, #tpu.dimension_semantics<parallel>], iteration_bounds = array<i64: 1, 1>, scalar_prefetch = 0 : i64, scratch_operands = 0 : i64, tpu.core_type = #tpu.core_type<tc>, window_params = [{transform_indices = @transform_0, window_bounds = array<i64: 8, 576>}, {transform_indices = @transform_1, window_bounds = array<i64: 576, 128>}, {transform_indices = @transform_2, window_bounds = array<i64: 1, 128>}, {transform_indices = @transform_3, window_bounds = array<i64: 8, 128>}]} {
    %c0 = arith.constant 0 : index
    %c0_0 = arith.constant 0 : index
    %0 = vector.load %arg2[%c0, %c0_0] : memref<8x576xbf16, #tpu.memory_space<vmem>>, vector<8x576xbf16>
    %c0_1 = arith.constant 0 : index
    %c0_2 = arith.constant 0 : index
    %1 = vector.load %arg3[%c0_1, %c0_2] : memref<576x128xbf16, #tpu.memory_space<vmem>>, vector<576x128xbf16>
    %cst = arith.constant dense<0.000000e+00> : vector<8x128xf32>
    %2 = tpu.matmul %0, %1, %cst {dimension_numbers = #tpu.dot_dimension_numbers<[1], [0], [0], [1], [0, 0, 1, 1], [], []>} : vector<8x576xbf16>, vector<576x128xbf16>, vector<8x128xf32> -> vector<8x128xf32>
    %c0_3 = arith.constant 0 : index
    %c0_4 = arith.constant 0 : index
    %3 = vector.load %arg4[%c0_3, %c0_4] : memref<1x128xf32, #tpu.memory_space<vmem>>, vector<1x128xf32>
    %4 = vector.broadcast %3 : vector<1x128xf32> to vector<8x128xf32>
    %5 = arith.addf %2, %4 : vector<8x128xf32>
    %cst_5 = arith.constant 0.000000e+00 : f32
    %6 = vector.broadcast %cst_5 : f32 to vector<8x128xf32>
    %7 = arith.cmpf ogt, %5, %6 : vector<8x128xf32>
    %cst_6 = arith.constant 1.000000e-01 : f32
    %8 = vector.broadcast %cst_6 : f32 to vector<8x128xf32>
    %9 = arith.mulf %8, %5 : vector<8x128xf32>
    %10 = arith.select %7, %5, %9 : vector<8x128xi1>, vector<8x128xf32>
    %c0_7 = arith.constant 0 : index
    %c0_8 = arith.constant 0 : index
    %11 = vector.load %arg5[%c0_7, %c0_8] : memref<8x128xf32, #tpu.memory_space<vmem>>, vector<8x128xf32>
    tpu.vector_store %arg5[%c0_7, %c0_8], %10 {strides = array<i32>} : memref<8x128xf32, #tpu.memory_space<vmem>>, vector<8x128xf32>,
    return
  }
  func.func @transform_0(%arg0: i32, %arg1: i32) -> (i32, i32) {
    %c0_i32 = arith.constant 0 : i32
    %c0_i32_0 = arith.constant 0 : i32
    return %arg0, %c0_i32 : i32, i32
  }
  func.func @transform_1(%arg0: i32, %arg1: i32) -> (i32, i32) {
    %c0_i32 = arith.constant 0 : i32
    %c0_i32_0 = arith.constant 0 : i32
    return %c0_i32, %arg1 : i32, i32
  }
  func.func @transform_2(%arg0: i32, %arg1: i32) -> (i32, i32) {
    %c0_i32 = arith.constant 0 : i32
    %c0_i32_0 = arith.constant 0 : i32
    return %c0_i32, %arg1 : i32, i32
  }
  func.func @transform_3(%arg0: i32, %arg1: i32) -> (i32, i32) {
    %c0_i32 = arith.constant 0 : i32
    return %arg0, %arg1 : i32, i32
  }
}

module attributes {stable_mosaic.version = 11 : i64} {
  func.func @_conv_mm_kernel(%arg0: i32, %arg1: i32, %arg2: memref<8x128xbf16, #tpu.memory_space<vmem>>, %arg3: memref<128x128xbf16, #tpu.memory_space<vmem>>, %arg4: memref<1x128xf32, #tpu.memory_space<vmem>>, %arg5: memref<8x128xf32, #tpu.memory_space<vmem>>) attributes {dimension_semantics = [#tpu.dimension_semantics<parallel>, #tpu.dimension_semantics<parallel>], iteration_bounds = array<i64: 1, 1>, scalar_prefetch = 0 : i64, scratch_operands = 0 : i64, tpu.core_type = #tpu.core_type<tc>, window_params = [{transform_indices = @transform_0, window_bounds = array<i64: 8, 128>}, {transform_indices = @transform_1, window_bounds = array<i64: 128, 128>}, {transform_indices = @transform_2, window_bounds = array<i64: 1, 128>}, {transform_indices = @transform_3, window_bounds = array<i64: 8, 128>}]} {
    %c0 = arith.constant 0 : index
    %c0_0 = arith.constant 0 : index
    %0 = vector.load %arg2[%c0, %c0_0] : memref<8x128xbf16, #tpu.memory_space<vmem>>, vector<8x128xbf16>
    %c0_1 = arith.constant 0 : index
    %c0_2 = arith.constant 0 : index
    %1 = vector.load %arg3[%c0_1, %c0_2] : memref<128x128xbf16, #tpu.memory_space<vmem>>, vector<128x128xbf16>
    %cst = arith.constant dense<0.000000e+00> : vector<8x128xf32>
    %2 = tpu.matmul %0, %1, %cst {dimension_numbers = #tpu.dot_dimension_numbers<[1], [0], [0], [1], [0, 0, 1, 1], [], []>} : vector<8x128xbf16>, vector<128x128xbf16>, vector<8x128xf32> -> vector<8x128xf32>
    %c0_3 = arith.constant 0 : index
    %c0_4 = arith.constant 0 : index
    %3 = vector.load %arg4[%c0_3, %c0_4] : memref<1x128xf32, #tpu.memory_space<vmem>>, vector<1x128xf32>
    %4 = vector.broadcast %3 : vector<1x128xf32> to vector<8x128xf32>
    %5 = arith.addf %2, %4 : vector<8x128xf32>
    %cst_5 = arith.constant 0.000000e+00 : f32
    %6 = vector.broadcast %cst_5 : f32 to vector<8x128xf32>
    %7 = arith.cmpf ogt, %5, %6 : vector<8x128xf32>
    %cst_6 = arith.constant 1.000000e-01 : f32
    %8 = vector.broadcast %cst_6 : f32 to vector<8x128xf32>
    %9 = arith.mulf %8, %5 : vector<8x128xf32>
    %10 = arith.select %7, %5, %9 : vector<8x128xi1>, vector<8x128xf32>
    %c0_7 = arith.constant 0 : index
    %c0_8 = arith.constant 0 : index
    %11 = vector.load %arg5[%c0_7, %c0_8] : memref<8x128xf32, #tpu.memory_space<vmem>>, vector<8x128xf32>
    tpu.vector_store %arg5[%c0_7, %c0_8], %10 {strides = array<i32>} : memref<8x128xf32, #tpu.memory_space<vmem>>, vector<8x128xf32>,
    return
  }
  func.func @transform_0(%arg0: i32, %arg1: i32) -> (i32, i32) {
    %c0_i32 = arith.constant 0 : i32
    %c0_i32_0 = arith.constant 0 : i32
    return %arg0, %c0_i32 : i32, i32
  }
  func.func @transform_1(%arg0: i32, %arg1: i32) -> (i32, i32) {
    %c0_i32 = arith.constant 0 : i32
    %c0_i32_0 = arith.constant 0 : i32
    return %c0_i32, %arg1 : i32, i32
  }
  func.func @transform_2(%arg0: i32, %arg1: i32) -> (i32, i32) {
    %c0_i32 = arith.constant 0 : i32
    %c0_i32_0 = arith.constant 0 : i32
    return %c0_i32, %arg1 : i32, i32
  }
  func.func @transform_3(%arg0: i32, %arg1: i32) -> (i32, i32) {
    %c0_i32 = arith.constant 0 : i32
    return %arg0, %arg1 : i32, i32
  }
}

module attributes {stable_mosaic.version = 11 : i64} {
  func.func @_conv_mm_kernel(%arg0: i32, %arg1: i32, %arg2: memref<8x576xbf16, #tpu.memory_space<vmem>>, %arg3: memref<576x128xbf16, #tpu.memory_space<vmem>>, %arg4: memref<1x128xf32, #tpu.memory_space<vmem>>, %arg5: memref<8x128xf32, #tpu.memory_space<vmem>>, %arg6: memref<8x128xf32, #tpu.memory_space<vmem>>) attributes {dimension_semantics = [#tpu.dimension_semantics<parallel>, #tpu.dimension_semantics<parallel>], iteration_bounds = array<i64: 1, 1>, scalar_prefetch = 0 : i64, scratch_operands = 0 : i64, tpu.core_type = #tpu.core_type<tc>, window_params = [{transform_indices = @transform_0, window_bounds = array<i64: 8, 576>}, {transform_indices = @transform_1, window_bounds = array<i64: 576, 128>}, {transform_indices = @transform_2, window_bounds = array<i64: 1, 128>}, {transform_indices = @transform_3, window_bounds = array<i64: 8, 128>}, {transform_indices = @transform_4, window_bounds = array<i64: 8, 128>}]} {
    %c0 = arith.constant 0 : index
    %c0_0 = arith.constant 0 : index
    %0 = vector.load %arg2[%c0, %c0_0] : memref<8x576xbf16, #tpu.memory_space<vmem>>, vector<8x576xbf16>
    %c0_1 = arith.constant 0 : index
    %c0_2 = arith.constant 0 : index
    %1 = vector.load %arg3[%c0_1, %c0_2] : memref<576x128xbf16, #tpu.memory_space<vmem>>, vector<576x128xbf16>
    %cst = arith.constant dense<0.000000e+00> : vector<8x128xf32>
    %2 = tpu.matmul %0, %1, %cst {dimension_numbers = #tpu.dot_dimension_numbers<[1], [0], [0], [1], [0, 0, 1, 1], [], []>} : vector<8x576xbf16>, vector<576x128xbf16>, vector<8x128xf32> -> vector<8x128xf32>
    %c0_3 = arith.constant 0 : index
    %c0_4 = arith.constant 0 : index
    %3 = vector.load %arg4[%c0_3, %c0_4] : memref<1x128xf32, #tpu.memory_space<vmem>>, vector<1x128xf32>
    %4 = vector.broadcast %3 : vector<1x128xf32> to vector<8x128xf32>
    %5 = arith.addf %2, %4 : vector<8x128xf32>
    %cst_5 = arith.constant 0.000000e+00 : f32
    %6 = vector.broadcast %cst_5 : f32 to vector<8x128xf32>
    %7 = arith.cmpf ogt, %5, %6 : vector<8x128xf32>
    %cst_6 = arith.constant 1.000000e-01 : f32
    %8 = vector.broadcast %cst_6 : f32 to vector<8x128xf32>
    %9 = arith.mulf %8, %5 : vector<8x128xf32>
    %10 = arith.select %7, %5, %9 : vector<8x128xi1>, vector<8x128xf32>
    %c0_7 = arith.constant 0 : index
    %c0_8 = arith.constant 0 : index
    %11 = vector.load %arg5[%c0_7, %c0_8] : memref<8x128xf32, #tpu.memory_space<vmem>>, vector<8x128xf32>
    %12 = arith.addf %10, %11 : vector<8x128xf32>
    %c0_9 = arith.constant 0 : index
    %c0_10 = arith.constant 0 : index
    %13 = vector.load %arg6[%c0_9, %c0_10] : memref<8x128xf32, #tpu.memory_space<vmem>>, vector<8x128xf32>
    tpu.vector_store %arg6[%c0_9, %c0_10], %12 {strides = array<i32>} : memref<8x128xf32, #tpu.memory_space<vmem>>, vector<8x128xf32>,
    return
  }
  func.func @transform_0(%arg0: i32, %arg1: i32) -> (i32, i32) {
    %c0_i32 = arith.constant 0 : i32
    %c0_i32_0 = arith.constant 0 : i32
    return %arg0, %c0_i32 : i32, i32
  }
  func.func @transform_1(%arg0: i32, %arg1: i32) -> (i32, i32) {
    %c0_i32 = arith.constant 0 : i32
    %c0_i32_0 = arith.constant 0 : i32
    return %c0_i32, %arg1 : i32, i32
  }
  func.func @transform_2(%arg0: i32, %arg1: i32) -> (i32, i32) {
    %c0_i32 = arith.constant 0 : i32
    %c0_i32_0 = arith.constant 0 : i32
    return %c0_i32, %arg1 : i32, i32
  }
  func.func @transform_3(%arg0: i32, %arg1: i32) -> (i32, i32) {
    %c0_i32 = arith.constant 0 : i32
    return %arg0, %arg1 : i32, i32
  }
  func.func @transform_4(%arg0: i32, %arg1: i32) -> (i32, i32) {
    %c0_i32 = arith.constant 0 : i32
    return %arg0, %arg1 : i32, i32
  }
}

module attributes {stable_mosaic.version = 11 : i64} {
  func.func @_conv_mm_kernel(%arg0: i32, %arg1: i32, %arg2: memref<8x96xbf16, #tpu.memory_space<vmem>>, %arg3: memref<96x128xbf16, #tpu.memory_space<vmem>>, %arg4: memref<1x128xf32, #tpu.memory_space<vmem>>, %arg5: memref<8x128xf32, #tpu.memory_space<vmem>>) attributes {dimension_semantics = [#tpu.dimension_semantics<parallel>, #tpu.dimension_semantics<parallel>], iteration_bounds = array<i64: 1, 1>, scalar_prefetch = 0 : i64, scratch_operands = 0 : i64, tpu.core_type = #tpu.core_type<tc>, window_params = [{transform_indices = @transform_0, window_bounds = array<i64: 8, 96>}, {transform_indices = @transform_1, window_bounds = array<i64: 96, 128>}, {transform_indices = @transform_2, window_bounds = array<i64: 1, 128>}, {transform_indices = @transform_3, window_bounds = array<i64: 8, 128>}]} {
    %c0 = arith.constant 0 : index
    %c0_0 = arith.constant 0 : index
    %0 = vector.load %arg2[%c0, %c0_0] : memref<8x96xbf16, #tpu.memory_space<vmem>>, vector<8x96xbf16>
    %c0_1 = arith.constant 0 : index
    %c0_2 = arith.constant 0 : index
    %1 = vector.load %arg3[%c0_1, %c0_2] : memref<96x128xbf16, #tpu.memory_space<vmem>>, vector<96x128xbf16>
    %cst = arith.constant dense<0.000000e+00> : vector<8x128xf32>
    %2 = tpu.matmul %0, %1, %cst {dimension_numbers = #tpu.dot_dimension_numbers<[1], [0], [0], [1], [0, 0, 1, 1], [], []>} : vector<8x96xbf16>, vector<96x128xbf16>, vector<8x128xf32> -> vector<8x128xf32>
    %c0_3 = arith.constant 0 : index
    %c0_4 = arith.constant 0 : index
    %3 = vector.load %arg4[%c0_3, %c0_4] : memref<1x128xf32, #tpu.memory_space<vmem>>, vector<1x128xf32>
    %4 = vector.broadcast %3 : vector<1x128xf32> to vector<8x128xf32>
    %5 = arith.addf %2, %4 : vector<8x128xf32>
    %cst_5 = arith.constant 0.000000e+00 : f32
    %6 = vector.broadcast %cst_5 : f32 to vector<8x128xf32>
    %7 = arith.cmpf ogt, %5, %6 : vector<8x128xf32>
    %cst_6 = arith.constant 1.000000e-01 : f32
    %8 = vector.broadcast %cst_6 : f32 to vector<8x128xf32>
    %9 = arith.mulf %8, %5 : vector<8x128xf32>
    %10 = arith.select %7, %5, %9 : vector<8x128xi1>, vector<8x128xf32>
    %c0_7 = arith.constant 0 : index
    %c0_8 = arith.constant 0 : index
    %11 = vector.load %arg5[%c0_7, %c0_8] : memref<8x128xf32, #tpu.memory_space<vmem>>, vector<8x128xf32>
    tpu.vector_store %arg5[%c0_7, %c0_8], %10 {strides = array<i32>} : memref<8x128xf32, #tpu.memory_space<vmem>>, vector<8x128xf32>,
    return
  }
  func.func @transform_0(%arg0: i32, %arg1: i32) -> (i32, i32) {
    %c0_i32 = arith.constant 0 : i32
    %c0_i32_0 = arith.constant 0 : i32
    return %arg0, %c0_i32 : i32, i32
  }
  func.func @transform_1(%arg0: i32, %arg1: i32) -> (i32, i32) {
    %c0_i32 = arith.constant 0 : i32
    %c0_i32_0 = arith.constant 0 : i32
    return %c0_i32, %arg1 : i32, i32
  }
  func.func @transform_2(%arg0: i32, %arg1: i32) -> (i32, i32) {
    %c0_i32 = arith.constant 0 : i32
    %c0_i32_0 = arith.constant 0 : i32
    return %c0_i32, %arg1 : i32, i32
  }
  func.func @transform_3(%arg0: i32, %arg1: i32) -> (i32, i32) {
    %c0_i32 = arith.constant 0 : i32
    return %arg0, %arg1 : i32, i32
  }
}

module attributes {stable_mosaic.version = 11 : i64} {
  func.func @_conv_mm_kernel(%arg0: i32, %arg1: i32, %arg2: memref<8x32xbf16, #tpu.memory_space<vmem>>, %arg3: memref<32x128xbf16, #tpu.memory_space<vmem>>, %arg4: memref<1x128xf32, #tpu.memory_space<vmem>>, %arg5: memref<8x128xf32, #tpu.memory_space<vmem>>) attributes {dimension_semantics = [#tpu.dimension_semantics<parallel>, #tpu.dimension_semantics<parallel>], iteration_bounds = array<i64: 1, 1>, scalar_prefetch = 0 : i64, scratch_operands = 0 : i64, tpu.core_type = #tpu.core_type<tc>, window_params = [{transform_indices = @transform_0, window_bounds = array<i64: 8, 32>}, {transform_indices = @transform_1, window_bounds = array<i64: 32, 128>}, {transform_indices = @transform_2, window_bounds = array<i64: 1, 128>}, {transform_indices = @transform_3, window_bounds = array<i64: 8, 128>}]} {
    %c0 = arith.constant 0 : index
    %c0_0 = arith.constant 0 : index
    %0 = vector.load %arg2[%c0, %c0_0] : memref<8x32xbf16, #tpu.memory_space<vmem>>, vector<8x32xbf16>
    %c0_1 = arith.constant 0 : index
    %c0_2 = arith.constant 0 : index
    %1 = vector.load %arg3[%c0_1, %c0_2] : memref<32x128xbf16, #tpu.memory_space<vmem>>, vector<32x128xbf16>
    %cst = arith.constant dense<0.000000e+00> : vector<8x128xf32>
    %2 = tpu.matmul %0, %1, %cst {dimension_numbers = #tpu.dot_dimension_numbers<[1], [0], [0], [1], [0, 0, 1, 1], [], []>} : vector<8x32xbf16>, vector<32x128xbf16>, vector<8x128xf32> -> vector<8x128xf32>
    %c0_3 = arith.constant 0 : index
    %c0_4 = arith.constant 0 : index
    %3 = vector.load %arg4[%c0_3, %c0_4] : memref<1x128xf32, #tpu.memory_space<vmem>>, vector<1x128xf32>
    %4 = vector.broadcast %3 : vector<1x128xf32> to vector<8x128xf32>
    %5 = arith.addf %2, %4 : vector<8x128xf32>
    %cst_5 = arith.constant 0.000000e+00 : f32
    %6 = vector.broadcast %cst_5 : f32 to vector<8x128xf32>
    %7 = arith.cmpf ogt, %5, %6 : vector<8x128xf32>
    %cst_6 = arith.constant 1.000000e-01 : f32
    %8 = vector.broadcast %cst_6 : f32 to vector<8x128xf32>
    %9 = arith.mulf %8, %5 : vector<8x128xf32>
    %10 = arith.select %7, %5, %9 : vector<8x128xi1>, vector<8x128xf32>
    %c0_7 = arith.constant 0 : index
    %c0_8 = arith.constant 0 : index
    %11 = vector.load %arg5[%c0_7, %c0_8] : memref<8x128xf32, #tpu.memory_space<vmem>>, vector<8x128xf32>
    tpu.vector_store %arg5[%c0_7, %c0_8], %10 {strides = array<i32>} : memref<8x128xf32, #tpu.memory_space<vmem>>, vector<8x128xf32>,
    return
  }
  func.func @transform_0(%arg0: i32, %arg1: i32) -> (i32, i32) {
    %c0_i32 = arith.constant 0 : i32
    %c0_i32_0 = arith.constant 0 : i32
    return %arg0, %c0_i32 : i32, i32
  }
  func.func @transform_1(%arg0: i32, %arg1: i32) -> (i32, i32) {
    %c0_i32 = arith.constant 0 : i32
    %c0_i32_0 = arith.constant 0 : i32
    return %c0_i32, %arg1 : i32, i32
  }
  func.func @transform_2(%arg0: i32, %arg1: i32) -> (i32, i32) {
    %c0_i32 = arith.constant 0 : i32
    %c0_i32_0 = arith.constant 0 : i32
    return %c0_i32, %arg1 : i32, i32
  }
  func.func @transform_3(%arg0: i32, %arg1: i32) -> (i32, i32) {
    %c0_i32 = arith.constant 0 : i32
    return %arg0, %arg1 : i32, i32
  }
}

module attributes {stable_mosaic.version = 11 : i64} {
  func.func @_conv_mm_kernel(%arg0: i32, %arg1: i32, %arg2: memref<32x48xbf16, #tpu.memory_space<vmem>>, %arg3: memref<48x128xbf16, #tpu.memory_space<vmem>>, %arg4: memref<1x128xf32, #tpu.memory_space<vmem>>, %arg5: memref<32x128xf32, #tpu.memory_space<vmem>>) attributes {dimension_semantics = [#tpu.dimension_semantics<parallel>, #tpu.dimension_semantics<parallel>], iteration_bounds = array<i64: 1, 1>, scalar_prefetch = 0 : i64, scratch_operands = 0 : i64, tpu.core_type = #tpu.core_type<tc>, window_params = [{transform_indices = @transform_0, window_bounds = array<i64: 32, 48>}, {transform_indices = @transform_1, window_bounds = array<i64: 48, 128>}, {transform_indices = @transform_2, window_bounds = array<i64: 1, 128>}, {transform_indices = @transform_3, window_bounds = array<i64: 32, 128>}]} {
    %c0 = arith.constant 0 : index
    %c0_0 = arith.constant 0 : index
    %0 = vector.load %arg2[%c0, %c0_0] : memref<32x48xbf16, #tpu.memory_space<vmem>>, vector<32x48xbf16>
    %c0_1 = arith.constant 0 : index
    %c0_2 = arith.constant 0 : index
    %1 = vector.load %arg3[%c0_1, %c0_2] : memref<48x128xbf16, #tpu.memory_space<vmem>>, vector<48x128xbf16>
    %cst = arith.constant dense<0.000000e+00> : vector<32x128xf32>
    %2 = tpu.matmul %0, %1, %cst {dimension_numbers = #tpu.dot_dimension_numbers<[1], [0], [0], [1], [0, 0, 1, 1], [], []>} : vector<32x48xbf16>, vector<48x128xbf16>, vector<32x128xf32> -> vector<32x128xf32>
    %c0_3 = arith.constant 0 : index
    %c0_4 = arith.constant 0 : index
    %3 = vector.load %arg4[%c0_3, %c0_4] : memref<1x128xf32, #tpu.memory_space<vmem>>, vector<1x128xf32>
    %4 = vector.broadcast %3 : vector<1x128xf32> to vector<32x128xf32>
    %5 = arith.addf %2, %4 : vector<32x128xf32>
    %cst_5 = arith.constant 0.000000e+00 : f32
    %6 = vector.broadcast %cst_5 : f32 to vector<32x128xf32>
    %7 = arith.cmpf ogt, %5, %6 : vector<32x128xf32>
    %cst_6 = arith.constant 1.000000e-01 : f32
    %8 = vector.broadcast %cst_6 : f32 to vector<32x128xf32>
    %9 = arith.mulf %8, %5 : vector<32x128xf32>
    %10 = arith.select %7, %5, %9 : vector<32x128xi1>, vector<32x128xf32>
    %c0_7 = arith.constant 0 : index
    %c0_8 = arith.constant 0 : index
    %11 = vector.load %arg5[%c0_7, %c0_8] : memref<32x128xf32, #tpu.memory_space<vmem>>, vector<32x128xf32>
    tpu.vector_store %arg5[%c0_7, %c0_8], %10 {strides = array<i32>} : memref<32x128xf32, #tpu.memory_space<vmem>>, vector<32x128xf32>,
    return
  }
  func.func @transform_0(%arg0: i32, %arg1: i32) -> (i32, i32) {
    %c0_i32 = arith.constant 0 : i32
    %c0_i32_0 = arith.constant 0 : i32
    return %arg0, %c0_i32 : i32, i32
  }
  func.func @transform_1(%arg0: i32, %arg1: i32) -> (i32, i32) {
    %c0_i32 = arith.constant 0 : i32
    %c0_i32_0 = arith.constant 0 : i32
    return %c0_i32, %arg1 : i32, i32
  }
  func.func @transform_2(%arg0: i32, %arg1: i32) -> (i32, i32) {
    %c0_i32 = arith.constant 0 : i32
    %c0_i32_0 = arith.constant 0 : i32
    return %c0_i32, %arg1 : i32, i32
  }
  func.func @transform_3(%arg0: i32, %arg1: i32) -> (i32, i32) {
    %c0_i32 = arith.constant 0 : i32
    return %arg0, %arg1 : i32, i32
  }
}

module attributes {stable_mosaic.version = 11 : i64} {
  func.func @_conv_mm_kernel(%arg0: i32, %arg1: i32, %arg2: memref<32x32xbf16, #tpu.memory_space<vmem>>, %arg3: memref<32x128xbf16, #tpu.memory_space<vmem>>, %arg4: memref<1x128xf32, #tpu.memory_space<vmem>>, %arg5: memref<32x128xf32, #tpu.memory_space<vmem>>) attributes {dimension_semantics = [#tpu.dimension_semantics<parallel>, #tpu.dimension_semantics<parallel>], iteration_bounds = array<i64: 1, 1>, scalar_prefetch = 0 : i64, scratch_operands = 0 : i64, tpu.core_type = #tpu.core_type<tc>, window_params = [{transform_indices = @transform_0, window_bounds = array<i64: 32, 32>}, {transform_indices = @transform_1, window_bounds = array<i64: 32, 128>}, {transform_indices = @transform_2, window_bounds = array<i64: 1, 128>}, {transform_indices = @transform_3, window_bounds = array<i64: 32, 128>}]} {
    %c0 = arith.constant 0 : index
    %c0_0 = arith.constant 0 : index
    %0 = vector.load %arg2[%c0, %c0_0] : memref<32x32xbf16, #tpu.memory_space<vmem>>, vector<32x32xbf16>
    %c0_1 = arith.constant 0 : index
    %c0_2 = arith.constant 0 : index
    %1 = vector.load %arg3[%c0_1, %c0_2] : memref<32x128xbf16, #tpu.memory_space<vmem>>, vector<32x128xbf16>
    %cst = arith.constant dense<0.000000e+00> : vector<32x128xf32>
    %2 = tpu.matmul %0, %1, %cst {dimension_numbers = #tpu.dot_dimension_numbers<[1], [0], [0], [1], [0, 0, 1, 1], [], []>} : vector<32x32xbf16>, vector<32x128xbf16>, vector<32x128xf32> -> vector<32x128xf32>
    %c0_3 = arith.constant 0 : index
    %c0_4 = arith.constant 0 : index
    %3 = vector.load %arg4[%c0_3, %c0_4] : memref<1x128xf32, #tpu.memory_space<vmem>>, vector<1x128xf32>
    %4 = vector.broadcast %3 : vector<1x128xf32> to vector<32x128xf32>
    %5 = arith.addf %2, %4 : vector<32x128xf32>
    %c0_5 = arith.constant 0 : index
    %c0_6 = arith.constant 0 : index
    %6 = vector.load %arg5[%c0_5, %c0_6] : memref<32x128xf32, #tpu.memory_space<vmem>>, vector<32x128xf32>
    tpu.vector_store %arg5[%c0_5, %c0_6], %5 {strides = array<i32>} : memref<32x128xf32, #tpu.memory_space<vmem>>, vector<32x128xf32>,
    return
  }
  func.func @transform_0(%arg0: i32, %arg1: i32) -> (i32, i32) {
    %c0_i32 = arith.constant 0 : i32
    %c0_i32_0 = arith.constant 0 : i32
    return %arg0, %c0_i32 : i32, i32
  }
  func.func @transform_1(%arg0: i32, %arg1: i32) -> (i32, i32) {
    %c0_i32 = arith.constant 0 : i32
    %c0_i32_0 = arith.constant 0 : i32
    return %c0_i32, %arg1 : i32, i32
  }
  func.func @transform_2(%arg0: i32, %arg1: i32) -> (i32, i32) {
    %c0_i32 = arith.constant 0 : i32
    %c0_i32_0 = arith.constant 0 : i32
    return %c0_i32, %arg1 : i32, i32
  }
  func.func @transform_3(%arg0: i32, %arg1: i32) -> (i32, i32) {
    %c0_i32 = arith.constant 0 : i32
    return %arg0, %arg1 : i32, i32
  }
}

module attributes {stable_mosaic.version = 11 : i64} {
  func.func @_conv_mm_kernel(%arg0: i32, %arg1: i32, %arg2: memref<8x64xbf16, #tpu.memory_space<vmem>>, %arg3: memref<64x128xbf16, #tpu.memory_space<vmem>>, %arg4: memref<1x128xf32, #tpu.memory_space<vmem>>, %arg5: memref<8x128xf32, #tpu.memory_space<vmem>>) attributes {dimension_semantics = [#tpu.dimension_semantics<parallel>, #tpu.dimension_semantics<parallel>], iteration_bounds = array<i64: 1, 1>, scalar_prefetch = 0 : i64, scratch_operands = 0 : i64, tpu.core_type = #tpu.core_type<tc>, window_params = [{transform_indices = @transform_0, window_bounds = array<i64: 8, 64>}, {transform_indices = @transform_1, window_bounds = array<i64: 64, 128>}, {transform_indices = @transform_2, window_bounds = array<i64: 1, 128>}, {transform_indices = @transform_3, window_bounds = array<i64: 8, 128>}]} {
    %c0 = arith.constant 0 : index
    %c0_0 = arith.constant 0 : index
    %0 = vector.load %arg2[%c0, %c0_0] : memref<8x64xbf16, #tpu.memory_space<vmem>>, vector<8x64xbf16>
    %c0_1 = arith.constant 0 : index
    %c0_2 = arith.constant 0 : index
    %1 = vector.load %arg3[%c0_1, %c0_2] : memref<64x128xbf16, #tpu.memory_space<vmem>>, vector<64x128xbf16>
    %cst = arith.constant dense<0.000000e+00> : vector<8x128xf32>
    %2 = tpu.matmul %0, %1, %cst {dimension_numbers = #tpu.dot_dimension_numbers<[1], [0], [0], [1], [0, 0, 1, 1], [], []>} : vector<8x64xbf16>, vector<64x128xbf16>, vector<8x128xf32> -> vector<8x128xf32>
    %c0_3 = arith.constant 0 : index
    %c0_4 = arith.constant 0 : index
    %3 = vector.load %arg4[%c0_3, %c0_4] : memref<1x128xf32, #tpu.memory_space<vmem>>, vector<1x128xf32>
    %4 = vector.broadcast %3 : vector<1x128xf32> to vector<8x128xf32>
    %5 = arith.addf %2, %4 : vector<8x128xf32>
    %c0_5 = arith.constant 0 : index
    %c0_6 = arith.constant 0 : index
    %6 = vector.load %arg5[%c0_5, %c0_6] : memref<8x128xf32, #tpu.memory_space<vmem>>, vector<8x128xf32>
    tpu.vector_store %arg5[%c0_5, %c0_6], %5 {strides = array<i32>} : memref<8x128xf32, #tpu.memory_space<vmem>>, vector<8x128xf32>,
    return
  }
  func.func @transform_0(%arg0: i32, %arg1: i32) -> (i32, i32) {
    %c0_i32 = arith.constant 0 : i32
    %c0_i32_0 = arith.constant 0 : i32
    return %arg0, %c0_i32 : i32, i32
  }
  func.func @transform_1(%arg0: i32, %arg1: i32) -> (i32, i32) {
    %c0_i32 = arith.constant 0 : i32
    %c0_i32_0 = arith.constant 0 : i32
    return %c0_i32, %arg1 : i32, i32
  }
  func.func @transform_2(%arg0: i32, %arg1: i32) -> (i32, i32) {
    %c0_i32 = arith.constant 0 : i32
    %c0_i32_0 = arith.constant 0 : i32
    return %c0_i32, %arg1 : i32, i32
  }
  func.func @transform_3(%arg0: i32, %arg1: i32) -> (i32, i32) {
    %c0_i32 = arith.constant 0 : i32
    return %arg0, %arg1 : i32, i32
  }
}

module attributes {stable_mosaic.version = 11 : i64} {
  func.func @_conv_mm_kernel(%arg0: i32, %arg1: i32, %arg2: memref<8x128xbf16, #tpu.memory_space<vmem>>, %arg3: memref<128x128xbf16, #tpu.memory_space<vmem>>, %arg4: memref<1x128xf32, #tpu.memory_space<vmem>>, %arg5: memref<8x128xf32, #tpu.memory_space<vmem>>) attributes {dimension_semantics = [#tpu.dimension_semantics<parallel>, #tpu.dimension_semantics<parallel>], iteration_bounds = array<i64: 1, 1>, scalar_prefetch = 0 : i64, scratch_operands = 0 : i64, tpu.core_type = #tpu.core_type<tc>, window_params = [{transform_indices = @transform_0, window_bounds = array<i64: 8, 128>}, {transform_indices = @transform_1, window_bounds = array<i64: 128, 128>}, {transform_indices = @transform_2, window_bounds = array<i64: 1, 128>}, {transform_indices = @transform_3, window_bounds = array<i64: 8, 128>}]} {
    %c0 = arith.constant 0 : index
    %c0_0 = arith.constant 0 : index
    %0 = vector.load %arg2[%c0, %c0_0] : memref<8x128xbf16, #tpu.memory_space<vmem>>, vector<8x128xbf16>
    %c0_1 = arith.constant 0 : index
    %c0_2 = arith.constant 0 : index
    %1 = vector.load %arg3[%c0_1, %c0_2] : memref<128x128xbf16, #tpu.memory_space<vmem>>, vector<128x128xbf16>
    %cst = arith.constant dense<0.000000e+00> : vector<8x128xf32>
    %2 = tpu.matmul %0, %1, %cst {dimension_numbers = #tpu.dot_dimension_numbers<[1], [0], [0], [1], [0, 0, 1, 1], [], []>} : vector<8x128xbf16>, vector<128x128xbf16>, vector<8x128xf32> -> vector<8x128xf32>
    %c0_3 = arith.constant 0 : index
    %c0_4 = arith.constant 0 : index
    %3 = vector.load %arg4[%c0_3, %c0_4] : memref<1x128xf32, #tpu.memory_space<vmem>>, vector<1x128xf32>
    %4 = vector.broadcast %3 : vector<1x128xf32> to vector<8x128xf32>
    %5 = arith.addf %2, %4 : vector<8x128xf32>
    %c0_5 = arith.constant 0 : index
    %c0_6 = arith.constant 0 : index
    %6 = vector.load %arg5[%c0_5, %c0_6] : memref<8x128xf32, #tpu.memory_space<vmem>>, vector<8x128xf32>
    tpu.vector_store %arg5[%c0_5, %c0_6], %5 {strides = array<i32>} : memref<8x128xf32, #tpu.memory_space<vmem>>, vector<8x128xf32>,
    return
  }
  func.func @transform_0(%arg0: i32, %arg1: i32) -> (i32, i32) {
    %c0_i32 = arith.constant 0 : i32
    %c0_i32_0 = arith.constant 0 : i32
    return %arg0, %c0_i32 : i32, i32
  }
  func.func @transform_1(%arg0: i32, %arg1: i32) -> (i32, i32) {
    %c0_i32 = arith.constant 0 : i32
    %c0_i32_0 = arith.constant 0 : i32
    return %c0_i32, %arg1 : i32, i32
  }
  func.func @transform_2(%arg0: i32, %arg1: i32) -> (i32, i32) {
    %c0_i32 = arith.constant 0 : i32
    %c0_i32_0 = arith.constant 0 : i32
    return %c0_i32, %arg1 : i32, i32
  }
  func.func @transform_3(%arg0: i32, %arg1: i32) -> (i32, i32) {
    %c0_i32 = arith.constant 0 : i32
    return %arg0, %arg1 : i32, i32
  }
}

</mosaic_0001>

<bundles_post_ra>
// kernel: _lambda_.64
= control target key start
LH: loop header
LB: loop body
LE: loop exit
PB: predicated region body
PF: predicated region fallthrough
CT: control target
= control target key end

     0   :  { %vm358_vm0 = vcmask 1044480   ;;  %vm359_vm1 = vcmask 1045504   ;;  %vm261_vm2 = vcmask 220160   ;;  %v1122_v1 = vmov 65535   ;;  %s1538_s1 = inlined_call_operand.vmem [shape: bf16[27,128], index: 1, kind: input, shape index: {}]   ;;  %s1539_s0 = inlined_call_operand.vmem [shape: bf16[512,27], index: 0, kind: input, shape index: {}]   ;;  %s1540_s2 = inlined_call_operand.vmem [shape: f32[1,128], index: 2, kind: input, shape index: {}]   ;;  %s1541_s3 = inlined_call_operand.vmem [shape: f32[512,128], index: 3, kind: output, shape index: {}]  }
   0x1   :  { %v1088_v0 = vld [vmem:[%s1538_s1] sm:$0xff]   ;;  %v360_v2 = vsel %vm358_vm0, 4294967295, %v1122_v1  ;;  %v1089_v3 = vld [vmem:[%s1538_s1 + $0x8] sm:$0x3f]   ;;  %v1094_v10 = vld [vmem:[%s1539_s0 + $0x10] sm:$0xff]  }
   0x2   :  { %1015 = vmatprep.subr.bf16.mxu0 %v1088_v0  ;;  %1083 = vmatprep.subr.bf16.mxu1 %v1088_v0  ;;  %v361_v4 = vsel %vm359_vm1, %v360_v2, 0  ;;  %v1090_v5 = vld [vmem:[%s1539_s0] sm:$0xff]   ;;  %v1092_v8 = vld [vmem:[%s1539_s0 + $0x8] sm:$0xff]   ;;  %v1095_v11 = vld [vmem:[%s1539_s0 + $0x90] sm:$0xff]  }
   0x3   :  { %1016 = vmatpush3.bf16.msra.mxu0 %v1088_v0  ;;  %1085 = vmatpush3.bf16.msra.mxu1 %v1088_v0  ;;  %v363_v6 = vand.u32 %v1089_v3, %v361_v4  ;;  %v1091_v7 = vld [vmem:[%s1539_s0 + $0x80] sm:$0xff]   ;;  %v1093_v9 = vld [vmem:[%s1539_s0 + $0x88] sm:$0xff]   ;;  %v1096_v12 = vld [vmem:[%s1539_s0 + $0x18] sm:$0xff]  }
   0x4   :  { %1019 = vmatprep.mubr.msk.bf16.mxu0 %vm261_vm2, %v1090_v5  ;;  %1051 = vmatprep.mubr.msk.bf16.mxu1 %vm261_vm2, %v1091_v7  ;;  %v1097_v13 = vld [vmem:[%s1539_s0 + $0x98] sm:$0xff]   ;;  %v1098_v14 = vld [vmem:[%s1539_s0 + $0x20] sm:$0xff]   ;;  %v1100_v16 = vld [vmem:[%s1539_s0 + $0x28] sm:$0xff]  }
   0x5   :  { %1017 = vmatprep.subr.bf16.mxu0 %v363_v6  ;;  %1084 = vmatprep.subr.bf16.mxu1 %v363_v6  ;;  %v1099_v15 = vld [vmem:[%s1539_s0 + $0xa0] sm:$0xff]   ;;  %v1101_v17 = vld [vmem:[%s1539_s0 + $0xa8] sm:$0xff]   ;;  %v1102_v18 = vld [vmem:[%s1539_s0 + $0x30] sm:$0xff]  }
   0x6   :  { %v1103_v19 = vld [vmem:[%s1539_s0 + $0xb0] sm:$0xff]   ;;  %v1104_v20 = vld [vmem:[%s1539_s0 + $0x38] sm:$0xff]   ;;  %v1106_v22 = vld [vmem:[%s1539_s0 + $0x40] sm:$0xff]  }
   0x7   :  { %1018 = vmatpush3.bf16.msra.mxu0 %v363_v6  ;;  %1086 = vmatpush3.bf16.msra.mxu1 %v363_v6  ;;  %v1105_v21 = vld [vmem:[%s1539_s0 + $0xb8] sm:$0xff]   ;;  %v1107_v23 = vld [vmem:[%s1539_s0 + $0xc0] sm:$0xff]   ;;  %v1108_v24 = vld [vmem:[%s1539_s0 + $0x48] sm:$0xff]  }
   0x8   :  { %v1109_v25 = vld [vmem:[%s1539_s0 + $0xc8] sm:$0xff]   ;;  %v1110_v26 = vld [vmem:[%s1539_s0 + $0x50] sm:$0xff]   ;;  %v1112_v28 = vld [vmem:[%s1539_s0 + $0x58] sm:$0xff]  }
   0x9   :  { %v1111_v27 = vld [vmem:[%s1539_s0 + $0xd0] sm:$0xff]   ;;  %v1113_v29 = vld [vmem:[%s1539_s0 + $0xd8] sm:$0xff]   ;;  %v1114_v30 = vld [vmem:[%s1539_s0 + $0x60] sm:$0xff]  }
   0xa   :  { %1020 = vmatmul.mubr.msk.bf16.vlgmr.msra.gmra.mrb[0].mxu0 %vm261_vm2, %v1092_v8  ;;  %1052 = vmatmul.mubr.msk.bf16.vlgmr.msra.gmra.mrb[0].mxu1 %vm261_vm2, %v1093_v9  ;;  %v1115_v31 = vld [vmem:[%s1539_s0 + $0xe0] sm:$0xff]   ;;  %v1116_v32 = vld [vmem:[%s1539_s0 + $0x68] sm:$0xff]   ;;  %v1118_v34 = vld [vmem:[%s1539_s0 + $0x70] sm:$0xff]  }
   0xb   :  { %1023 = vmatprep.mubr.msk.bf16.mxu0 %vm261_vm2, %v1094_v10  ;;  %1055 = vmatprep.mubr.msk.bf16.mxu1 %vm261_vm2, %v1095_v11  ;;  %v1117_v33 = vld [vmem:[%s1539_s0 + $0xe8] sm:$0xff]   ;;  %v1119_v35 = vld [vmem:[%s1539_s0 + $0xf0] sm:$0xff]   ;;  %v1120_v36 = vld [vmem:[%s1539_s0 + $0x78] sm:$0xff]  }
   0xc   :  { %v1121_v37 = vld [vmem:[%s1539_s0 + $0xf8] sm:$0xff]   ;;  %v1280_v38 = vld [vmem:[%s1540_s2] ss:$0 sm:$0xff] }
  0x12   :  { %1024 = vmatmul.mubr.msk.bf16.gmra.mrb[4].mxu0 %vm261_vm2, %v1096_v12  ;;  %1056 = vmatmul.mubr.msk.bf16.gmra.mrb[4].mxu1 %vm261_vm2, %v1097_v13 }
  0x13   :  { %1027 = vmatprep.mubr.msk.bf16.mxu0 %vm261_vm2, %v1098_v14  ;;  %1059 = vmatprep.mubr.msk.bf16.mxu1 %vm261_vm2, %v1099_v15 }
  0x1a   :  { %1028 = vmatmul.mubr.msk.bf16.gmra.mrb[8].mxu0 %vm261_vm2, %v1100_v16  ;;  %1060 = vmatmul.mubr.msk.bf16.gmra.mrb[8].mxu1 %vm261_vm2, %v1101_v17 }
  0x1b   :  { %1031 = vmatprep.mubr.msk.bf16.mxu0 %vm261_vm2, %v1102_v18  ;;  %1063 = vmatprep.mubr.msk.bf16.mxu1 %vm261_vm2, %v1103_v19 }
  0x22   :  { %1032 = vmatmul.mubr.msk.bf16.gmra.mrb[12].mxu0 %vm261_vm2, %v1104_v20  ;;  %1064 = vmatmul.mubr.msk.bf16.gmra.mrb[12].mxu1 %vm261_vm2, %v1105_v21 }
  0x23   :  { %1035 = vmatprep.mubr.msk.bf16.mxu0 %vm261_vm2, %v1106_v22  ;;  %1067 = vmatprep.mubr.msk.bf16.mxu1 %vm261_vm2, %v1107_v23 }
  0x2a   :  { %1036 = vmatmul.mubr.msk.bf16.gmra.mrb[16].mxu0 %vm261_vm2, %v1108_v24  ;;  %1068 = vmatmul.mubr.msk.bf16.gmra.mrb[16].mxu1 %vm261_vm2, %v1109_v25 }
  0x2b   :  { %1039 = vmatprep.mubr.msk.bf16.mxu0 %vm261_vm2, %v1110_v26  ;;  %1071 = vmatprep.mubr.msk.bf16.mxu1 %vm261_vm2, %v1111_v27 }
  0x32   :  { %1040 = vmatmul.mubr.msk.bf16.gmra.mrb[20].mxu0 %vm261_vm2, %v1112_v28  ;;  %1072 = vmatmul.mubr.msk.bf16.gmra.mrb[20].mxu1 %vm261_vm2, %v1113_v29 }
  0x33   :  { %1043 = vmatprep.mubr.msk.bf16.mxu0 %vm261_vm2, %v1114_v30  ;;  %1075 = vmatprep.mubr.msk.bf16.mxu1 %vm261_vm2, %v1115_v31 }
  0x3a   :  { %1044 = vmatmul.mubr.msk.bf16.gmra.mrb[24].mxu0 %vm261_vm2, %v1116_v32  ;;  %1076 = vmatmul.mubr.msk.bf16.gmra.mrb[24].mxu1 %vm261_vm2, %v1117_v33 }
  0x3b   :  { %1047 = vmatprep.mubr.msk.bf16.mxu0 %vm261_vm2, %v1118_v34  ;;  %1079 = vmatprep.mubr.msk.bf16.mxu1 %vm261_vm2, %v1119_v35 }
  0x42   :  { %1048 = vmatmul.mubr.msk.bf16.gmra.mrb[28].mxu0 %vm261_vm2, %v1120_v36  ;;  %1080 = vmatmul.mubr.msk.bf16.gmra.mrb[28].mxu1 %vm261_vm2, %v1121_v37 }
  0xdd   :  { %v1021_v39 = vpop.f32.mrb[0].mxu0  ;;  %v1053_v40 = vpop.f32.mrb[0].mxu1 }
  0xde   :  { %v408_v41 = vadd.f32 %v1021_v39, %v1280_v38  ;;  %v536_v42 = vadd.f32 %v1053_v40, %v1280_v38  ;;  %v399_v43 = vpop.f32.mrb[1].mxu0  ;;  %v527_v44 = vpop.f32.mrb[1].mxu1 }
  0xdf   :  { %v400_v45 = vadd.f32 %v1280_v38, %v399_v43  ;;  %v528_v46 = vadd.f32 %v1280_v38, %v527_v44  ;;  %v1022_v47 = vpop.f32.mrb[2].mxu0  ;;  %v1054_v48 = vpop.f32.mrb[2].mxu1 }
  0xe0   :  { %vm656_vm3 = vcmp.gt.f32.partialorder %v408_v41, 0.0  ;;  %v720_v49 = vmul.f32 0.1, %v408_v41  ;;  %vm688_vm4 = vcmp.gt.f32.partialorder %v536_v42, 0.0  ;;  %v752_v50 = vmul.f32 0.1, %v536_v42 }
  0xe1   :  { %vm654_vm5 = vcmp.gt.f32.partialorder %v400_v45, 0.0  ;;  %v718_v51 = vmul.f32 0.1, %v400_v45  ;;  %vm686_vm6 = vcmp.gt.f32.partialorder %v528_v46, 0.0  ;;  %v750_v52 = vmul.f32 0.1, %v528_v46 }
  0xe2   :  { %v784_v53 = vsel %vm656_vm3, %v408_v41, %v720_v49  ;;  %v816_v54 = vsel %vm688_vm4, %v536_v42, %v752_v50  ;;  %v411_v55 = vadd.f32 %v1022_v47, %v1280_v38  ;;  %v539_v56 = vadd.f32 %v1054_v48, %v1280_v38  ;;  %v402_v57 = vpop.f32.mrb[3].mxu0  ;;  %v530_v58 = vpop.f32.mrb[3].mxu1 }
  0xe3   :  { %848 = vst [vmem:[%s1541_s3 + $0x10] sm:$0xff] %v784_v53  ;;  %880 = vst [vmem:[%s1541_s3 + $0x110] sm:$0xff] %v816_v54  ;;  %v782_v59 = vsel %vm654_vm5, %v400_v45, %v718_v51  ;;  %v814_v60 = vsel %vm686_vm6, %v528_v46, %v750_v52  ;;  %v403_v61 = vadd.f32 %v1280_v38, %v402_v57 }
  0xe4   :  { %v531_v62 = vadd.f32 %v1280_v38, %v530_v58  ;;  %846 = vst [vmem:[%s1541_s3] sm:$0xff] %v782_v59  ;;  %878 = vst [vmem:[%s1541_s3 + $0x100] sm:$0xff] %v814_v60  ;;  %vm657_vm7 = vcmp.gt.f32.partialorder %v411_v55, 0.0  ;;  %v721_v63 = vmul.f32 0.1, %v411_v55  ;;  %vm689_vm8 = vcmp.gt.f32.partialorder %v539_v56, 0.0 }
  0xe5   :  { %v753_v0 = vmul.f32 0.1, %v539_v56  ;;  %vm655_vm9 = vcmp.gt.f32.partialorder %v403_v61, 0.0  ;;  %v719_v1 = vmul.f32 0.1, %v403_v61  ;;  %v1025_v5 = vpop.f32.mrb[4].mxu0 }
  0xe6   :  { %vm687_vm10 = vcmp.gt.f32.partialorder %v531_v62, 0.0  ;;  %v751_v2 = vmul.f32 0.1, %v531_v62  ;;  %v785_v3 = vsel %vm657_vm7, %v411_v55, %v721_v63  ;;  %v1057_v6 = vpop.f32.mrb[4].mxu1  ;;  %v424_v9 = vadd.f32 %v1025_v5, %v1280_v38  ;;  %v415_v11 = vpop.f32.mrb[5].mxu0 }
  0xe7   :  { %v817_v4 = vsel %vm689_vm8, %v539_v56, %v753_v0  ;;  %849 = vst [vmem:[%s1541_s3 + $0x18] sm:$0xff] %v785_v3  ;;  %v783_v7 = vsel %vm655_vm9, %v403_v61, %v719_v1  ;;  %v552_v10 = vadd.f32 %v1057_v6, %v1280_v38  ;;  %v543_v12 = vpop.f32.mrb[5].mxu1  ;;  %v416_v13 = vadd.f32 %v1280_v38, %v415_v11  ;;  %v1026_v15 = vpop.f32.mrb[6].mxu0 }
  0xe8   :  { %881 = vst [vmem:[%s1541_s3 + $0x118] sm:$0xff] %v817_v4  ;;  %v815_v8 = vsel %vm687_vm10, %v531_v62, %v751_v2  ;;  %847 = vst [vmem:[%s1541_s3 + $0x8] sm:$0xff] %v783_v7  ;;  %v544_v14 = vadd.f32 %v1280_v38, %v543_v12  ;;  %v1058_v16 = vpop.f32.mrb[6].mxu1  ;;  %vm660_vm11 = vcmp.gt.f32.partialorder %v424_v9, 0.0  ;;  %v724_v17 = vmul.f32 0.1, %v424_v9 }
  0xe9   :  { %879 = vst [vmem:[%s1541_s3 + $0x108] sm:$0xff] %v815_v8  ;;  %vm692_vm12 = vcmp.gt.f32.partialorder %v552_v10, 0.0  ;;  %v756_v18 = vmul.f32 0.1, %v552_v10  ;;  %vm658_vm13 = vcmp.gt.f32.partialorder %v416_v13, 0.0  ;;  %v427_v23 = vadd.f32 %v1026_v15, %v1280_v38  ;;  %v418_v25 = vpop.f32.mrb[7].mxu0 }
  0xea   :  { %v722_v19 = vmul.f32 0.1, %v416_v13  ;;  %vm690_vm14 = vcmp.gt.f32.partialorder %v544_v14, 0.0  ;;  %v754_v20 = vmul.f32 0.1, %v544_v14  ;;  %v788_v21 = vsel %vm660_vm11, %v424_v9, %v724_v17  ;;  %v546_v26 = vpop.f32.mrb[7].mxu1 }
  0xeb   :  { %v820_v22 = vsel %vm692_vm12, %v552_v10, %v756_v18  ;;  %v555_v24 = vadd.f32 %v1058_v16, %v1280_v38  ;;  %852 = vst [vmem:[%s1541_s3 + $0x30] sm:$0xff] %v788_v21  ;;  %v419_v29 = vadd.f32 %v1280_v38, %v418_v25  ;;  %v547_v30 = vadd.f32 %v1280_v38, %v546_v26 }
  0xec   :  { %884 = vst [vmem:[%s1541_s3 + $0x130] sm:$0xff] %v820_v22  ;;  %v786_v27 = vsel %vm658_vm13, %v416_v13, %v722_v19  ;;  %v818_v28 = vsel %vm690_vm14, %v544_v14, %v754_v20  ;;  %vm661_vm15 = vcmp.gt.f32.partialorder %v427_v23, 0.0  ;;  %v725_v31 = vmul.f32 0.1, %v427_v23 }
  0xed   :  { %850 = vst [vmem:[%s1541_s3 + $0x20] sm:$0xff] %v786_v27  ;;  %882 = vst [vmem:[%s1541_s3 + $0x120] sm:$0xff] %v818_v28  ;;  %vm693_vm0 = vcmp.gt.f32.partialorder %v555_v24, 0.0  ;;  %v757_v32 = vmul.f32 0.1, %v555_v24  ;;  %vm659_vm1 = vcmp.gt.f32.partialorder %v419_v29, 0.0 }
  0xee   :  { %v723_v33 = vmul.f32 0.1, %v419_v29  ;;  %vm691_vm2 = vcmp.gt.f32.partialorder %v547_v30, 0.0  ;;  %v755_v34 = vmul.f32 0.1, %v547_v30  ;;  %v789_v35 = vsel %vm661_vm15, %v427_v23, %v725_v31  ;;  %v1029_v37 = vpop.f32.mrb[8].mxu0 }
  0xef   :  { %v821_v36 = vsel %vm693_vm0, %v555_v24, %v757_v32  ;;  %v1061_v39 = vpop.f32.mrb[8].mxu1  ;;  %853 = vst [vmem:[%s1541_s3 + $0x38] sm:$0xff] %v789_v35  ;;  %v440_v42 = vadd.f32 %v1029_v37, %v1280_v38  ;;  %v431_v44 = vpop.f32.mrb[9].mxu0 }
  0xf0   :  { %885 = vst [vmem:[%s1541_s3 + $0x138] sm:$0xff] %v821_v36  ;;  %v787_v40 = vsel %vm659_vm1, %v419_v29, %v723_v33  ;;  %v819_v41 = vsel %vm691_vm2, %v547_v30, %v755_v34  ;;  %v568_v43 = vadd.f32 %v1061_v39, %v1280_v38  ;;  %v559_v45 = vpop.f32.mrb[9].mxu1  ;;  %v432_v46 = vadd.f32 %v1280_v38, %v431_v44  ;;  %v1030_v48 = vpop.f32.mrb[10].mxu0 }
  0xf1   :  { %851 = vst [vmem:[%s1541_s3 + $0x28] sm:$0xff] %v787_v40  ;;  %883 = vst [vmem:[%s1541_s3 + $0x128] sm:$0xff] %v819_v41  ;;  %v560_v47 = vadd.f32 %v1280_v38, %v559_v45  ;;  %v1062_v49 = vpop.f32.mrb[10].mxu1  ;;  %vm664_vm3 = vcmp.gt.f32.partialorder %v440_v42, 0.0  ;;  %v728_v50 = vmul.f32 0.1, %v440_v42  ;;  %v443_v56 = vadd.f32 %v1030_v48, %v1280_v38 }
  0xf2   :  { %vm696_vm4 = vcmp.gt.f32.partialorder %v568_v43, 0.0  ;;  %v760_v51 = vmul.f32 0.1, %v568_v43  ;;  %vm662_vm5 = vcmp.gt.f32.partialorder %v432_v46, 0.0  ;;  %v726_v52 = vmul.f32 0.1, %v432_v46 }
  0xf3   :  { %vm694_vm6 = vcmp.gt.f32.partialorder %v560_v47, 0.0  ;;  %v758_v53 = vmul.f32 0.1, %v560_v47  ;;  %v792_v54 = vsel %vm664_vm3, %v440_v42, %v728_v50  ;;  %v571_v57 = vadd.f32 %v1062_v49, %v1280_v38  ;;  %v434_v58 = vpop.f32.mrb[11].mxu0  ;;  %v562_v59 = vpop.f32.mrb[11].mxu1 }
  0xf4   :  { %v824_v55 = vsel %vm696_vm4, %v568_v43, %v760_v51  ;;  %856 = vst [vmem:[%s1541_s3 + $0x50] sm:$0xff] %v792_v54  ;;  %v790_v60 = vsel %vm662_vm5, %v432_v46, %v726_v52  ;;  %v435_v62 = vadd.f32 %v1280_v38, %v434_v58  ;;  %v563_v63 = vadd.f32 %v1280_v38, %v562_v59 }
  0xf5   :  { %888 = vst [vmem:[%s1541_s3 + $0x150] sm:$0xff] %v824_v55  ;;  %v822_v61 = vsel %vm694_vm6, %v560_v47, %v758_v53  ;;  %v1033_v0 = vpop.f32.mrb[12].mxu0  ;;  %v1065_v1 = vpop.f32.mrb[12].mxu1  ;;  %854 = vst [vmem:[%s1541_s3 + $0x40] sm:$0xff] %v790_v60  ;;  %vm665_vm7 = vcmp.gt.f32.partialorder %v443_v56, 0.0  ;;  %vm697_vm8 = vcmp.gt.f32.partialorder %v571_v57, 0.0 }
  0xf6   :  { %886 = vst [vmem:[%s1541_s3 + $0x140] sm:$0xff] %v822_v61  ;;  %v729_v2 = vmul.f32 0.1, %v443_v56  ;;  %v761_v3 = vmul.f32 0.1, %v571_v57  ;;  %vm663_vm9 = vcmp.gt.f32.partialorder %v435_v62, 0.0  ;;  %v456_v8 = vadd.f32 %v1033_v0, %v1280_v38 }
  0xf7   :  { %v727_v4 = vmul.f32 0.1, %v435_v62  ;;  %vm695_vm10 = vcmp.gt.f32.partialorder %v563_v63, 0.0  ;;  %v759_v5 = vmul.f32 0.1, %v563_v63  ;;  %v584_v9 = vadd.f32 %v1065_v1, %v1280_v38  ;;  %v447_v10 = vpop.f32.mrb[13].mxu0 }
  0xf8   :  { %v793_v6 = vsel %vm665_vm7, %v443_v56, %v729_v2  ;;  %v825_v7 = vsel %vm697_vm8, %v571_v57, %v761_v3  ;;  %v575_v11 = vpop.f32.mrb[13].mxu1  ;;  %v448_v14 = vadd.f32 %v1280_v38, %v447_v10  ;;  %v1034_v16 = vpop.f32.mrb[14].mxu0  ;;  %vm668_vm11 = vcmp.gt.f32.partialorder %v456_v8, 0.0 }
  0xf9   :  { %857 = vst [vmem:[%s1541_s3 + $0x58] sm:$0xff] %v793_v6  ;;  %889 = vst [vmem:[%s1541_s3 + $0x158] sm:$0xff] %v825_v7  ;;  %v791_v12 = vsel %vm663_vm9, %v435_v62, %v727_v4  ;;  %v823_v13 = vsel %vm695_vm10, %v563_v63, %v759_v5  ;;  %v576_v15 = vadd.f32 %v1280_v38, %v575_v11  ;;  %v1066_v17 = vpop.f32.mrb[14].mxu1  ;;  %v732_v18 = vmul.f32 0.1, %v456_v8  ;;  %v450_v26 = vpop.f32.mrb[15].mxu0 }
  0xfa   :  { %855 = vst [vmem:[%s1541_s3 + $0x48] sm:$0xff] %v791_v12  ;;  %887 = vst [vmem:[%s1541_s3 + $0x148] sm:$0xff] %v823_v13  ;;  %vm700_vm12 = vcmp.gt.f32.partialorder %v584_v9, 0.0  ;;  %v764_v19 = vmul.f32 0.1, %v584_v9  ;;  %vm666_vm13 = vcmp.gt.f32.partialorder %v448_v14, 0.0  ;;  %v459_v24 = vadd.f32 %v1034_v16, %v1280_v38 }
  0xfb   :  { %v730_v20 = vmul.f32 0.1, %v448_v14  ;;  %vm698_vm14 = vcmp.gt.f32.partialorder %v576_v15, 0.0  ;;  %v762_v21 = vmul.f32 0.1, %v576_v15  ;;  %v796_v22 = vsel %vm668_vm11, %v456_v8, %v732_v18  ;;  %v578_v27 = vpop.f32.mrb[15].mxu1 }
  0xfc   :  { %v828_v23 = vsel %vm700_vm12, %v584_v9, %v764_v19  ;;  %v587_v25 = vadd.f32 %v1066_v17, %v1280_v38  ;;  %860 = vst [vmem:[%s1541_s3 + $0x70] sm:$0xff] %v796_v22  ;;  %v451_v30 = vadd.f32 %v1280_v38, %v450_v26  ;;  %v579_v31 = vadd.f32 %v1280_v38, %v578_v27 }
  0xfd   :  { %892 = vst [vmem:[%s1541_s3 + $0x170] sm:$0xff] %v828_v23  ;;  %v794_v28 = vsel %vm666_vm13, %v448_v14, %v730_v20  ;;  %v826_v29 = vsel %vm698_vm14, %v576_v15, %v762_v21  ;;  %v1037_v32 = vpop.f32.mrb[16].mxu0  ;;  %v1069_v33 = vpop.f32.mrb[16].mxu1  ;;  %vm669_vm15 = vcmp.gt.f32.partialorder %v459_v24, 0.0  ;;  %v733_v34 = vmul.f32 0.1, %v459_v24 }
  0xfe   :  { %858 = vst [vmem:[%s1541_s3 + $0x60] sm:$0xff] %v794_v28  ;;  %890 = vst [vmem:[%s1541_s3 + $0x160] sm:$0xff] %v826_v29  ;;  %vm701_vm0 = vcmp.gt.f32.partialorder %v587_v25, 0.0  ;;  %v765_v35 = vmul.f32 0.1, %v587_v25  ;;  %vm667_vm1 = vcmp.gt.f32.partialorder %v451_v30, 0.0  ;;  %v472_v41 = vadd.f32 %v1037_v32, %v1280_v38 }
  0xff   :  { %v731_v36 = vmul.f32 0.1, %v451_v30  ;;  %vm699_vm2 = vcmp.gt.f32.partialorder %v579_v31, 0.0  ;;  %v763_v37 = vmul.f32 0.1, %v579_v31  ;;  %v797_v39 = vsel %vm669_vm15, %v459_v24, %v733_v34  ;;  %v463_v43 = vpop.f32.mrb[17].mxu0 }
 0x100   :  { %v829_v40 = vsel %vm701_vm0, %v587_v25, %v765_v35  ;;  %v600_v42 = vadd.f32 %v1069_v33, %v1280_v38  ;;  %v591_v44 = vpop.f32.mrb[17].mxu1  ;;  %861 = vst [vmem:[%s1541_s3 + $0x78] sm:$0xff] %v797_v39  ;;  %v464_v47 = vadd.f32 %v1280_v38, %v463_v43  ;;  %v1038_v49 = vpop.f32.mrb[18].mxu0  ;;  %vm672_vm3 = vcmp.gt.f32.partialorder %v472_v41, 0.0 }
 0x101   :  { %893 = vst [vmem:[%s1541_s3 + $0x178] sm:$0xff] %v829_v40  ;;  %v795_v45 = vsel %vm667_vm1, %v451_v30, %v731_v36  ;;  %v827_v46 = vsel %vm699_vm2, %v579_v31, %v763_v37  ;;  %v592_v48 = vadd.f32 %v1280_v38, %v591_v44  ;;  %v1070_v50 = vpop.f32.mrb[18].mxu1  ;;  %v736_v51 = vmul.f32 0.1, %v472_v41  ;;  %v466_v59 = vpop.f32.mrb[19].mxu0 }
 0x102   :  { %859 = vst [vmem:[%s1541_s3 + $0x68] sm:$0xff] %v795_v45  ;;  %891 = vst [vmem:[%s1541_s3 + $0x168] sm:$0xff] %v827_v46  ;;  %vm704_vm4 = vcmp.gt.f32.partialorder %v600_v42, 0.0  ;;  %v768_v52 = vmul.f32 0.1, %v600_v42  ;;  %vm670_vm5 = vcmp.gt.f32.partialorder %v464_v47, 0.0  ;;  %v475_v57 = vadd.f32 %v1038_v49, %v1280_v38 }
 0x103   :  { %v734_v53 = vmul.f32 0.1, %v464_v47  ;;  %vm702_vm6 = vcmp.gt.f32.partialorder %v592_v48, 0.0  ;;  %v766_v54 = vmul.f32 0.1, %v592_v48  ;;  %v800_v55 = vsel %vm672_vm3, %v472_v41, %v736_v51  ;;  %v594_v60 = vpop.f32.mrb[19].mxu1 }
 0x104   :  { %v832_v56 = vsel %vm704_vm4, %v600_v42, %v768_v52  ;;  %v603_v58 = vadd.f32 %v1070_v50, %v1280_v38  ;;  %864 = vst [vmem:[%s1541_s3 + $0x90] sm:$0xff] %v800_v55  ;;  %v467_v63 = vadd.f32 %v1280_v38, %v466_v59  ;;  %v595_v0 = vadd.f32 %v1280_v38, %v594_v60 }
 0x105   :  { %896 = vst [vmem:[%s1541_s3 + $0x190] sm:$0xff] %v832_v56  ;;  %v798_v61 = vsel %vm670_vm5, %v464_v47, %v734_v53  ;;  %v830_v62 = vsel %vm702_vm6, %v592_v48, %v766_v54  ;;  %v1041_v1 = vpop.f32.mrb[20].mxu0  ;;  %v1073_v2 = vpop.f32.mrb[20].mxu1  ;;  %vm673_vm7 = vcmp.gt.f32.partialorder %v475_v57, 0.0  ;;  %v737_v3 = vmul.f32 0.1, %v475_v57 }
 0x106   :  { %862 = vst [vmem:[%s1541_s3 + $0x80] sm:$0xff] %v798_v61  ;;  %894 = vst [vmem:[%s1541_s3 + $0x180] sm:$0xff] %v830_v62  ;;  %vm705_vm8 = vcmp.gt.f32.partialorder %v603_v58, 0.0  ;;  %v769_v4 = vmul.f32 0.1, %v603_v58  ;;  %vm671_vm9 = vcmp.gt.f32.partialorder %v467_v63, 0.0  ;;  %v488_v9 = vadd.f32 %v1041_v1, %v1280_v38 }
 0x107   :  { %v735_v5 = vmul.f32 0.1, %v467_v63  ;;  %vm703_vm10 = vcmp.gt.f32.partialorder %v595_v0, 0.0  ;;  %v767_v6 = vmul.f32 0.1, %v595_v0  ;;  %v801_v7 = vsel %vm673_vm7, %v475_v57, %v737_v3  ;;  %v479_v11 = vpop.f32.mrb[21].mxu0 }
 0x108   :  { %v833_v8 = vsel %vm705_vm8, %v603_v58, %v769_v4  ;;  %v616_v10 = vadd.f32 %v1073_v2, %v1280_v38  ;;  %v607_v12 = vpop.f32.mrb[21].mxu1  ;;  %865 = vst [vmem:[%s1541_s3 + $0x98] sm:$0xff] %v801_v7  ;;  %v480_v15 = vadd.f32 %v1280_v38, %v479_v11  ;;  %v1042_v17 = vpop.f32.mrb[22].mxu0  ;;  %vm676_vm11 = vcmp.gt.f32.partialorder %v488_v9, 0.0 }
 0x109   :  { %897 = vst [vmem:[%s1541_s3 + $0x198] sm:$0xff] %v833_v8  ;;  %v799_v13 = vsel %vm671_vm9, %v467_v63, %v735_v5  ;;  %v831_v14 = vsel %vm703_vm10, %v595_v0, %v767_v6  ;;  %v608_v16 = vadd.f32 %v1280_v38, %v607_v12  ;;  %v1074_v18 = vpop.f32.mrb[22].mxu1  ;;  %v740_v19 = vmul.f32 0.1, %v488_v9  ;;  %v482_v27 = vpop.f32.mrb[23].mxu0 }
 0x10a   :  { %863 = vst [vmem:[%s1541_s3 + $0x88] sm:$0xff] %v799_v13  ;;  %895 = vst [vmem:[%s1541_s3 + $0x188] sm:$0xff] %v831_v14  ;;  %vm708_vm12 = vcmp.gt.f32.partialorder %v616_v10, 0.0  ;;  %v772_v20 = vmul.f32 0.1, %v616_v10  ;;  %vm674_vm13 = vcmp.gt.f32.partialorder %v480_v15, 0.0  ;;  %v491_v25 = vadd.f32 %v1042_v17, %v1280_v38 }
 0x10b   :  { %v738_v21 = vmul.f32 0.1, %v480_v15  ;;  %vm706_vm14 = vcmp.gt.f32.partialorder %v608_v16, 0.0  ;;  %v770_v22 = vmul.f32 0.1, %v608_v16  ;;  %v804_v23 = vsel %vm676_vm11, %v488_v9, %v740_v19  ;;  %v610_v28 = vpop.f32.mrb[23].mxu1 }
 0x10c   :  { %v836_v24 = vsel %vm708_vm12, %v616_v10, %v772_v20  ;;  %v619_v26 = vadd.f32 %v1074_v18, %v1280_v38  ;;  %868 = vst [vmem:[%s1541_s3 + $0xb0] sm:$0xff] %v804_v23  ;;  %v483_v31 = vadd.f32 %v1280_v38, %v482_v27  ;;  %v611_v32 = vadd.f32 %v1280_v38, %v610_v28 }
 0x10d   :  { %900 = vst [vmem:[%s1541_s3 + $0x1b0] sm:$0xff] %v836_v24  ;;  %v802_v29 = vsel %vm674_vm13, %v480_v15, %v738_v21  ;;  %v834_v30 = vsel %vm706_vm14, %v608_v16, %v770_v22  ;;  %v1045_v33 = vpop.f32.mrb[24].mxu0  ;;  %v1077_v34 = vpop.f32.mrb[24].mxu1  ;;  %vm677_vm15 = vcmp.gt.f32.partialorder %v491_v25, 0.0  ;;  %v741_v35 = vmul.f32 0.1, %v491_v25 }
 0x10e   :  { %866 = vst [vmem:[%s1541_s3 + $0xa0] sm:$0xff] %v802_v29  ;;  %898 = vst [vmem:[%s1541_s3 + $0x1a0] sm:$0xff] %v834_v30  ;;  %vm709_vm0 = vcmp.gt.f32.partialorder %v619_v26, 0.0  ;;  %v773_v36 = vmul.f32 0.1, %v619_v26  ;;  %vm675_vm1 = vcmp.gt.f32.partialorder %v483_v31, 0.0  ;;  %v504_v42 = vadd.f32 %v1045_v33, %v1280_v38 }
 0x10f   :  { %v739_v37 = vmul.f32 0.1, %v483_v31  ;;  %vm707_vm2 = vcmp.gt.f32.partialorder %v611_v32, 0.0  ;;  %v771_v39 = vmul.f32 0.1, %v611_v32  ;;  %v805_v40 = vsel %vm677_vm15, %v491_v25, %v741_v35  ;;  %v495_v44 = vpop.f32.mrb[25].mxu0 }
 0x110   :  { %v837_v41 = vsel %vm709_vm0, %v619_v26, %v773_v36  ;;  %v632_v43 = vadd.f32 %v1077_v34, %v1280_v38  ;;  %v623_v45 = vpop.f32.mrb[25].mxu1  ;;  %869 = vst [vmem:[%s1541_s3 + $0xb8] sm:$0xff] %v805_v40  ;;  %v496_v48 = vadd.f32 %v1280_v38, %v495_v44  ;;  %v1046_v50 = vpop.f32.mrb[26].mxu0  ;;  %vm680_vm3 = vcmp.gt.f32.partialorder %v504_v42, 0.0 }
 0x111   :  { %901 = vst [vmem:[%s1541_s3 + $0x1b8] sm:$0xff] %v837_v41  ;;  %v803_v46 = vsel %vm675_vm1, %v483_v31, %v739_v37  ;;  %v835_v47 = vsel %vm707_vm2, %v611_v32, %v771_v39  ;;  %v624_v49 = vadd.f32 %v1280_v38, %v623_v45  ;;  %v1078_v51 = vpop.f32.mrb[26].mxu1  ;;  %v744_v52 = vmul.f32 0.1, %v504_v42  ;;  %v498_v60 = vpop.f32.mrb[27].mxu0 }
 0x112   :  { %867 = vst [vmem:[%s1541_s3 + $0xa8] sm:$0xff] %v803_v46  ;;  %899 = vst [vmem:[%s1541_s3 + $0x1a8] sm:$0xff] %v835_v47  ;;  %vm712_vm4 = vcmp.gt.f32.partialorder %v632_v43, 0.0  ;;  %v776_v53 = vmul.f32 0.1, %v632_v43  ;;  %vm678_vm5 = vcmp.gt.f32.partialorder %v496_v48, 0.0  ;;  %v507_v58 = vadd.f32 %v1046_v50, %v1280_v38 }
 0x113   :  { %v742_v54 = vmul.f32 0.1, %v496_v48  ;;  %vm710_vm6 = vcmp.gt.f32.partialorder %v624_v49, 0.0  ;;  %v774_v55 = vmul.f32 0.1, %v624_v49  ;;  %v808_v56 = vsel %vm680_vm3, %v504_v42, %v744_v52  ;;  %v626_v61 = vpop.f32.mrb[27].mxu1 }
 0x114   :  { %v840_v57 = vsel %vm712_vm4, %v632_v43, %v776_v53  ;;  %v635_v59 = vadd.f32 %v1078_v51, %v1280_v38  ;;  %872 = vst [vmem:[%s1541_s3 + $0xd0] sm:$0xff] %v808_v56  ;;  %v499_v0 = vadd.f32 %v1280_v38, %v498_v60  ;;  %v627_v1 = vadd.f32 %v1280_v38, %v626_v61 }
 0x115   :  { %904 = vst [vmem:[%s1541_s3 + $0x1d0] sm:$0xff] %v840_v57  ;;  %v806_v62 = vsel %vm678_vm5, %v496_v48, %v742_v54  ;;  %v838_v63 = vsel %vm710_vm6, %v624_v49, %v774_v55  ;;  %v1049_v2 = vpop.f32.mrb[28].mxu0  ;;  %v1081_v3 = vpop.f32.mrb[28].mxu1  ;;  %vm681_vm7 = vcmp.gt.f32.partialorder %v507_v58, 0.0  ;;  %v745_v4 = vmul.f32 0.1, %v507_v58 }
 0x116   :  { %870 = vst [vmem:[%s1541_s3 + $0xc0] sm:$0xff] %v806_v62  ;;  %902 = vst [vmem:[%s1541_s3 + $0x1c0] sm:$0xff] %v838_v63  ;;  %vm713_vm8 = vcmp.gt.f32.partialorder %v635_v59, 0.0  ;;  %v777_v5 = vmul.f32 0.1, %v635_v59  ;;  %vm679_vm9 = vcmp.gt.f32.partialorder %v499_v0, 0.0  ;;  %v520_v10 = vadd.f32 %v1049_v2, %v1280_v38 }
 0x117   :  { %v743_v6 = vmul.f32 0.1, %v499_v0  ;;  %vm711_vm10 = vcmp.gt.f32.partialorder %v627_v1, 0.0  ;;  %v775_v7 = vmul.f32 0.1, %v627_v1  ;;  %v809_v8 = vsel %vm681_vm7, %v507_v58, %v745_v4  ;;  %v511_v12 = vpop.f32.mrb[29].mxu0 }
 0x118   :  { %v841_v9 = vsel %vm713_vm8, %v635_v59, %v777_v5  ;;  %v648_v11 = vadd.f32 %v1081_v3, %v1280_v38  ;;  %v639_v13 = vpop.f32.mrb[29].mxu1  ;;  %873 = vst [vmem:[%s1541_s3 + $0xd8] sm:$0xff] %v809_v8  ;;  %v512_v16 = vadd.f32 %v1280_v38, %v511_v12  ;;  %v1050_v18 = vpop.f32.mrb[30].mxu0  ;;  %vm684_vm11 = vcmp.gt.f32.partialorder %v520_v10, 0.0 }
 0x119   :  { %905 = vst [vmem:[%s1541_s3 + $0x1d8] sm:$0xff] %v841_v9  ;;  %v807_v14 = vsel %vm679_vm9, %v499_v0, %v743_v6  ;;  %v839_v15 = vsel %vm711_vm10, %v627_v1, %v775_v7  ;;  %v640_v17 = vadd.f32 %v1280_v38, %v639_v13  ;;  %v1082_v19 = vpop.f32.mrb[30].mxu1  ;;  %v748_v20 = vmul.f32 0.1, %v520_v10  ;;  %v514_v28 = vpop.f32.mrb[31].mxu0 }
 0x11a   :  { %871 = vst [vmem:[%s1541_s3 + $0xc8] sm:$0xff] %v807_v14  ;;  %903 = vst [vmem:[%s1541_s3 + $0x1c8] sm:$0xff] %v839_v15  ;;  %vm716_vm12 = vcmp.gt.f32.partialorder %v648_v11, 0.0  ;;  %v780_v21 = vmul.f32 0.1, %v648_v11  ;;  %vm682_vm13 = vcmp.gt.f32.partialorder %v512_v16, 0.0  ;;  %v523_v26 = vadd.f32 %v1050_v18, %v1280_v38 }
 0x11b   :  { %v746_v22 = vmul.f32 0.1, %v512_v16  ;;  %vm714_vm14 = vcmp.gt.f32.partialorder %v640_v17, 0.0  ;;  %v778_v23 = vmul.f32 0.1, %v640_v17  ;;  %v812_v24 = vsel %vm684_vm11, %v520_v10, %v748_v20  ;;  %v642_v29 = vpop.f32.mrb[31].mxu1 }
 0x11c   :  { %v844_v25 = vsel %vm716_vm12, %v648_v11, %v780_v21  ;;  %v651_v27 = vadd.f32 %v1082_v19, %v1280_v38  ;;  %876 = vst [vmem:[%s1541_s3 + $0xf0] sm:$0xff] %v812_v24  ;;  %v515_v32 = vadd.f32 %v1280_v38, %v514_v28  ;;  %v643_v33 = vadd.f32 %v1280_v38, %v642_v29 }
 0x11d   :  { %908 = vst [vmem:[%s1541_s3 + $0x1f0] sm:$0xff] %v844_v25  ;;  %v810_v30 = vsel %vm682_vm13, %v512_v16, %v746_v22  ;;  %v842_v31 = vsel %vm714_vm14, %v640_v17, %v778_v23  ;;  %vm685_vm15 = vcmp.gt.f32.partialorder %v523_v26, 0.0  ;;  %v749_v34 = vmul.f32 0.1, %v523_v26 }
 0x11e   :  { %874 = vst [vmem:[%s1541_s3 + $0xe0] sm:$0xff] %v810_v30  ;;  %906 = vst [vmem:[%s1541_s3 + $0x1e0] sm:$0xff] %v842_v31  ;;  %vm717_vm0 = vcmp.gt.f32.partialorder %v651_v27, 0.0  ;;  %v781_v35 = vmul.f32 0.1, %v651_v27  ;;  %vm683_vm1 = vcmp.gt.f32.partialorder %v515_v32, 0.0 }
 0x11f   :  { %v747_v36 = vmul.f32 0.1, %v515_v32  ;;  %vm715_vm2 = vcmp.gt.f32.partialorder %v643_v33, 0.0  ;;  %v779_v37 = vmul.f32 0.1, %v643_v33  ;;  %v813_v39 = vsel %vm685_vm15, %v523_v26, %v749_v34 }
 0x120   :  { %v845_v40 = vsel %vm717_vm0, %v651_v27, %v781_v35  ;;  %877 = vst [vmem:[%s1541_s3 + $0xf8] sm:$0xff] %v813_v39 }
 0x121   :  { %909 = vst [vmem:[%s1541_s3 + $0x1f8] sm:$0xff] %v845_v40  ;;  %v811_v38 = vsel %vm683_vm1, %v515_v32, %v747_v36  ;;  %v843_v41 = vsel %vm715_vm2, %v643_v33, %v779_v37 }
 0x122   :  { %875 = vst [vmem:[%s1541_s3 + $0xe8] sm:$0xff] %v811_v38  ;;  %907 = vst [vmem:[%s1541_s3 + $0x1e8] sm:$0xff] %v843_v41 }

// kernel: _lambda_.65
= control target key start
LH: loop header
LB: loop body
LE: loop exit
PB: predicated region body
PF: predicated region fallthrough
CT: control target
= control target key end

     0   :  { %vm114_vm0 = vcmask 588800   ;;  %vm139_vm1 = vcmask 1043456   ;;  %s530_s1 = inlined_call_operand.vmem [shape: bf16[72,128], index: 1, kind: input, shape index: {}]   ;;  %s531_s0 = inlined_call_operand.vmem [shape: bf16[128,72], index: 0, kind: input, shape index: {}]   ;;  %s532_s2 = inlined_call_operand.vmem [shape: f32[1,128], index: 2, kind: input, shape index: {}]   ;;  %s533_s3 = inlined_call_operand.vmem [shape: f32[128,128], index: 3, kind: output, shape index: {}]  }
   0x1   :  { %v381_v0 = vld [vmem:[%s530_s1] sm:$0xff]   ;;  %v382_v1 = vld [vmem:[%s530_s1 + $0x8] sm:$0xff]   ;;  %v383_v2 = vld [vmem:[%s530_s1 + $0x10] sm:$0xff]  }
   0x2   :  { %343 = vmatprep.subr.bf16.mxu0 %v381_v0  ;;  %369 = vmatprep.subr.bf16.mxu1 %v381_v0  ;;  %v386_v3 = vld [vmem:[%s531_s0] sm:$0xff]   ;;  %v384_v5 = vld [vmem:[%s530_s1 + $0x18] sm:$0xff]   ;;  %v388_v8 = vld [vmem:[%s531_s0 + $0x8] sm:$0xff]  }
   0x3   :  { %344 = vmatpush3.bf16.msra.mxu0 %v381_v0  ;;  %374 = vmatpush3.bf16.msra.mxu1 %v381_v0  ;;  %v387_v4 = vld [vmem:[%s531_s0 + $0x20] sm:$0xff]   ;;  %v389_v9 = vld [vmem:[%s531_s0 + $0x28] sm:$0xff]   ;;  %v390_v10 = vld [vmem:[%s531_s0 + $0x10] sm:$0xff]  }
   0x4   :  { %345 = vmatprep.subr.bf16.mxu0 %v382_v1  ;;  %370 = vmatprep.subr.bf16.mxu1 %v382_v1  ;;  %v385_v6 = vld [vmem:[%s530_s1 + $0x20] ss:$0 sps:$4 sm:$0xff]   ;;  %v391_v11 = vld [vmem:[%s531_s0 + $0x30] sm:$0xff]   ;;  %v392_v12 = vld [vmem:[%s531_s0 + $0x18] sm:$0xff]  }
   0x5   :  { %353 = vmatprep.mubr.msk.bf16.mxu0 %vm114_vm0, %v386_v3  ;;  %361 = vmatprep.mubr.msk.bf16.mxu1 %vm114_vm0, %v387_v4  ;;  %v141_v7 = vsel %vm139_vm1, %v385_v6, 0  ;;  %v393_v13 = vld [vmem:[%s531_s0 + $0x38] sm:$0xff]   ;;  %v464_v14 = vld [vmem:[%s532_s2] ss:$0 sm:$0xff] }
   0x7   :  { %346 = vmatpush3.bf16.msra.mxu0 %v382_v1  ;;  %375 = vmatpush3.bf16.msra.mxu1 %v382_v1 }
   0x8   :  { %347 = vmatprep.subr.bf16.mxu0 %v383_v2  ;;  %371 = vmatprep.subr.bf16.mxu1 %v383_v2 }
   0xb   :  { %348 = vmatpush3.bf16.msra.mxu0 %v383_v2  ;;  %376 = vmatpush3.bf16.msra.mxu1 %v383_v2 }
   0xc   :  { %349 = vmatprep.subr.bf16.mxu0 %v384_v5  ;;  %372 = vmatprep.subr.bf16.mxu1 %v384_v5 }
   0xf   :  { %350 = vmatpush3.bf16.msra.mxu0 %v384_v5  ;;  %377 = vmatpush3.bf16.msra.mxu1 %v384_v5 }
  0x10   :  { %379 = vmatprep.subr.msk.bf16.mxu0 %vm139_vm1, %v385_v6  ;;  %380 = vmatprep.subr.msk.bf16.mxu1 %vm139_vm1, %v385_v6 }
  0x13   :  { %352 = vmatpush3.bf16.msra.mxu0 %v141_v7  ;;  %378 = vmatpush3.bf16.msra.mxu1 %v141_v7 }
  0x16   :  { %354 = vmatmul.mubr.msk.bf16.vlgmr.msra.gmra.mrb[0].mxu0 %vm114_vm0, %v388_v8  ;;  %362 = vmatmul.mubr.msk.bf16.vlgmr.msra.gmra.mrb[0].mxu1 %vm114_vm0, %v389_v9 }
  0x17   :  { %357 = vmatprep.mubr.msk.bf16.mxu0 %vm114_vm0, %v390_v10  ;;  %365 = vmatprep.mubr.msk.bf16.mxu1 %vm114_vm0, %v391_v11 }
  0x1e   :  { %358 = vmatmul.mubr.msk.bf16.gmra.mrb[4].mxu0 %vm114_vm0, %v392_v12  ;;  %366 = vmatmul.mubr.msk.bf16.gmra.mrb[4].mxu1 %vm114_vm0, %v393_v13 }
  0xe9   :  { %v355_v15 = vpop.f32.mrb[0].mxu0  ;;  %v363_v16 = vpop.f32.mrb[0].mxu1 }
  0xea   :  { %v186_v17 = vadd.f32 %v355_v15, %v464_v14  ;;  %v218_v18 = vadd.f32 %v363_v16, %v464_v14  ;;  %v177_v19 = vpop.f32.mrb[1].mxu0  ;;  %v209_v20 = vpop.f32.mrb[1].mxu1 }
  0xeb   :  { %v178_v21 = vadd.f32 %v464_v14, %v177_v19  ;;  %v210_v22 = vadd.f32 %v464_v14, %v209_v20  ;;  %v356_v23 = vpop.f32.mrb[2].mxu0  ;;  %v364_v24 = vpop.f32.mrb[2].mxu1 }
  0xec   :  { %vm242_vm2 = vcmp.gt.f32.partialorder %v186_v17, 0.0  ;;  %v258_v25 = vmul.f32 0.1, %v186_v17  ;;  %vm250_vm3 = vcmp.gt.f32.partialorder %v218_v18, 0.0  ;;  %v266_v26 = vmul.f32 0.1, %v218_v18 }
  0xed   :  { %vm240_vm4 = vcmp.gt.f32.partialorder %v178_v21, 0.0  ;;  %v256_v27 = vmul.f32 0.1, %v178_v21  ;;  %vm248_vm5 = vcmp.gt.f32.partialorder %v210_v22, 0.0  ;;  %v264_v28 = vmul.f32 0.1, %v210_v22 }
  0xee   :  { %v274_v29 = vsel %vm242_vm2, %v186_v17, %v258_v25  ;;  %v282_v30 = vsel %vm250_vm3, %v218_v18, %v266_v26  ;;  %v189_v31 = vadd.f32 %v356_v23, %v464_v14  ;;  %v221_v32 = vadd.f32 %v364_v24, %v464_v14  ;;  %v180_v33 = vpop.f32.mrb[3].mxu0  ;;  %v212_v34 = vpop.f32.mrb[3].mxu1 }
  0xef   :  { %290 = vst [vmem:[%s533_s3 + $0x10] sm:$0xff] %v274_v29  ;;  %298 = vst [vmem:[%s533_s3 + $0x50] sm:$0xff] %v282_v30  ;;  %v272_v35 = vsel %vm240_vm4, %v178_v21, %v256_v27  ;;  %v280_v36 = vsel %vm248_vm5, %v210_v22, %v264_v28  ;;  %v181_v37 = vadd.f32 %v464_v14, %v180_v33 }
  0xf0   :  { %v213_v38 = vadd.f32 %v464_v14, %v212_v34  ;;  %288 = vst [vmem:[%s533_s3] sm:$0xff] %v272_v35  ;;  %296 = vst [vmem:[%s533_s3 + $0x40] sm:$0xff] %v280_v36  ;;  %vm243_vm6 = vcmp.gt.f32.partialorder %v189_v31, 0.0  ;;  %v259_v39 = vmul.f32 0.1, %v189_v31  ;;  %vm251_vm7 = vcmp.gt.f32.partialorder %v221_v32, 0.0 }
  0xf1   :  { %v267_v40 = vmul.f32 0.1, %v221_v32  ;;  %vm241_vm8 = vcmp.gt.f32.partialorder %v181_v37, 0.0  ;;  %v257_v41 = vmul.f32 0.1, %v181_v37  ;;  %v359_v45 = vpop.f32.mrb[4].mxu0 }
  0xf2   :  { %vm249_vm9 = vcmp.gt.f32.partialorder %v213_v38, 0.0  ;;  %v265_v42 = vmul.f32 0.1, %v213_v38  ;;  %v275_v43 = vsel %vm243_vm6, %v189_v31, %v259_v39  ;;  %v367_v46 = vpop.f32.mrb[4].mxu1  ;;  %v202_v49 = vadd.f32 %v359_v45, %v464_v14  ;;  %v193_v51 = vpop.f32.mrb[5].mxu0 }
  0xf3   :  { %v283_v44 = vsel %vm251_vm7, %v221_v32, %v267_v40  ;;  %291 = vst [vmem:[%s533_s3 + $0x18] sm:$0xff] %v275_v43  ;;  %v273_v47 = vsel %vm241_vm8, %v181_v37, %v257_v41  ;;  %v234_v50 = vadd.f32 %v367_v46, %v464_v14  ;;  %v225_v52 = vpop.f32.mrb[5].mxu1  ;;  %v194_v53 = vadd.f32 %v464_v14, %v193_v51  ;;  %v360_v55 = vpop.f32.mrb[6].mxu0 }
  0xf4   :  { %299 = vst [vmem:[%s533_s3 + $0x58] sm:$0xff] %v283_v44  ;;  %v281_v48 = vsel %vm249_vm9, %v213_v38, %v265_v42  ;;  %289 = vst [vmem:[%s533_s3 + $0x8] sm:$0xff] %v273_v47  ;;  %v226_v54 = vadd.f32 %v464_v14, %v225_v52  ;;  %v368_v56 = vpop.f32.mrb[6].mxu1  ;;  %vm246_vm10 = vcmp.gt.f32.partialorder %v202_v49, 0.0  ;;  %v262_v57 = vmul.f32 0.1, %v202_v49 }
  0xf5   :  { %297 = vst [vmem:[%s533_s3 + $0x48] sm:$0xff] %v281_v48  ;;  %vm254_vm11 = vcmp.gt.f32.partialorder %v234_v50, 0.0  ;;  %v270_v58 = vmul.f32 0.1, %v234_v50  ;;  %vm244_vm12 = vcmp.gt.f32.partialorder %v194_v53, 0.0  ;;  %v205_v63 = vadd.f32 %v360_v55, %v464_v14  ;;  %v196_v1 = vpop.f32.mrb[7].mxu0 }
  0xf6   :  { %v260_v59 = vmul.f32 0.1, %v194_v53  ;;  %vm252_vm13 = vcmp.gt.f32.partialorder %v226_v54, 0.0  ;;  %v268_v60 = vmul.f32 0.1, %v226_v54  ;;  %v278_v61 = vsel %vm246_vm10, %v202_v49, %v262_v57  ;;  %v228_v2 = vpop.f32.mrb[7].mxu1 }
  0xf7   :  { %v286_v62 = vsel %vm254_vm11, %v234_v50, %v270_v58  ;;  %v237_v0 = vadd.f32 %v368_v56, %v464_v14  ;;  %294 = vst [vmem:[%s533_s3 + $0x30] sm:$0xff] %v278_v61  ;;  %v197_v5 = vadd.f32 %v464_v14, %v196_v1  ;;  %v229_v6 = vadd.f32 %v464_v14, %v228_v2 }
  0xf8   :  { %302 = vst [vmem:[%s533_s3 + $0x70] sm:$0xff] %v286_v62  ;;  %v276_v3 = vsel %vm244_vm12, %v194_v53, %v260_v59  ;;  %v284_v4 = vsel %vm252_vm13, %v226_v54, %v268_v60  ;;  %vm247_vm14 = vcmp.gt.f32.partialorder %v205_v63, 0.0  ;;  %v263_v7 = vmul.f32 0.1, %v205_v63 }
  0xf9   :  { %292 = vst [vmem:[%s533_s3 + $0x20] sm:$0xff] %v276_v3  ;;  %300 = vst [vmem:[%s533_s3 + $0x60] sm:$0xff] %v284_v4  ;;  %vm255_vm15 = vcmp.gt.f32.partialorder %v237_v0, 0.0  ;;  %v271_v8 = vmul.f32 0.1, %v237_v0  ;;  %vm245_vm0 = vcmp.gt.f32.partialorder %v197_v5, 0.0 }
  0xfa   :  { %v261_v9 = vmul.f32 0.1, %v197_v5  ;;  %vm253_vm1 = vcmp.gt.f32.partialorder %v229_v6, 0.0  ;;  %v269_v10 = vmul.f32 0.1, %v229_v6  ;;  %v279_v11 = vsel %vm247_vm14, %v205_v63, %v263_v7 }
  0xfb   :  { %v287_v12 = vsel %vm255_vm15, %v237_v0, %v271_v8  ;;  %295 = vst [vmem:[%s533_s3 + $0x38] sm:$0xff] %v279_v11 }
  0xfc   :  { %303 = vst [vmem:[%s533_s3 + $0x78] sm:$0xff] %v287_v12  ;;  %v277_v13 = vsel %vm245_vm0, %v197_v5, %v261_v9  ;;  %v285_v14 = vsel %vm253_vm1, %v229_v6, %v269_v10 }
  0xfd   :  { %293 = vst [vmem:[%s533_s3 + $0x28] sm:$0xff] %v277_v13  ;;  %301 = vst [vmem:[%s533_s3 + $0x68] sm:$0xff] %v285_v14 }

// kernel: _lambda_.66
= control target key start
LH: loop header
LB: loop body
LE: loop exit
PB: predicated region body
PF: predicated region fallthrough
CT: control target
= control target key end

     0   :  { %vm86_vm0 = vcmask 130048   ;;  %s456_s1 = inlined_call_operand.vmem [shape: bf16[16,128], index: 1, kind: input, shape index: {}]   ;;  %s457_s0 = inlined_call_operand.vmem [shape: bf16[128,16], index: 0, kind: input, shape index: {}]   ;;  %s458_s2 = inlined_call_operand.vmem [shape: f32[1,128], index: 2, kind: input, shape index: {}]   ;;  %s459_s3 = inlined_call_operand.vmem [shape: f32[128,128], index: 3, kind: output, shape index: {}]  }
   0x1   :  { %v323_v0 = vld [vmem:[%s456_s1] sm:$0xff]   ;;  %v326_v3 = vld [vmem:[%s457_s0 + $0x8] sm:$0xff]   ;;  %v328_v5 = vld [vmem:[%s457_s0 + $0x10] sm:$0xff]  }
   0x2   :  { %v324_v1 = vld [vmem:[%s457_s0] sm:$0xff]   ;;  %303 = vmatprep.subr.bf16.mxu0 %v323_v0  ;;  %321 = vmatprep.subr.bf16.mxu1 %v323_v0  ;;  %v327_v4 = vld [vmem:[%s457_s0 + $0x28] sm:$0xff]   ;;  %v329_v6 = vld [vmem:[%s457_s0 + $0x30] sm:$0xff]  }
   0x3   :  { %v325_v2 = vld [vmem:[%s457_s0 + $0x20] sm:$0xff]   ;;  %304 = vmatpush3.bf16.msra.mxu0 %v323_v0  ;;  %322 = vmatpush3.bf16.msra.mxu1 %v323_v0  ;;  %v330_v7 = vld [vmem:[%s457_s0 + $0x18] sm:$0xff]  }
   0x4   :  { %305 = vmatprep.mubr.msk.bf16.mxu0 %vm86_vm0, %v324_v1  ;;  %313 = vmatprep.mubr.msk.bf16.mxu1 %vm86_vm0, %v325_v2  ;;  %v331_v8 = vld [vmem:[%s457_s0 + $0x38] sm:$0xff]   ;;  %v390_v9 = vld [vmem:[%s458_s2] ss:$0 sm:$0xff] }
   0x6   :  { %306 = vmatmul.mubr.msk.bf16.vlgmr.msra.gmra.mrb[0].mxu0 %vm86_vm0, %v326_v3  ;;  %314 = vmatmul.mubr.msk.bf16.vlgmr.msra.gmra.mrb[0].mxu1 %vm86_vm0, %v327_v4 }
   0x7   :  { %309 = vmatprep.mubr.msk.bf16.mxu0 %vm86_vm0, %v328_v5  ;;  %317 = vmatprep.mubr.msk.bf16.mxu1 %vm86_vm0, %v329_v6 }
   0xe   :  { %310 = vmatmul.mubr.msk.bf16.gmra.mrb[4].mxu0 %vm86_vm0, %v330_v7  ;;  %318 = vmatmul.mubr.msk.bf16.gmra.mrb[4].mxu1 %vm86_vm0, %v331_v8 }
  0xd9   :  { %v307_v10 = vpop.f32.mrb[0].mxu0  ;;  %v315_v11 = vpop.f32.mrb[0].mxu1 }
  0xda   :  { %v154_v12 = vadd.f32 %v307_v10, %v390_v9  ;;  %v186_v13 = vadd.f32 %v315_v11, %v390_v9  ;;  %v145_v14 = vpop.f32.mrb[1].mxu0  ;;  %v177_v15 = vpop.f32.mrb[1].mxu1 }
  0xdb   :  { %v146_v16 = vadd.f32 %v390_v9, %v145_v14  ;;  %v178_v17 = vadd.f32 %v390_v9, %v177_v15  ;;  %v308_v18 = vpop.f32.mrb[2].mxu0  ;;  %v316_v19 = vpop.f32.mrb[2].mxu1 }
  0xdc   :  { %vm210_vm1 = vcmp.gt.f32.partialorder %v154_v12, 0.0  ;;  %v226_v20 = vmul.f32 0.1, %v154_v12  ;;  %vm218_vm2 = vcmp.gt.f32.partialorder %v186_v13, 0.0  ;;  %v234_v21 = vmul.f32 0.1, %v186_v13 }
  0xdd   :  { %vm208_vm3 = vcmp.gt.f32.partialorder %v146_v16, 0.0  ;;  %v224_v22 = vmul.f32 0.1, %v146_v16  ;;  %vm216_vm4 = vcmp.gt.f32.partialorder %v178_v17, 0.0  ;;  %v232_v23 = vmul.f32 0.1, %v178_v17 }
  0xde   :  { %v242_v24 = vsel %vm210_vm1, %v154_v12, %v226_v20  ;;  %v250_v25 = vsel %vm218_vm2, %v186_v13, %v234_v21  ;;  %v157_v26 = vadd.f32 %v308_v18, %v390_v9  ;;  %v189_v27 = vadd.f32 %v316_v19, %v390_v9  ;;  %v148_v28 = vpop.f32.mrb[3].mxu0  ;;  %v180_v29 = vpop.f32.mrb[3].mxu1 }
  0xdf   :  { %258 = vst [vmem:[%s459_s3 + $0x10] sm:$0xff] %v242_v24  ;;  %266 = vst [vmem:[%s459_s3 + $0x50] sm:$0xff] %v250_v25  ;;  %v240_v30 = vsel %vm208_vm3, %v146_v16, %v224_v22  ;;  %v248_v31 = vsel %vm216_vm4, %v178_v17, %v232_v23  ;;  %v149_v32 = vadd.f32 %v390_v9, %v148_v28 }
  0xe0   :  { %v181_v33 = vadd.f32 %v390_v9, %v180_v29  ;;  %256 = vst [vmem:[%s459_s3] sm:$0xff] %v240_v30  ;;  %264 = vst [vmem:[%s459_s3 + $0x40] sm:$0xff] %v248_v31  ;;  %vm211_vm5 = vcmp.gt.f32.partialorder %v157_v26, 0.0  ;;  %v227_v34 = vmul.f32 0.1, %v157_v26  ;;  %vm219_vm6 = vcmp.gt.f32.partialorder %v189_v27, 0.0 }
  0xe1   :  { %v235_v35 = vmul.f32 0.1, %v189_v27  ;;  %vm209_vm7 = vcmp.gt.f32.partialorder %v149_v32, 0.0  ;;  %v225_v36 = vmul.f32 0.1, %v149_v32  ;;  %v311_v40 = vpop.f32.mrb[4].mxu0 }
  0xe2   :  { %vm217_vm8 = vcmp.gt.f32.partialorder %v181_v33, 0.0  ;;  %v233_v37 = vmul.f32 0.1, %v181_v33  ;;  %v243_v38 = vsel %vm211_vm5, %v157_v26, %v227_v34  ;;  %v319_v41 = vpop.f32.mrb[4].mxu1  ;;  %v170_v44 = vadd.f32 %v311_v40, %v390_v9  ;;  %v161_v46 = vpop.f32.mrb[5].mxu0 }
  0xe3   :  { %v251_v39 = vsel %vm219_vm6, %v189_v27, %v235_v35  ;;  %259 = vst [vmem:[%s459_s3 + $0x18] sm:$0xff] %v243_v38  ;;  %v241_v42 = vsel %vm209_vm7, %v149_v32, %v225_v36  ;;  %v202_v45 = vadd.f32 %v319_v41, %v390_v9  ;;  %v193_v47 = vpop.f32.mrb[5].mxu1  ;;  %v162_v48 = vadd.f32 %v390_v9, %v161_v46  ;;  %v312_v50 = vpop.f32.mrb[6].mxu0 }
  0xe4   :  { %267 = vst [vmem:[%s459_s3 + $0x58] sm:$0xff] %v251_v39  ;;  %v249_v43 = vsel %vm217_vm8, %v181_v33, %v233_v37  ;;  %257 = vst [vmem:[%s459_s3 + $0x8] sm:$0xff] %v241_v42  ;;  %v194_v49 = vadd.f32 %v390_v9, %v193_v47  ;;  %v320_v51 = vpop.f32.mrb[6].mxu1  ;;  %vm214_vm9 = vcmp.gt.f32.partialorder %v170_v44, 0.0  ;;  %v230_v52 = vmul.f32 0.1, %v170_v44 }
  0xe5   :  { %265 = vst [vmem:[%s459_s3 + $0x48] sm:$0xff] %v249_v43  ;;  %vm222_vm10 = vcmp.gt.f32.partialorder %v202_v45, 0.0  ;;  %v238_v53 = vmul.f32 0.1, %v202_v45  ;;  %vm212_vm11 = vcmp.gt.f32.partialorder %v162_v48, 0.0  ;;  %v173_v58 = vadd.f32 %v312_v50, %v390_v9  ;;  %v164_v60 = vpop.f32.mrb[7].mxu0 }
  0xe6   :  { %v228_v54 = vmul.f32 0.1, %v162_v48  ;;  %vm220_vm12 = vcmp.gt.f32.partialorder %v194_v49, 0.0  ;;  %v236_v55 = vmul.f32 0.1, %v194_v49  ;;  %v246_v56 = vsel %vm214_vm9, %v170_v44, %v230_v52  ;;  %v196_v61 = vpop.f32.mrb[7].mxu1 }
  0xe7   :  { %v254_v57 = vsel %vm222_vm10, %v202_v45, %v238_v53  ;;  %v205_v59 = vadd.f32 %v320_v51, %v390_v9  ;;  %262 = vst [vmem:[%s459_s3 + $0x30] sm:$0xff] %v246_v56  ;;  %v165_v0 = vadd.f32 %v390_v9, %v164_v60  ;;  %v197_v1 = vadd.f32 %v390_v9, %v196_v61 }
  0xe8   :  { %270 = vst [vmem:[%s459_s3 + $0x70] sm:$0xff] %v254_v57  ;;  %v244_v62 = vsel %vm212_vm11, %v162_v48, %v228_v54  ;;  %v252_v63 = vsel %vm220_vm12, %v194_v49, %v236_v55  ;;  %vm215_vm13 = vcmp.gt.f32.partialorder %v173_v58, 0.0  ;;  %v231_v2 = vmul.f32 0.1, %v173_v58 }
  0xe9   :  { %260 = vst [vmem:[%s459_s3 + $0x20] sm:$0xff] %v244_v62  ;;  %268 = vst [vmem:[%s459_s3 + $0x60] sm:$0xff] %v252_v63  ;;  %vm223_vm14 = vcmp.gt.f32.partialorder %v205_v59, 0.0  ;;  %v239_v3 = vmul.f32 0.1, %v205_v59  ;;  %vm213_vm15 = vcmp.gt.f32.partialorder %v165_v0, 0.0 }
  0xea   :  { %v229_v4 = vmul.f32 0.1, %v165_v0  ;;  %vm221_vm0 = vcmp.gt.f32.partialorder %v197_v1, 0.0  ;;  %v237_v5 = vmul.f32 0.1, %v197_v1  ;;  %v247_v6 = vsel %vm215_vm13, %v173_v58, %v231_v2 }
  0xeb   :  { %v255_v7 = vsel %vm223_vm14, %v205_v59, %v239_v3  ;;  %263 = vst [vmem:[%s459_s3 + $0x38] sm:$0xff] %v247_v6 }
  0xec   :  { %271 = vst [vmem:[%s459_s3 + $0x78] sm:$0xff] %v255_v7  ;;  %v245_v8 = vsel %vm213_vm15, %v165_v0, %v229_v4  ;;  %v253_v9 = vsel %vm221_vm0, %v197_v1, %v237_v5 }
  0xed   :  { %261 = vst [vmem:[%s459_s3 + $0x28] sm:$0xff] %v245_v8  ;;  %269 = vst [vmem:[%s459_s3 + $0x68] sm:$0xff] %v253_v9 }

// kernel: _lambda_.67
= control target key start
LH: loop header
LB: loop body
LE: loop exit
PB: predicated region body
PF: predicated region fallthrough
CT: control target
= control target key end

     0   :  { %vm117_vm0 = vcmask 588800   ;;  %vm142_vm1 = vcmask 1043456   ;;  %s619_s1 = inlined_call_operand.vmem [shape: bf16[72,128], index: 1, kind: input, shape index: {}]   ;;  %s620_s0 = inlined_call_operand.vmem [shape: bf16[128,72], index: 0, kind: input, shape index: {}]   ;;  %s621_s2 = inlined_call_operand.vmem [shape: f32[1,128], index: 2, kind: input, shape index: {}]   ;;  %s622_s3 = inlined_call_operand.vmem [shape: f32[128,128], index: 3, kind: input, shape index: {}]   ;;  %s623_s4 = inlined_call_operand.vmem [shape: f32[128,128], index: 4, kind: output, shape index: {}]  }
   0x1   :  { %v416_v0 = vld [vmem:[%s619_s1] sm:$0xff]   ;;  %v417_v1 = vld [vmem:[%s619_s1 + $0x8] sm:$0xff]   ;;  %v418_v2 = vld [vmem:[%s619_s1 + $0x10] sm:$0xff]  }
   0x2   :  { %378 = vmatprep.subr.bf16.mxu0 %v416_v0  ;;  %404 = vmatprep.subr.bf16.mxu1 %v416_v0  ;;  %v421_v3 = vld [vmem:[%s620_s0] sm:$0xff]   ;;  %v419_v5 = vld [vmem:[%s619_s1 + $0x18] sm:$0xff]   ;;  %v423_v8 = vld [vmem:[%s620_s0 + $0x8] sm:$0xff]  }
   0x3   :  { %379 = vmatpush3.bf16.msra.mxu0 %v416_v0  ;;  %409 = vmatpush3.bf16.msra.mxu1 %v416_v0  ;;  %v422_v4 = vld [vmem:[%s620_s0 + $0x20] sm:$0xff]   ;;  %v424_v9 = vld [vmem:[%s620_s0 + $0x28] sm:$0xff]   ;;  %v425_v10 = vld [vmem:[%s620_s0 + $0x10] sm:$0xff]  }
   0x4   :  { %380 = vmatprep.subr.bf16.mxu0 %v417_v1  ;;  %405 = vmatprep.subr.bf16.mxu1 %v417_v1  ;;  %v420_v6 = vld [vmem:[%s619_s1 + $0x20] ss:$0 sps:$4 sm:$0xff]   ;;  %v426_v11 = vld [vmem:[%s620_s0 + $0x30] sm:$0xff]   ;;  %v427_v12 = vld [vmem:[%s620_s0 + $0x18] sm:$0xff]  }
   0x5   :  { %388 = vmatprep.mubr.msk.bf16.mxu0 %vm117_vm0, %v421_v3  ;;  %396 = vmatprep.mubr.msk.bf16.mxu1 %vm117_vm0, %v422_v4  ;;  %v144_v7 = vsel %vm142_vm1, %v420_v6, 0  ;;  %v428_v13 = vld [vmem:[%s620_s0 + $0x38] sm:$0xff]   ;;  %v504_v14 = vld [vmem:[%s621_s2] ss:$0 sm:$0xff]  ;;  %v293_v18 = vld [vmem:[%s622_s3 + $0x10] sm:$0xff] }
   0x6   :  { %v301_v22 = vld [vmem:[%s622_s3 + $0x50] sm:$0xff]  ;;  %v291_v24 = vld [vmem:[%s622_s3] sm:$0xff]  ;;  %v294_v46 = vld [vmem:[%s622_s3 + $0x18] sm:$0xff] }
   0x7   :  { %381 = vmatpush3.bf16.msra.mxu0 %v417_v1  ;;  %410 = vmatpush3.bf16.msra.mxu1 %v417_v1  ;;  %v299_v26 = vld [vmem:[%s622_s3 + $0x40] sm:$0xff]  ;;  %v302_v48 = vld [vmem:[%s622_s3 + $0x58] sm:$0xff]  ;;  %v292_v54 = vld [vmem:[%s622_s3 + $0x8] sm:$0xff] }
   0x8   :  { %382 = vmatprep.subr.bf16.mxu0 %v418_v2  ;;  %406 = vmatprep.subr.bf16.mxu1 %v418_v2  ;;  %v300_v55 = vld [vmem:[%s622_s3 + $0x48] sm:$0xff]  ;;  %v297_v63 = vld [vmem:[%s622_s3 + $0x30] sm:$0xff] }
   0xb   :  { %383 = vmatpush3.bf16.msra.mxu0 %v418_v2  ;;  %411 = vmatpush3.bf16.msra.mxu1 %v418_v2 }
   0xc   :  { %384 = vmatprep.subr.bf16.mxu0 %v419_v5  ;;  %407 = vmatprep.subr.bf16.mxu1 %v419_v5 }
   0xf   :  { %385 = vmatpush3.bf16.msra.mxu0 %v419_v5  ;;  %412 = vmatpush3.bf16.msra.mxu1 %v419_v5 }
  0x10   :  { %414 = vmatprep.subr.msk.bf16.mxu0 %vm142_vm1, %v420_v6  ;;  %415 = vmatprep.subr.msk.bf16.mxu1 %vm142_vm1, %v420_v6 }
  0x13   :  { %387 = vmatpush3.bf16.msra.mxu0 %v144_v7  ;;  %413 = vmatpush3.bf16.msra.mxu1 %v144_v7 }
  0x16   :  { %389 = vmatmul.mubr.msk.bf16.vlgmr.msra.gmra.mrb[0].mxu0 %vm117_vm0, %v423_v8  ;;  %397 = vmatmul.mubr.msk.bf16.vlgmr.msra.gmra.mrb[0].mxu1 %vm117_vm0, %v424_v9  ;;  %v305_v9 = vld [vmem:[%s622_s3 + $0x70] sm:$0xff] }
  0x17   :  { %392 = vmatprep.mubr.msk.bf16.mxu0 %vm117_vm0, %v425_v10  ;;  %400 = vmatprep.mubr.msk.bf16.mxu1 %vm117_vm0, %v426_v11 }
  0x1e   :  { %393 = vmatmul.mubr.msk.bf16.gmra.mrb[4].mxu0 %vm117_vm0, %v427_v12  ;;  %401 = vmatmul.mubr.msk.bf16.gmra.mrb[4].mxu1 %vm117_vm0, %v428_v13 }
  0xe9   :  { %v390_v15 = vpop.f32.mrb[0].mxu0  ;;  %v398_v16 = vpop.f32.mrb[0].mxu1 }
  0xea   :  { %v189_v17 = vadd.f32 %v390_v15, %v504_v14  ;;  %v221_v19 = vadd.f32 %v398_v16, %v504_v14  ;;  %v180_v20 = vpop.f32.mrb[1].mxu0  ;;  %v212_v21 = vpop.f32.mrb[1].mxu1 }
  0xeb   :  { %v181_v23 = vadd.f32 %v504_v14, %v180_v20  ;;  %v213_v25 = vadd.f32 %v504_v14, %v212_v21  ;;  %v391_v27 = vpop.f32.mrb[2].mxu0  ;;  %v399_v28 = vpop.f32.mrb[2].mxu1 }
  0xec   :  { %vm245_vm2 = vcmp.gt.f32.partialorder %v189_v17, 0.0  ;;  %v261_v29 = vmul.f32 0.1, %v189_v17  ;;  %vm253_vm3 = vcmp.gt.f32.partialorder %v221_v19, 0.0  ;;  %v269_v30 = vmul.f32 0.1, %v221_v19 }
  0xed   :  { %vm243_vm4 = vcmp.gt.f32.partialorder %v181_v23, 0.0  ;;  %v259_v31 = vmul.f32 0.1, %v181_v23  ;;  %vm251_vm5 = vcmp.gt.f32.partialorder %v213_v25, 0.0  ;;  %v267_v32 = vmul.f32 0.1, %v213_v25 }
  0xee   :  { %v277_v33 = vsel %vm245_vm2, %v189_v17, %v261_v29  ;;  %v285_v34 = vsel %vm253_vm3, %v221_v19, %v269_v30  ;;  %v192_v35 = vadd.f32 %v391_v27, %v504_v14  ;;  %v224_v36 = vadd.f32 %v399_v28, %v504_v14  ;;  %v183_v37 = vpop.f32.mrb[3].mxu0  ;;  %v215_v38 = vpop.f32.mrb[3].mxu1 }
  0xef   :  { %v309_v39 = vadd.f32 %v293_v18, %v277_v33  ;;  %v317_v40 = vadd.f32 %v301_v22, %v285_v34  ;;  %v275_v41 = vsel %vm243_vm4, %v181_v23, %v259_v31  ;;  %v283_v42 = vsel %vm251_vm5, %v213_v25, %v267_v32  ;;  %v295_v22 = vld [vmem:[%s622_s3 + $0x20] sm:$0xff] }
  0xf0   :  { %v307_v43 = vadd.f32 %v291_v24, %v275_v41  ;;  %v315_v44 = vadd.f32 %v299_v26, %v283_v42  ;;  %vm246_vm6 = vcmp.gt.f32.partialorder %v192_v35, 0.0  ;;  %v262_v45 = vmul.f32 0.1, %v192_v35  ;;  %v303_v23 = vld [vmem:[%s622_s3 + $0x60] sm:$0xff]  ;;  %v298_v24 = vld [vmem:[%s622_s3 + $0x38] sm:$0xff] }
  0xf1   :  { %325 = vst [vmem:[%s623_s4 + $0x10] sm:$0xff] %v309_v39  ;;  %333 = vst [vmem:[%s623_s4 + $0x50] sm:$0xff] %v317_v40  ;;  %vm254_vm7 = vcmp.gt.f32.partialorder %v224_v36, 0.0  ;;  %v270_v47 = vmul.f32 0.1, %v224_v36  ;;  %v184_v49 = vadd.f32 %v504_v14, %v183_v37  ;;  %v216_v50 = vadd.f32 %v504_v14, %v215_v38  ;;  %v394_v51 = vpop.f32.mrb[4].mxu0 }
  0xf2   :  { %v402_v52 = vpop.f32.mrb[4].mxu1  ;;  %323 = vst [vmem:[%s623_s4] sm:$0xff] %v307_v43  ;;  %331 = vst [vmem:[%s623_s4 + $0x40] sm:$0xff] %v315_v44  ;;  %v278_v53 = vsel %vm246_vm6, %v192_v35, %v262_v45  ;;  %v205_v56 = vadd.f32 %v394_v51, %v504_v14  ;;  %v196_v58 = vpop.f32.mrb[5].mxu0  ;;  %v306_v37 = vld [vmem:[%s622_s3 + $0x78] sm:$0xff]  ;;  %v296_v38 = vld [vmem:[%s622_s3 + $0x28] sm:$0xff] }
  0xf3   :  { %v237_v57 = vadd.f32 %v402_v52, %v504_v14  ;;  %v228_v59 = vpop.f32.mrb[5].mxu1  ;;  %v310_v60 = vadd.f32 %v294_v46, %v278_v53  ;;  %v286_v61 = vsel %vm254_vm7, %v224_v36, %v270_v47  ;;  %vm244_vm8 = vcmp.gt.f32.partialorder %v184_v49, 0.0  ;;  %v395_v0 = vpop.f32.mrb[6].mxu0  ;;  %v304_v39 = vld [vmem:[%s622_s3 + $0x68] sm:$0xff] }
  0xf4   :  { %v260_v62 = vmul.f32 0.1, %v184_v49  ;;  %v403_v1 = vpop.f32.mrb[6].mxu1  ;;  %v318_v2 = vadd.f32 %v302_v48, %v286_v61  ;;  %vm252_vm9 = vcmp.gt.f32.partialorder %v216_v50, 0.0  ;;  %v268_v3 = vmul.f32 0.1, %v216_v50 }
  0xf5   :  { %vm249_vm10 = vcmp.gt.f32.partialorder %v205_v56, 0.0  ;;  %v199_v4 = vpop.f32.mrb[7].mxu0  ;;  %v231_v5 = vpop.f32.mrb[7].mxu1  ;;  %326 = vst [vmem:[%s623_s4 + $0x18] sm:$0xff] %v310_v60  ;;  %v265_v7 = vmul.f32 0.1, %v205_v56  ;;  %v197_v12 = vadd.f32 %v504_v14, %v196_v58  ;;  %v229_v13 = vadd.f32 %v504_v14, %v228_v59 }
  0xf6   :  { %v276_v6 = vsel %vm244_vm8, %v184_v49, %v260_v62  ;;  %vm257_vm11 = vcmp.gt.f32.partialorder %v237_v57, 0.0  ;;  %v273_v8 = vmul.f32 0.1, %v237_v57  ;;  %334 = vst [vmem:[%s623_s4 + $0x58] sm:$0xff] %v318_v2  ;;  %v284_v11 = vsel %vm252_vm9, %v216_v50, %v268_v3 }
  0xf7   :  { %v308_v10 = vadd.f32 %v292_v54, %v276_v6  ;;  %v316_v15 = vadd.f32 %v300_v55, %v284_v11  ;;  %v281_v16 = vsel %vm249_vm10, %v205_v56, %v265_v7  ;;  %v208_v18 = vadd.f32 %v395_v0, %v504_v14 }
  0xf8   :  { %v289_v17 = vsel %vm257_vm11, %v237_v57, %v273_v8  ;;  %v313_v19 = vadd.f32 %v297_v63, %v281_v16  ;;  %vm247_vm12 = vcmp.gt.f32.partialorder %v197_v12, 0.0  ;;  %v263_v21 = vmul.f32 0.1, %v197_v12 }
  0xf9   :  { %324 = vst [vmem:[%s623_s4 + $0x8] sm:$0xff] %v308_v10  ;;  %v321_v20 = vadd.f32 %v305_v9, %v289_v17  ;;  %332 = vst [vmem:[%s623_s4 + $0x48] sm:$0xff] %v316_v15  ;;  %vm255_vm13 = vcmp.gt.f32.partialorder %v229_v13, 0.0  ;;  %v271_v25 = vmul.f32 0.1, %v229_v13  ;;  %vm250_vm14 = vcmp.gt.f32.partialorder %v208_v18, 0.0 }
  0xfa   :  { %v266_v26 = vmul.f32 0.1, %v208_v18  ;;  %329 = vst [vmem:[%s623_s4 + $0x30] sm:$0xff] %v313_v19  ;;  %v279_v27 = vsel %vm247_vm12, %v197_v12, %v263_v21  ;;  %v240_v28 = vadd.f32 %v403_v1, %v504_v14  ;;  %v200_v29 = vadd.f32 %v504_v14, %v199_v4 }
  0xfb   :  { %337 = vst [vmem:[%s623_s4 + $0x70] sm:$0xff] %v321_v20  ;;  %v232_v30 = vadd.f32 %v504_v14, %v231_v5  ;;  %v311_v31 = vadd.f32 %v295_v22, %v279_v27  ;;  %v287_v32 = vsel %vm255_vm13, %v229_v13, %v271_v25 }
  0xfc   :  { %v282_v33 = vsel %vm250_vm14, %v208_v18, %v266_v26  ;;  %v319_v34 = vadd.f32 %v303_v23, %v287_v32  ;;  %vm258_vm15 = vcmp.gt.f32.partialorder %v240_v28, 0.0  ;;  %v274_v36 = vmul.f32 0.1, %v240_v28 }
  0xfd   :  { %v314_v35 = vadd.f32 %v298_v24, %v282_v33  ;;  %327 = vst [vmem:[%s623_s4 + $0x20] sm:$0xff] %v311_v31  ;;  %vm248_vm0 = vcmp.gt.f32.partialorder %v200_v29, 0.0  ;;  %v264_v14 = vmul.f32 0.1, %v200_v29  ;;  %vm256_vm1 = vcmp.gt.f32.partialorder %v232_v30, 0.0 }
  0xfe   :  { %v272_v40 = vmul.f32 0.1, %v232_v30  ;;  %335 = vst [vmem:[%s623_s4 + $0x60] sm:$0xff] %v319_v34  ;;  %v290_v41 = vsel %vm258_vm15, %v240_v28, %v274_v36 }
  0xff   :  { %330 = vst [vmem:[%s623_s4 + $0x38] sm:$0xff] %v314_v35  ;;  %v322_v42 = vadd.f32 %v306_v37, %v290_v41  ;;  %v280_v43 = vsel %vm248_vm0, %v200_v29, %v264_v14 }
 0x100   :  { %v288_v44 = vsel %vm256_vm1, %v232_v30, %v272_v40  ;;  %v312_v45 = vadd.f32 %v296_v38, %v280_v43 }
 0x101   :  { %v320_v46 = vadd.f32 %v304_v39, %v288_v44  ;;  %338 = vst [vmem:[%s623_s4 + $0x78] sm:$0xff] %v322_v42 }
 0x102   :  { %328 = vst [vmem:[%s623_s4 + $0x28] sm:$0xff] %v312_v45 }
 0x103   :  { %336 = vst [vmem:[%s623_s4 + $0x68] sm:$0xff] %v320_v46 }

// kernel: _lambda_.68
= control target key start
LH: loop header
LB: loop body
LE: loop exit
PB: predicated region body
PF: predicated region fallthrough
CT: control target
= control target key end

     0   :  { %v242_v0 = vmov 0   ;;  %vm116_vm0 = vcmask 130048   ;;  %s317_s1 = inlined_call_operand.vmem [shape: bf16[144,128], index: 1, kind: input, shape index: {}]   ;;  %s318_s0 = inlined_call_operand.vmem [shape: bf16[32,144], index: 0, kind: input, shape index: {}]   ;;  %s319_s2 = inlined_call_operand.vmem [shape: f32[1,128], index: 2, kind: input, shape index: {}]   ;;  %s320_s3 = inlined_call_operand.vmem [shape: f32[32,128], index: 3, kind: output, shape index: {}]  }
   0x1   :  { %123 = vmatprep.subr.bf16.mxu0 %v242_v0  ;;  %208 = vmatprep.subr.bf16.mxu1 %v242_v0  ;;  %v227_v1 = vld [vmem:[%s317_s1] sm:$0xff]   ;;  %v228_v2 = vld [vmem:[%s317_s1 + $0x8] sm:$0xff]   ;;  %v229_v3 = vld [vmem:[%s317_s1 + $0x10] sm:$0xff]  }
   0x2   :  { %124 = vmatpush1.bf16.msra.mxu0 %v227_v1  ;;  %217 = vmatpush1.bf16.msra.mxu1 %v227_v1  ;;  %v230_v4 = vld [vmem:[%s317_s1 + $0x18] sm:$0xff]   ;;  %v238_v5 = vld [vmem:[%s318_s0 + $0x4] ss:$8 sps:$4 sm:$0xff]   ;;  %v233_v9 = vld [vmem:[%s317_s1 + $0x30] sm:$0xff]  }
   0x3   :  { %125 = vmatprep.subr.bf16.mxu0 %v242_v0  ;;  %209 = vmatprep.subr.bf16.mxu1 %v242_v0  ;;  %v241_v6 = vld [vmem:[%s318_s0 + $0x14] ss:$8 sps:$4 sm:$0xff]   ;;  %v231_v7 = vld [vmem:[%s317_s1 + $0x20] sm:$0xff]   ;;  %v232_v8 = vld [vmem:[%s317_s1 + $0x28] sm:$0xff]  }
   0x4   :  { %206 = vmatprep.mubr.msk.bf16.mxu0 %vm116_vm0, %v238_v5  ;;  %207 = vmatprep.mubr.msk.bf16.mxu1 %vm116_vm0, %v241_v6  ;;  %v234_v10 = vld [vmem:[%s317_s1 + $0x38] sm:$0xff]   ;;  %v235_v11 = vld [vmem:[%s317_s1 + $0x40] sm:$0xff]  }
   0x5   :  { %v236_v12 = vld [vmem:[%s318_s0] ss:$8 sps:$4 sm:$0xff]   ;;  %v239_v13 = vld [vmem:[%s318_s0 + $0x10] ss:$8 sps:$4 sm:$0xff]  }
   0x6   :  { %126 = vmatpush1.bf16.msra.mxu0 %v228_v2  ;;  %218 = vmatpush1.bf16.msra.mxu1 %v228_v2  ;;  %v192_v14 = vld [vmem:[%s319_s2] ss:$0 sm:$0xff] }
   0x7   :  { %127 = vmatprep.subr.bf16.mxu0 %v242_v0  ;;  %210 = vmatprep.subr.bf16.mxu1 %v242_v0 }
   0xa   :  { %128 = vmatpush1.bf16.msra.mxu0 %v229_v3  ;;  %219 = vmatpush1.bf16.msra.mxu1 %v229_v3 }
   0xb   :  { %129 = vmatprep.subr.bf16.mxu0 %v242_v0  ;;  %211 = vmatprep.subr.bf16.mxu1 %v242_v0 }
   0xe   :  { %130 = vmatpush1.bf16.msra.mxu0 %v230_v4  ;;  %220 = vmatpush1.bf16.msra.mxu1 %v230_v4 }
   0xf   :  { %131 = vmatprep.subr.bf16.mxu0 %v242_v0  ;;  %212 = vmatprep.subr.bf16.mxu1 %v242_v0 }
  0x12   :  { %132 = vmatpush1.bf16.msra.mxu0 %v231_v7  ;;  %221 = vmatpush1.bf16.msra.mxu1 %v231_v7 }
  0x13   :  { %133 = vmatprep.subr.bf16.mxu0 %v242_v0  ;;  %213 = vmatprep.subr.bf16.mxu1 %v242_v0 }
  0x16   :  { %134 = vmatpush1.bf16.msra.mxu0 %v232_v8  ;;  %222 = vmatpush1.bf16.msra.mxu1 %v232_v8 }
  0x17   :  { %135 = vmatprep.subr.bf16.mxu0 %v242_v0  ;;  %214 = vmatprep.subr.bf16.mxu1 %v242_v0 }
  0x1a   :  { %136 = vmatpush1.bf16.msra.mxu0 %v233_v9  ;;  %223 = vmatpush1.bf16.msra.mxu1 %v233_v9 }
  0x1b   :  { %137 = vmatprep.subr.bf16.mxu0 %v242_v0  ;;  %215 = vmatprep.subr.bf16.mxu1 %v242_v0 }
  0x1e   :  { %138 = vmatpush1.bf16.msra.mxu0 %v234_v10  ;;  %224 = vmatpush1.bf16.msra.mxu1 %v234_v10 }
  0x1f   :  { %139 = vmatprep.subr.bf16.mxu0 %v242_v0  ;;  %216 = vmatprep.subr.bf16.mxu1 %v242_v0 }
  0x22   :  { %140 = vmatpush1.bf16.msra.mxu0 %v235_v11  ;;  %225 = vmatpush1.bf16.msra.mxu1 %v235_v11 }
  0x25   :  { %156 = vmatmul.mubr.bf16.vlgmr.msra.gmra.mrb[0].mxu0 %v236_v12  ;;  %164 = vmatmul.mubr.bf16.vlgmr.msra.gmra.mrb[0].mxu1 %v239_v13 }
  0xf8   :  { %v157_v15 = vpop.f32.mrb[0].mxu0  ;;  %v165_v16 = vpop.f32.mrb[0].mxu1 }
  0xf9   :  { %v158_v17 = vadd.f32 %v192_v14, %v157_v15  ;;  %v166_v18 = vadd.f32 %v192_v14, %v165_v16  ;;  %v159_v19 = vpop.f32.mrb[1].mxu0  ;;  %v167_v20 = vpop.f32.mrb[1].mxu1 }
  0xfa   :  { %v160_v21 = vpop.f32.mrb[2].mxu0  ;;  %v168_v22 = vpop.f32.mrb[2].mxu1 }
  0xfb   :  { %vm172_vm1 = vcmp.gt.f32.partialorder %v158_v17, 0.0  ;;  %v176_v23 = vmul.f32 0.1, %v158_v17  ;;  %vm174_vm2 = vcmp.gt.f32.partialorder %v166_v18, 0.0  ;;  %v178_v24 = vmul.f32 0.1, %v166_v18 }
  0xfc   :  { %v161_v25 = vadd.f32 %v192_v14, %v160_v21  ;;  %v169_v26 = vadd.f32 %v192_v14, %v168_v22  ;;  %v162_v27 = vpop.f32.mrb[3].mxu0  ;;  %v170_v28 = vpop.f32.mrb[3].mxu1 }
  0xfd   :  { %v180_v29 = vsel %vm172_vm1, %v158_v17, %v176_v23  ;;  %v182_v30 = vsel %vm174_vm2, %v166_v18, %v178_v24 }
  0xfe   :  { %184 = vst [vmem:[%s320_s3] sm:$0xff] %v180_v29  ;;  %186 = vst [vmem:[%s320_s3 + $0x10] sm:$0xff] %v182_v30  ;;  %vm173_vm3 = vcmp.gt.f32.partialorder %v161_v25, 0.0  ;;  %v177_v31 = vmul.f32 0.1, %v161_v25  ;;  %vm175_vm4 = vcmp.gt.f32.partialorder %v169_v26, 0.0 }
  0xff   :  { %v179_v32 = vmul.f32 0.1, %v169_v26 }
 0x100   :  { %v181_v33 = vsel %vm173_vm3, %v161_v25, %v177_v31 }
 0x101   :  { %v183_v34 = vsel %vm175_vm4, %v169_v26, %v179_v32  ;;  %185 = vst [vmem:[%s320_s3 + $0x8] sm:$0xff] %v181_v33 }
 0x102   :  { %187 = vst [vmem:[%s320_s3 + $0x18] sm:$0xff] %v183_v34 }

// kernel: _lambda_.69
= control target key start
LH: loop header
LB: loop body
LE: loop exit
PB: predicated region body
PF: predicated region fallthrough
CT: control target
= control target key end

     0   :  { %vm52_vm0 = vcmask 261120   ;;  %s198_s1 = inlined_call_operand.vmem [shape: bf16[32,128], index: 1, kind: input, shape index: {}]   ;;  %s199_s0 = inlined_call_operand.vmem [shape: bf16[32,32], index: 0, kind: input, shape index: {}]   ;;  %s200_s2 = inlined_call_operand.vmem [shape: f32[1,128], index: 2, kind: input, shape index: {}]   ;;  %s201_s3 = inlined_call_operand.vmem [shape: f32[32,128], index: 3, kind: output, shape index: {}]  }
   0x1   :  { %v147_v0 = vld [vmem:[%s198_s1] sm:$0xff]   ;;  %v148_v1 = vld [vmem:[%s198_s1 + $0x8] sm:$0xff]  }
   0x2   :  { %139 = vmatprep.subr.bf16.mxu0 %v147_v0  ;;  %v149_v2 = vld [vmem:[%s199_s0] sm:$0xff]   ;;  %v150_v3 = vld [vmem:[%s199_s0 + $0x8] sm:$0xff]  }
   0x3   :  { %140 = vmatpush3.bf16.msra.mxu0 %v147_v0  ;;  %143 = vmatprep.mubr.msk.bf16.mxu0 %vm52_vm0, %v149_v2  ;;  %v128_v4 = vld [vmem:[%s200_s2] ss:$0 sm:$0xff] }
   0x4   :  { %141 = vmatprep.subr.bf16.mxu0 %v148_v1 }
   0x7   :  { %142 = vmatpush3.bf16.msra.mxu0 %v148_v1 }
   0xa   :  { %144 = vmatmul.mubr.msk.bf16.vlgmr.msra.gmra.mrb[0].mxu0 %vm52_vm0, %v150_v3 }
  0xdd   :  { %v145_v5 = vpop.f32.mrb[0].mxu0 }
  0xde   :  { %v102_v6 = vadd.f32 %v145_v5, %v128_v4  ;;  %v93_v7 = vpop.f32.mrb[1].mxu0 }
  0xdf   :  { %v94_v8 = vadd.f32 %v128_v4, %v93_v7  ;;  %v146_v9 = vpop.f32.mrb[2].mxu0 }
  0xe0   :  { %vm110_vm1 = vcmp.gt.f32.partialorder %v102_v6, 0.0  ;;  %v114_v10 = vmul.f32 0.1, %v102_v6  ;;  %v105_v11 = vadd.f32 %v146_v9, %v128_v4  ;;  %v96_v12 = vpop.f32.mrb[3].mxu0 }
  0xe1   :  { %vm108_vm2 = vcmp.gt.f32.partialorder %v94_v8, 0.0  ;;  %v112_v13 = vmul.f32 0.1, %v94_v8  ;;  %v97_v14 = vadd.f32 %v128_v4, %v96_v12 }
  0xe2   :  { %v118_v15 = vsel %vm110_vm1, %v102_v6, %v114_v10  ;;  %vm111_vm3 = vcmp.gt.f32.partialorder %v105_v11, 0.0  ;;  %v115_v16 = vmul.f32 0.1, %v105_v11 }
  0xe3   :  { %122 = vst [vmem:[%s201_s3 + $0x10] sm:$0xff] %v118_v15  ;;  %v116_v17 = vsel %vm108_vm2, %v94_v8, %v112_v13  ;;  %vm109_vm4 = vcmp.gt.f32.partialorder %v97_v14, 0.0  ;;  %v113_v18 = vmul.f32 0.1, %v97_v14 }
  0xe4   :  { %120 = vst [vmem:[%s201_s3] sm:$0xff] %v116_v17  ;;  %v119_v19 = vsel %vm111_vm3, %v105_v11, %v115_v16 }
  0xe5   :  { %123 = vst [vmem:[%s201_s3 + $0x18] sm:$0xff] %v119_v19  ;;  %v117_v20 = vsel %vm109_vm4, %v97_v14, %v113_v18 }
  0xe6   :  { %121 = vst [vmem:[%s201_s3 + $0x8] sm:$0xff] %v117_v20 }

// kernel: _lambda_.70
= control target key start
LH: loop header
LB: loop body
LE: loop exit
PB: predicated region body
PF: predicated region fallthrough
CT: control target
= control target key end

     0   :  { %v253_v0 = vmov 0   ;;  %vm119_vm0 = vcmask 130048   ;;  %s345_s1 = inlined_call_operand.vmem [shape: bf16[144,128], index: 1, kind: input, shape index: {}]   ;;  %s346_s0 = inlined_call_operand.vmem [shape: bf16[32,144], index: 0, kind: input, shape index: {}]   ;;  %s347_s2 = inlined_call_operand.vmem [shape: f32[1,128], index: 2, kind: input, shape index: {}]   ;;  %s348_s3 = inlined_call_operand.vmem [shape: f32[32,128], index: 3, kind: input, shape index: {}]   ;;  %s349_s4 = inlined_call_operand.vmem [shape: f32[32,128], index: 4, kind: output, shape index: {}]  }
   0x1   :  { %126 = vmatprep.subr.bf16.mxu0 %v253_v0  ;;  %219 = vmatprep.subr.bf16.mxu1 %v253_v0  ;;  %v238_v1 = vld [vmem:[%s345_s1] sm:$0xff]   ;;  %v239_v2 = vld [vmem:[%s345_s1 + $0x8] sm:$0xff]   ;;  %v240_v3 = vld [vmem:[%s345_s1 + $0x10] sm:$0xff]  }
   0x2   :  { %127 = vmatpush1.bf16.msra.mxu0 %v238_v1  ;;  %228 = vmatpush1.bf16.msra.mxu1 %v238_v1  ;;  %v241_v4 = vld [vmem:[%s345_s1 + $0x18] sm:$0xff]   ;;  %v249_v5 = vld [vmem:[%s346_s0 + $0x4] ss:$8 sps:$4 sm:$0xff]   ;;  %v244_v9 = vld [vmem:[%s345_s1 + $0x30] sm:$0xff]  }
   0x3   :  { %128 = vmatprep.subr.bf16.mxu0 %v253_v0  ;;  %220 = vmatprep.subr.bf16.mxu1 %v253_v0  ;;  %v252_v6 = vld [vmem:[%s346_s0 + $0x14] ss:$8 sps:$4 sm:$0xff]   ;;  %v242_v7 = vld [vmem:[%s345_s1 + $0x20] sm:$0xff]   ;;  %v243_v8 = vld [vmem:[%s345_s1 + $0x28] sm:$0xff]  }
   0x4   :  { %217 = vmatprep.mubr.msk.bf16.mxu0 %vm119_vm0, %v249_v5  ;;  %218 = vmatprep.mubr.msk.bf16.mxu1 %vm119_vm0, %v252_v6  ;;  %v245_v10 = vld [vmem:[%s345_s1 + $0x38] sm:$0xff]   ;;  %v246_v11 = vld [vmem:[%s345_s1 + $0x40] sm:$0xff]   ;;  %v189_v22 = vld [vmem:[%s348_s3 + $0x10] sm:$0xff] }
   0x5   :  { %v247_v12 = vld [vmem:[%s346_s0] ss:$8 sps:$4 sm:$0xff]   ;;  %v250_v13 = vld [vmem:[%s346_s0 + $0x10] ss:$8 sps:$4 sm:$0xff]  }
   0x6   :  { %129 = vmatpush1.bf16.msra.mxu0 %v239_v2  ;;  %229 = vmatpush1.bf16.msra.mxu1 %v239_v2  ;;  %v203_v14 = vld [vmem:[%s347_s2] ss:$0 sm:$0xff]  ;;  %v188_v36 = vld [vmem:[%s348_s3 + $0x8] sm:$0xff]  ;;  %v190_v38 = vld [vmem:[%s348_s3 + $0x18] sm:$0xff] }
   0x7   :  { %130 = vmatprep.subr.bf16.mxu0 %v253_v0  ;;  %221 = vmatprep.subr.bf16.mxu1 %v253_v0  ;;  %v187_v21 = vld [vmem:[%s348_s3] sm:$0xff] }
   0xa   :  { %131 = vmatpush1.bf16.msra.mxu0 %v240_v3  ;;  %230 = vmatpush1.bf16.msra.mxu1 %v240_v3 }
   0xb   :  { %132 = vmatprep.subr.bf16.mxu0 %v253_v0  ;;  %222 = vmatprep.subr.bf16.mxu1 %v253_v0 }
   0xe   :  { %133 = vmatpush1.bf16.msra.mxu0 %v241_v4  ;;  %231 = vmatpush1.bf16.msra.mxu1 %v241_v4 }
   0xf   :  { %134 = vmatprep.subr.bf16.mxu0 %v253_v0  ;;  %223 = vmatprep.subr.bf16.mxu1 %v253_v0 }
  0x12   :  { %135 = vmatpush1.bf16.msra.mxu0 %v242_v7  ;;  %232 = vmatpush1.bf16.msra.mxu1 %v242_v7 }
  0x13   :  { %136 = vmatprep.subr.bf16.mxu0 %v253_v0  ;;  %224 = vmatprep.subr.bf16.mxu1 %v253_v0 }
  0x16   :  { %137 = vmatpush1.bf16.msra.mxu0 %v243_v8  ;;  %233 = vmatpush1.bf16.msra.mxu1 %v243_v8 }
  0x17   :  { %138 = vmatprep.subr.bf16.mxu0 %v253_v0  ;;  %225 = vmatprep.subr.bf16.mxu1 %v253_v0 }
  0x1a   :  { %139 = vmatpush1.bf16.msra.mxu0 %v244_v9  ;;  %234 = vmatpush1.bf16.msra.mxu1 %v244_v9 }
  0x1b   :  { %140 = vmatprep.subr.bf16.mxu0 %v253_v0  ;;  %226 = vmatprep.subr.bf16.mxu1 %v253_v0 }
  0x1e   :  { %141 = vmatpush1.bf16.msra.mxu0 %v245_v10  ;;  %235 = vmatpush1.bf16.msra.mxu1 %v245_v10 }
  0x1f   :  { %142 = vmatprep.subr.bf16.mxu0 %v253_v0  ;;  %227 = vmatprep.subr.bf16.mxu1 %v253_v0 }
  0x22   :  { %143 = vmatpush1.bf16.msra.mxu0 %v246_v11  ;;  %236 = vmatpush1.bf16.msra.mxu1 %v246_v11 }
  0x25   :  { %159 = vmatmul.mubr.bf16.vlgmr.msra.gmra.mrb[0].mxu0 %v247_v12  ;;  %167 = vmatmul.mubr.bf16.vlgmr.msra.gmra.mrb[0].mxu1 %v250_v13 }
  0xf8   :  { %v160_v15 = vpop.f32.mrb[0].mxu0  ;;  %v168_v16 = vpop.f32.mrb[0].mxu1 }
  0xf9   :  { %v161_v17 = vadd.f32 %v203_v14, %v160_v15  ;;  %v169_v18 = vadd.f32 %v203_v14, %v168_v16  ;;  %v162_v19 = vpop.f32.mrb[1].mxu0  ;;  %v170_v20 = vpop.f32.mrb[1].mxu1 }
  0xfa   :  { %v163_v23 = vpop.f32.mrb[2].mxu0  ;;  %v171_v24 = vpop.f32.mrb[2].mxu1 }
  0xfb   :  { %vm175_vm1 = vcmp.gt.f32.partialorder %v161_v17, 0.0  ;;  %v179_v25 = vmul.f32 0.1, %v161_v17  ;;  %vm177_vm2 = vcmp.gt.f32.partialorder %v169_v18, 0.0  ;;  %v181_v26 = vmul.f32 0.1, %v169_v18 }
  0xfc   :  { %v164_v27 = vadd.f32 %v203_v14, %v163_v23  ;;  %v172_v28 = vadd.f32 %v203_v14, %v171_v24  ;;  %v165_v29 = vpop.f32.mrb[3].mxu0  ;;  %v173_v30 = vpop.f32.mrb[3].mxu1 }
  0xfd   :  { %v183_v31 = vsel %vm175_vm1, %v161_v17, %v179_v25  ;;  %v185_v32 = vsel %vm177_vm2, %v169_v18, %v181_v26 }
  0xfe   :  { %v191_v33 = vadd.f32 %v187_v21, %v183_v31  ;;  %v193_v34 = vadd.f32 %v189_v22, %v185_v32  ;;  %vm176_vm3 = vcmp.gt.f32.partialorder %v164_v27, 0.0  ;;  %v180_v35 = vmul.f32 0.1, %v164_v27 }
  0xff   :  { %vm178_vm4 = vcmp.gt.f32.partialorder %v172_v28, 0.0  ;;  %v182_v37 = vmul.f32 0.1, %v172_v28 }
 0x100   :  { %195 = vst [vmem:[%s349_s4] sm:$0xff] %v191_v33  ;;  %197 = vst [vmem:[%s349_s4 + $0x10] sm:$0xff] %v193_v34  ;;  %v184_v39 = vsel %vm176_vm3, %v164_v27, %v180_v35 }
 0x101   :  { %v192_v40 = vadd.f32 %v188_v36, %v184_v39  ;;  %v186_v41 = vsel %vm178_vm4, %v172_v28, %v182_v37 }
 0x102   :  { %v194_v42 = vadd.f32 %v190_v38, %v186_v41 }
 0x103   :  { %196 = vst [vmem:[%s349_s4 + $0x8] sm:$0xff] %v192_v40 }
 0x104   :  { %198 = vst [vmem:[%s349_s4 + $0x18] sm:$0xff] %v194_v42 }

// kernel: _lambda_.86
= control target key start
LH: loop header
LB: loop body
LE: loop exit
PB: predicated region body
PF: predicated region fallthrough
CT: control target
= control target key end

     0   :  { %v136_v0 = vmov 0.0   ;;  %vm137_vm0 = vmmov 0   ;;  %vm55_vm1 = vcmask 523264   ;;  %s179_s1 = inlined_call_operand.vmem [shape: bf16[64,128], index: 1, kind: input, shape index: {}]   ;;  %s180_s0 = inlined_call_operand.vmem [shape: bf16[8,64], index: 0, kind: input, shape index: {}]   ;;  %s181_s2 = inlined_call_operand.vmem [shape: f32[1,128], index: 2, kind: input, shape index: {}]   ;;  %s182_s3 = inlined_call_operand.vmem [shape: f32[8,128], index: 3, kind: output, shape index: {}]  }
   0x1   :  { %118 = vmatprep.subr.bf16.mxu0 %v136_v0  ;;  %v132_v1 = vld [vmem:[%s179_s1] sm:$0xff]   ;;  %126 = vmatprep.mubr.msk.bf16.mxu0 %vm137_vm0, %v136_v0  ;;  %v133_v2 = vld [vmem:[%s179_s1 + $0x8] sm:$0xff]   ;;  %v134_v3 = vld [vmem:[%s179_s1 + $0x10] sm:$0xff]  }
   0x2   :  { %119 = vmatpush3.bf16.msra.mxu0 %v132_v1  ;;  %v135_v4 = vld [vmem:[%s179_s1 + $0x18] sm:$0xff]   ;;  %v15_v5 = vld [vmem:[%s180_s0] sm:$0xf] }
   0x3   :  { %120 = vmatprep.subr.bf16.mxu0 %v136_v0  ;;  %v107_v6 = vld [vmem:[%s181_s2] ss:$0 sm:$0xff] }
   0x6   :  { %121 = vmatpush3.bf16.msra.mxu0 %v133_v2 }
   0x7   :  { %122 = vmatprep.subr.bf16.mxu0 %v136_v0 }
   0xa   :  { %123 = vmatpush3.bf16.msra.mxu0 %v134_v3 }
   0xb   :  { %124 = vmatprep.subr.bf16.mxu0 %v136_v0 }
   0xe   :  { %125 = vmatpush3.bf16.msra.mxu0 %v135_v4 }
  0x11   :  { %127 = vmatmul.mubr.msk.bf16.vlgmr.msra.gmra.mrb[0].mxu0 %vm55_vm1, %v15_v5 }
  0xe4   :  { %v93_v7 = vpop.f32.mrb[0].mxu0 }
  0xe5   :  { %v94_v8 = vadd.f32 %v107_v6, %v93_v7  ;;  %v128_v9 = vpop.f32.mrb[1].mxu0 }
  0xe6   :  { %v96_v10 = vpop.f32.mrb[2].mxu0 }
  0xe7   :  { %vm99_vm2 = vcmp.gt.f32.partialorder %v94_v8, 0.0  ;;  %v100_v11 = vmul.f32 0.1, %v94_v8  ;;  %v129_v12 = vpop.f32.mrb[3].mxu0 }
  0xe9   :  { %v101_v13 = vsel %vm99_vm2, %v94_v8, %v100_v11 }
  0xea   :  { %102 = vst [vmem:[%s182_s3] sm:$0xff] %v101_v13 }

// kernel: _lambda_.85
= control target key start
LH: loop header
LB: loop body
LE: loop exit
PB: predicated region body
PF: predicated region fallthrough
CT: control target
= control target key end

     0   :  { %v349_v1 = vmov 0.0   ;;  %vm350_vm0 = vmmov 0   ;;  %vm178_vm1 = vcmask 261120   ;;  %s437_s1 = inlined_call_operand.vmem [shape: bf16[288,128], index: 1, kind: input, shape index: {}]   ;;  %s438_s0 = inlined_call_operand.vmem [shape: bf16[8,288], index: 0, kind: input, shape index: {}]   ;;  %s439_s2 = inlined_call_operand.vmem [shape: f32[1,128], index: 2, kind: input, shape index: {}]   ;;  %s440_s3 = inlined_call_operand.vmem [shape: f32[8,128], index: 3, kind: output, shape index: {}]  }
   0x1   :  { %v328_v0 = vld [vmem:[%s437_s1 + $0x40] sm:$0xff]   ;;  %318 = vmatprep.subr.bf16.mxu1 %v349_v1  ;;  %322 = vmatprep.mubr.msk.bf16.mxu1 %vm350_vm0, %v349_v1  ;;  %v330_v3 = vld [vmem:[%s437_s1 + $0x48] sm:$0xff]   ;;  %v332_v5 = vld [vmem:[%s437_s1 + $0x50] sm:$0xff]  }
   0x2   :  { %v329_v2 = vld [vmem:[%s437_s1] sm:$0xff]   ;;  %293 = vmatprep.subr.bf16.mxu0 %v328_v0  ;;  %v331_v4 = vld [vmem:[%s437_s1 + $0x8] sm:$0xff]   ;;  %v333_v6 = vld [vmem:[%s437_s1 + $0x10] sm:$0xff]  }
   0x3   :  { %294 = vmatpush3.bf16.msra.mxu0 %v329_v2  ;;  %v334_v7 = vld [vmem:[%s437_s1 + $0x58] sm:$0xff]   ;;  %v336_v9 = vld [vmem:[%s437_s1 + $0x60] sm:$0xff]   ;;  %v338_v12 = vld [vmem:[%s437_s1 + $0x68] sm:$0xff]  }
   0x4   :  { %295 = vmatprep.subr.bf16.mxu0 %v330_v3  ;;  %v335_v8 = vld [vmem:[%s437_s1 + $0x18] sm:$0xff]   ;;  %v342_v10 = vld [vmem:[%s437_s1 + $0x80] sm:$0xff]   ;;  %v348_v15 = vld [vmem:[%s437_s1 + $0x88] sm:$0xff]  }
   0x5   :  { %v337_v11 = vld [vmem:[%s437_s1 + $0x20] sm:$0xff]   ;;  %319 = vmatpush3.bf16.msra.mxu1 %v342_v10  ;;  %v339_v16 = vld [vmem:[%s437_s1 + $0x28] sm:$0xff]   ;;  %v340_v17 = vld [vmem:[%s437_s1 + $0x70] sm:$0xff]  }
   0x6   :  { %320 = vmatprep.subr.bf16.mxu1 %v349_v1  ;;  %v15_v13 = vld [vmem:[%s438_s0] sm:$0xff]  ;;  %v347_v18 = vld [vmem:[%s438_s0 + $0x8] ss:$0 sps:$4 sm:$0xff]   ;;  %v341_v19 = vld [vmem:[%s437_s1 + $0x30] sm:$0xff]  }
   0x7   :  { %296 = vmatpush3.bf16.msra.mxu0 %v331_v4  ;;  %v272_v14 = vcombine.high %v15_v13, %v15_v13  ;;  %v343_v20 = vld [vmem:[%s437_s1 + $0x78] sm:$0xff]   ;;  %v271_v22 = vcombine.low %v15_v13, %v15_v13  ;;  %v270_v29 = vld [vmem:[%s439_s2] ss:$0 sm:$0xff] }
   0x8   :  { %297 = vmatprep.subr.bf16.mxu0 %v332_v5  ;;  %v344_v21 = vld [vmem:[%s437_s1 + $0x38] sm:$0xff]  }
   0x9   :  { %214 = vmatprep.mubr.bf16.mxu0 %v272_v14  ;;  %321 = vmatpush3.bf16.msra.mxu1 %v348_v15 }
   0xb   :  { %298 = vmatpush3.bf16.msra.mxu0 %v333_v6 }
   0xc   :  { %299 = vmatprep.subr.bf16.mxu0 %v334_v7  ;;  %323 = vmatmul.mubr.msk.bf16.vlgmr.msra.gmra.mrb[0].mxu1 %vm178_vm1, %v347_v18 }
   0xf   :  { %300 = vmatpush3.bf16.msra.mxu0 %v335_v8 }
  0x10   :  { %301 = vmatprep.subr.bf16.mxu0 %v336_v9 }
  0x13   :  { %302 = vmatpush3.bf16.msra.mxu0 %v337_v11 }
  0x14   :  { %303 = vmatprep.subr.bf16.mxu0 %v338_v12 }
  0x17   :  { %304 = vmatpush3.bf16.msra.mxu0 %v339_v16 }
  0x18   :  { %305 = vmatprep.subr.bf16.mxu0 %v340_v17 }
  0x1b   :  { %306 = vmatpush3.bf16.msra.mxu0 %v341_v19 }
  0x1c   :  { %307 = vmatprep.subr.bf16.mxu0 %v343_v20 }
  0x1f   :  { %308 = vmatpush3.bf16.msra.mxu0 %v344_v21 }
  0x22   :  { %215 = vmatmul.mubr.bf16.vlgmr.msra.gmra.mrb[0].mxu0 %v271_v22 }
  0xdf   :  { %v256_v23 = vpop.f32.mrb[0].mxu1 }
  0xe0   :  { %v324_v24 = vpop.f32.mrb[1].mxu1 }
  0xe1   :  { %v259_v25 = vpop.f32.mrb[2].mxu1 }
  0xe2   :  { %v325_v26 = vpop.f32.mrb[3].mxu1 }
  0xf5   :  { %v309_v27 = vpop.f32.mrb[0].mxu0 }
  0xf6   :  { %v310_v28 = vpop.f32.mrb[1].mxu0 }
  0xf7   :  { %v311_v30 = vadd.f32 %v310_v28, %v309_v27  ;;  %v312_v31 = vpop.f32.mrb[2].mxu0 }
  0xf8   :  { %v313_v32 = vpop.f32.mrb[3].mxu0 }
  0xf9   :  { %v217_v33 = vadd.f32 %v311_v30, %v270_v29 }
  0xfb   :  { %v257_v34 = vadd.f32 %v256_v23, %v217_v33 }
  0xfd   :  { %vm262_vm2 = vcmp.gt.f32.partialorder %v257_v34, 0.0  ;;  %v263_v35 = vmul.f32 0.1, %v257_v34 }
  0xff   :  { %v264_v36 = vsel %vm262_vm2, %v257_v34, %v263_v35 }
 0x100   :  { %265 = vst [vmem:[%s440_s3] sm:$0xff] %v264_v36 }

// kernel: _lambda_.87
= control target key start
LH: loop header
LB: loop body
LE: loop exit
PB: predicated region body
PF: predicated region fallthrough
CT: control target
= control target key end

     0   :  { %v354_v1 = vmov 0.0   ;;  %vm355_vm0 = vmmov 0   ;;  %vm181_vm1 = vcmask 261120   ;;  %s450_s1 = inlined_call_operand.vmem [shape: bf16[288,128], index: 1, kind: input, shape index: {}]   ;;  %s451_s0 = inlined_call_operand.vmem [shape: bf16[8,288], index: 0, kind: input, shape index: {}]   ;;  %s452_s2 = inlined_call_operand.vmem [shape: f32[1,128], index: 2, kind: input, shape index: {}]   ;;  %s453_s3 = inlined_call_operand.vmem [shape: f32[8,128], index: 3, kind: input, shape index: {}]   ;;  %s454_s4 = inlined_call_operand.vmem [shape: f32[8,128], index: 4, kind: output, shape index: {}]  }
   0x1   :  { %v333_v0 = vld [vmem:[%s450_s1 + $0x40] sm:$0xff]   ;;  %323 = vmatprep.subr.bf16.mxu1 %v354_v1  ;;  %327 = vmatprep.mubr.msk.bf16.mxu1 %vm355_vm0, %v354_v1  ;;  %v335_v3 = vld [vmem:[%s450_s1 + $0x48] sm:$0xff]   ;;  %v337_v5 = vld [vmem:[%s450_s1 + $0x50] sm:$0xff]  }
   0x2   :  { %v334_v2 = vld [vmem:[%s450_s1] sm:$0xff]   ;;  %298 = vmatprep.subr.bf16.mxu0 %v333_v0  ;;  %v336_v4 = vld [vmem:[%s450_s1 + $0x8] sm:$0xff]   ;;  %v338_v6 = vld [vmem:[%s450_s1 + $0x10] sm:$0xff]  }
   0x3   :  { %299 = vmatpush3.bf16.msra.mxu0 %v334_v2  ;;  %v339_v7 = vld [vmem:[%s450_s1 + $0x58] sm:$0xff]   ;;  %v341_v9 = vld [vmem:[%s450_s1 + $0x60] sm:$0xff]   ;;  %v343_v12 = vld [vmem:[%s450_s1 + $0x68] sm:$0xff]  }
   0x4   :  { %300 = vmatprep.subr.bf16.mxu0 %v335_v3  ;;  %v340_v8 = vld [vmem:[%s450_s1 + $0x18] sm:$0xff]   ;;  %v347_v10 = vld [vmem:[%s450_s1 + $0x80] sm:$0xff]   ;;  %v353_v15 = vld [vmem:[%s450_s1 + $0x88] sm:$0xff]  }
   0x5   :  { %v342_v11 = vld [vmem:[%s450_s1 + $0x20] sm:$0xff]   ;;  %324 = vmatpush3.bf16.msra.mxu1 %v347_v10  ;;  %v344_v16 = vld [vmem:[%s450_s1 + $0x28] sm:$0xff]   ;;  %v345_v17 = vld [vmem:[%s450_s1 + $0x70] sm:$0xff]  }
   0x6   :  { %325 = vmatprep.subr.bf16.mxu1 %v354_v1  ;;  %v18_v13 = vld [vmem:[%s451_s0] sm:$0xff]  ;;  %v352_v18 = vld [vmem:[%s451_s0 + $0x8] ss:$0 sps:$4 sm:$0xff]   ;;  %v346_v19 = vld [vmem:[%s450_s1 + $0x30] sm:$0xff]  }
   0x7   :  { %301 = vmatpush3.bf16.msra.mxu0 %v336_v4  ;;  %v277_v14 = vcombine.high %v18_v13, %v18_v13  ;;  %v348_v20 = vld [vmem:[%s450_s1 + $0x78] sm:$0xff]   ;;  %v276_v22 = vcombine.low %v18_v13, %v18_v13  ;;  %v275_v29 = vld [vmem:[%s452_s2] ss:$0 sm:$0xff] }
   0x8   :  { %302 = vmatprep.subr.bf16.mxu0 %v337_v5  ;;  %v349_v21 = vld [vmem:[%s450_s1 + $0x38] sm:$0xff]   ;;  %v268_v36 = vld [vmem:[%s453_s3] sm:$0xff] }
   0x9   :  { %217 = vmatprep.mubr.bf16.mxu0 %v277_v14  ;;  %326 = vmatpush3.bf16.msra.mxu1 %v353_v15 }
   0xb   :  { %303 = vmatpush3.bf16.msra.mxu0 %v338_v6 }
   0xc   :  { %304 = vmatprep.subr.bf16.mxu0 %v339_v7  ;;  %328 = vmatmul.mubr.msk.bf16.vlgmr.msra.gmra.mrb[0].mxu1 %vm181_vm1, %v352_v18 }
   0xf   :  { %305 = vmatpush3.bf16.msra.mxu0 %v340_v8 }
  0x10   :  { %306 = vmatprep.subr.bf16.mxu0 %v341_v9 }
  0x13   :  { %307 = vmatpush3.bf16.msra.mxu0 %v342_v11 }
  0x14   :  { %308 = vmatprep.subr.bf16.mxu0 %v343_v12 }
  0x17   :  { %309 = vmatpush3.bf16.msra.mxu0 %v344_v16 }
  0x18   :  { %310 = vmatprep.subr.bf16.mxu0 %v345_v17 }
  0x1b   :  { %311 = vmatpush3.bf16.msra.mxu0 %v346_v19 }
  0x1c   :  { %312 = vmatprep.subr.bf16.mxu0 %v348_v20 }
  0x1f   :  { %313 = vmatpush3.bf16.msra.mxu0 %v349_v21 }
  0x22   :  { %218 = vmatmul.mubr.bf16.vlgmr.msra.gmra.mrb[0].mxu0 %v276_v22 }
  0xdf   :  { %v259_v23 = vpop.f32.mrb[0].mxu1 }
  0xe0   :  { %v329_v24 = vpop.f32.mrb[1].mxu1 }
  0xe1   :  { %v262_v25 = vpop.f32.mrb[2].mxu1 }
  0xe2   :  { %v330_v26 = vpop.f32.mrb[3].mxu1 }
  0xf5   :  { %v314_v27 = vpop.f32.mrb[0].mxu0 }
  0xf6   :  { %v315_v28 = vpop.f32.mrb[1].mxu0 }
  0xf7   :  { %v316_v30 = vadd.f32 %v315_v28, %v314_v27  ;;  %v317_v31 = vpop.f32.mrb[2].mxu0 }
  0xf8   :  { %v318_v32 = vpop.f32.mrb[3].mxu0 }
  0xf9   :  { %v220_v33 = vadd.f32 %v316_v30, %v275_v29 }
  0xfb   :  { %v260_v34 = vadd.f32 %v259_v23, %v220_v33 }
  0xfd   :  { %vm265_vm2 = vcmp.gt.f32.partialorder %v260_v34, 0.0  ;;  %v266_v35 = vmul.f32 0.1, %v260_v34 }
  0xff   :  { %v267_v37 = vsel %vm265_vm2, %v260_v34, %v266_v35 }
 0x100   :  { %v269_v38 = vadd.f32 %v268_v36, %v267_v37 }
 0x102   :  { %270 = vst [vmem:[%s454_s4] sm:$0xff] %v269_v38 }

// kernel: _lambda_.102
= control target key start
LH: loop header
LB: loop body
LE: loop exit
PB: predicated region body
PF: predicated region fallthrough
CT: control target
= control target key end

     0   :  { %v609_v35 = vmov 0.0   ;;  %vm610_vm0 = vmmov 0   ;;  %vm330_vm1 = vcmask 523264   ;;  %s754_s1 = inlined_call_operand.vmem [shape: bf16[576,128], index: 1, kind: input, shape index: {}]   ;;  %s755_s0 = inlined_call_operand.vmem [shape: bf16[8,576], index: 0, kind: input, shape index: {}]   ;;  %s756_s2 = inlined_call_operand.vmem [shape: f32[1,128], index: 2, kind: input, shape index: {}]   ;;  %s757_s3 = inlined_call_operand.vmem [shape: f32[8,128], index: 3, kind: output, shape index: {}]  }
   0x1   :  { %v568_v0 = vld [vmem:[%s754_s1 + $0x40] sm:$0xff]   ;;  %v572_v4 = vld [vmem:[%s754_s1 + $0x48] sm:$0xff]   ;;  %v576_v8 = vld [vmem:[%s754_s1 + $0x50] sm:$0xff]  }
   0x2   :  { %v569_v1 = vld [vmem:[%s754_s1] sm:$0xff]   ;;  %505 = vmatprep.subr.bf16.mxu0 %v568_v0  ;;  %v573_v5 = vld [vmem:[%s754_s1 + $0x8] sm:$0xff]   ;;  %v577_v9 = vld [vmem:[%s754_s1 + $0x10] sm:$0xff]  }
   0x3   :  { %v570_v2 = vld [vmem:[%s754_s1 + $0xc0] sm:$0xff]   ;;  %506 = vmatpush3.bf16.msra.mxu0 %v569_v1  ;;  %v574_v6 = vld [vmem:[%s754_s1 + $0xc8] sm:$0xff]   ;;  %v578_v10 = vld [vmem:[%s754_s1 + $0xd0] sm:$0xff]  }
   0x4   :  { %v571_v3 = vld [vmem:[%s754_s1 + $0x80] sm:$0xff]   ;;  %527 = vmatprep.subr.bf16.mxu1 %v570_v2  ;;  %507 = vmatprep.subr.bf16.mxu0 %v572_v4  ;;  %v575_v7 = vld [vmem:[%s754_s1 + $0x88] sm:$0xff]   ;;  %v579_v11 = vld [vmem:[%s754_s1 + $0x90] sm:$0xff]  }
   0x5   :  { %528 = vmatpush3.bf16.msra.mxu1 %v571_v3  ;;  %v580_v12 = vld [vmem:[%s754_s1 + $0x58] sm:$0xff]   ;;  %v584_v16 = vld [vmem:[%s754_s1 + $0x60] sm:$0xff]   ;;  %v588_v20 = vld [vmem:[%s754_s1 + $0x68] sm:$0xff]  }
   0x6   :  { %529 = vmatprep.subr.bf16.mxu1 %v574_v6  ;;  %v581_v13 = vld [vmem:[%s754_s1 + $0x18] sm:$0xff]   ;;  %v585_v17 = vld [vmem:[%s754_s1 + $0x20] sm:$0xff]   ;;  %v589_v21 = vld [vmem:[%s754_s1 + $0x28] sm:$0xff]  }
   0x7   :  { %508 = vmatpush3.bf16.msra.mxu0 %v573_v5  ;;  %v582_v14 = vld [vmem:[%s754_s1 + $0xd8] sm:$0xff]   ;;  %v586_v18 = vld [vmem:[%s754_s1 + $0xe0] sm:$0xff]   ;;  %v590_v22 = vld [vmem:[%s754_s1 + $0xe8] sm:$0xff]  }
   0x8   :  { %509 = vmatprep.subr.bf16.mxu0 %v576_v8  ;;  %v583_v15 = vld [vmem:[%s754_s1 + $0x98] sm:$0xff]   ;;  %v587_v19 = vld [vmem:[%s754_s1 + $0xa0] sm:$0xff]   ;;  %v591_v23 = vld [vmem:[%s754_s1 + $0xa8] sm:$0xff]  }
   0x9   :  { %530 = vmatpush3.bf16.msra.mxu1 %v575_v7  ;;  %v592_v24 = vld [vmem:[%s754_s1 + $0x70] sm:$0xff]   ;;  %v596_v28 = vld [vmem:[%s754_s1 + $0x78] sm:$0xff]   ;;  %v15_v31 = vld [vmem:[%s755_s0] sm:$0xff] }
   0xa   :  { %531 = vmatprep.subr.bf16.mxu1 %v578_v10  ;;  %v593_v25 = vld [vmem:[%s754_s1 + $0x30] sm:$0xff]   ;;  %v597_v29 = vld [vmem:[%s754_s1 + $0x38] sm:$0xff]   ;;  %v463_v32 = vcombine.low %v15_v31, %v15_v31  ;;  %v464_v33 = vcombine.high %v15_v31, %v15_v31  ;;  %v16_v36 = vld [vmem:[%s755_s0 + $0x8] sm:$0xff] }
   0xb   :  { %510 = vmatpush3.bf16.msra.mxu0 %v577_v9  ;;  %v594_v26 = vld [vmem:[%s754_s1 + $0xf0] sm:$0xff]   ;;  %v598_v30 = vld [vmem:[%s754_s1 + $0xf8] sm:$0xff]   ;;  %v465_v37 = vcombine.low %v16_v36, %v16_v36  ;;  %v466_v38 = vcombine.high %v16_v36, %v16_v36  ;;  %v605_v39 = vld [vmem:[%s754_s1 + $0x100] sm:$0xff]  }
   0xc   :  { %511 = vmatprep.subr.bf16.mxu0 %v580_v12  ;;  %v595_v27 = vld [vmem:[%s754_s1 + $0xb0] sm:$0xff]   ;;  %v602_v34 = vld [vmem:[%s754_s1 + $0xb8] sm:$0xff]   ;;  %366 = vmatprep.mubr.bf16.mxu0 %v464_v33  ;;  %v606_v40 = vld [vmem:[%s754_s1 + $0x108] sm:$0xff]  }
   0xd   :  { %532 = vmatpush3.bf16.msra.mxu1 %v579_v11  ;;  %406 = vmatprep.mubr.bf16.mxu1 %v466_v38  ;;  %v607_v41 = vld [vmem:[%s754_s1 + $0x110] sm:$0xff]   ;;  %v608_v42 = vld [vmem:[%s754_s1 + $0x118] sm:$0xff]   ;;  %v462_v45 = vld [vmem:[%s756_s2] ss:$0 sm:$0xff] }
   0xe   :  { %533 = vmatprep.subr.bf16.mxu1 %v582_v14  ;;  %v601_v43 = vld [vmem:[%s755_s0 + $0x10] ss:$0 sps:$4 sm:$0xff]  }
   0xf   :  { %512 = vmatpush3.bf16.msra.mxu0 %v581_v13 }
  0x10   :  { %513 = vmatprep.subr.bf16.mxu0 %v584_v16 }
  0x11   :  { %534 = vmatpush3.bf16.msra.mxu1 %v583_v15 }
  0x12   :  { %535 = vmatprep.subr.bf16.mxu1 %v586_v18 }
  0x13   :  { %514 = vmatpush3.bf16.msra.mxu0 %v585_v17 }
  0x14   :  { %515 = vmatprep.subr.bf16.mxu0 %v588_v20 }
  0x15   :  { %536 = vmatpush3.bf16.msra.mxu1 %v587_v19 }
  0x16   :  { %537 = vmatprep.subr.bf16.mxu1 %v590_v22 }
  0x17   :  { %516 = vmatpush3.bf16.msra.mxu0 %v589_v21 }
  0x18   :  { %517 = vmatprep.subr.bf16.mxu0 %v592_v24 }
  0x19   :  { %538 = vmatpush3.bf16.msra.mxu1 %v591_v23 }
  0x1a   :  { %539 = vmatprep.subr.bf16.mxu1 %v594_v26 }
  0x1b   :  { %518 = vmatpush3.bf16.msra.mxu0 %v593_v25 }
  0x1c   :  { %519 = vmatprep.subr.bf16.mxu0 %v596_v28 }
  0x1d   :  { %540 = vmatpush3.bf16.msra.mxu1 %v595_v27 }
  0x1e   :  { %541 = vmatprep.subr.bf16.mxu1 %v598_v30 }
  0x1f   :  { %520 = vmatpush3.bf16.msra.mxu0 %v597_v29 }
  0x20   :  { %554 = vmatprep.subr.bf16.mxu0 %v609_v35 }
  0x21   :  { %542 = vmatpush3.bf16.msra.mxu1 %v602_v34 }
  0x22   :  { %367 = vmatmul.mubr.bf16.vlgmr.msra.gmra.mrb[0].mxu0 %v463_v32 }
  0x23   :  { %555 = vmatpush3.bf16.msra.mxu0 %v605_v39  ;;  %562 = vmatprep.mubr.msk.bf16.mxu0 %vm610_vm0, %v609_v35 }
  0x24   :  { %407 = vmatmul.mubr.bf16.vlgmr.msra.gmra.mrb[0].mxu1 %v465_v37  ;;  %556 = vmatprep.subr.bf16.mxu0 %v609_v35 }
  0x27   :  { %557 = vmatpush3.bf16.msra.mxu0 %v606_v40 }
  0x28   :  { %558 = vmatprep.subr.bf16.mxu0 %v609_v35 }
  0x2b   :  { %559 = vmatpush3.bf16.msra.mxu0 %v607_v41 }
  0x2c   :  { %560 = vmatprep.subr.bf16.mxu0 %v609_v35 }
  0x2f   :  { %561 = vmatpush3.bf16.msra.mxu0 %v608_v42 }
  0x32   :  { %563 = vmatmul.mubr.msk.bf16.vlgmr.msra.gmra.mrb[4].mxu0 %vm330_vm1, %v601_v43 }
  0xf5   :  { %v521_v44 = vpop.f32.mrb[0].mxu0 }
  0xf6   :  { %v522_v46 = vpop.f32.mrb[1].mxu0 }
  0xf7   :  { %v523_v47 = vadd.f32 %v522_v46, %v521_v44  ;;  %v524_v48 = vpop.f32.mrb[2].mxu0  ;;  %v543_v49 = vpop.f32.mrb[0].mxu1 }
  0xf8   :  { %v525_v50 = vpop.f32.mrb[3].mxu0  ;;  %v544_v51 = vpop.f32.mrb[1].mxu1 }
  0xf9   :  { %v369_v52 = vadd.f32 %v523_v47, %v462_v45  ;;  %v545_v53 = vadd.f32 %v544_v51, %v543_v49  ;;  %v546_v54 = vpop.f32.mrb[2].mxu1 }
  0xfa   :  { %v547_v55 = vpop.f32.mrb[3].mxu1 }
  0xfb   :  { %v409_v56 = vadd.f32 %v545_v53, %v369_v52 }
 0x105   :  { %v448_v57 = vpop.f32.mrb[4].mxu0 }
 0x106   :  { %v449_v58 = vadd.f32 %v448_v57, %v409_v56  ;;  %v564_v59 = vpop.f32.mrb[5].mxu0 }
 0x107   :  { %v451_v60 = vpop.f32.mrb[6].mxu0 }
 0x108   :  { %vm454_vm2 = vcmp.gt.f32.partialorder %v449_v58, 0.0  ;;  %v455_v61 = vmul.f32 0.1, %v449_v58  ;;  %v565_v62 = vpop.f32.mrb[7].mxu0 }
 0x10a   :  { %v456_v63 = vsel %vm454_vm2, %v449_v58, %v455_v61 }
 0x10b   :  { %457 = vst [vmem:[%s757_s3] sm:$0xff] %v456_v63 }

// kernel: _lambda_.103
= control target key start
LH: loop header
LB: loop body
LE: loop exit
PB: predicated region body
PF: predicated region fallthrough
CT: control target
= control target key end

     0   :  { %v183_v0 = vmov 0.0   ;;  %vm184_vm0 = vmmov 0   ;;  %s238_s1 = inlined_call_operand.vmem [shape: bf16[128,128], index: 1, kind: input, shape index: {}]   ;;  %s239_s0 = inlined_call_operand.vmem [shape: bf16[8,128], index: 0, kind: input, shape index: {}]   ;;  %s240_s2 = inlined_call_operand.vmem [shape: f32[1,128], index: 2, kind: input, shape index: {}]   ;;  %s241_s3 = inlined_call_operand.vmem [shape: f32[8,128], index: 3, kind: output, shape index: {}]  }
   0x1   :  { %153 = vmatprep.subr.bf16.mxu0 %v183_v0  ;;  %v175_v1 = vld [vmem:[%s238_s1] sm:$0xff]   ;;  %169 = vmatprep.mubr.msk.bf16.mxu0 %vm184_vm0, %v183_v0  ;;  %v176_v2 = vld [vmem:[%s238_s1 + $0x8] sm:$0xff]   ;;  %v177_v3 = vld [vmem:[%s238_s1 + $0x10] sm:$0xff]  }
   0x2   :  { %154 = vmatpush3.bf16.msra.mxu0 %v175_v1  ;;  %v178_v4 = vld [vmem:[%s238_s1 + $0x18] sm:$0xff]   ;;  %v179_v5 = vld [vmem:[%s238_s1 + $0x20] sm:$0xff]   ;;  %v180_v6 = vld [vmem:[%s238_s1 + $0x28] sm:$0xff]  }
   0x3   :  { %155 = vmatprep.subr.bf16.mxu0 %v183_v0  ;;  %v181_v7 = vld [vmem:[%s238_s1 + $0x30] sm:$0xff]   ;;  %v182_v8 = vld [vmem:[%s238_s1 + $0x38] sm:$0xff]   ;;  %v15_v9 = vld [vmem:[%s239_s0] sm:$0xf] }
   0x4   :  { %v135_v10 = vld [vmem:[%s240_s2] ss:$0 sm:$0xff] }
   0x6   :  { %156 = vmatpush3.bf16.msra.mxu0 %v176_v2 }
   0x7   :  { %157 = vmatprep.subr.bf16.mxu0 %v183_v0 }
   0xa   :  { %158 = vmatpush3.bf16.msra.mxu0 %v177_v3 }
   0xb   :  { %159 = vmatprep.subr.bf16.mxu0 %v183_v0 }
   0xe   :  { %160 = vmatpush3.bf16.msra.mxu0 %v178_v4 }
   0xf   :  { %161 = vmatprep.subr.bf16.mxu0 %v183_v0 }
  0x12   :  { %162 = vmatpush3.bf16.msra.mxu0 %v179_v5 }
  0x13   :  { %163 = vmatprep.subr.bf16.mxu0 %v183_v0 }
  0x16   :  { %164 = vmatpush3.bf16.msra.mxu0 %v180_v6 }
  0x17   :  { %165 = vmatprep.subr.bf16.mxu0 %v183_v0 }
  0x1a   :  { %166 = vmatpush3.bf16.msra.mxu0 %v181_v7 }
  0x1b   :  { %167 = vmatprep.subr.bf16.mxu0 %v183_v0 }
  0x1e   :  { %168 = vmatpush3.bf16.msra.mxu0 %v182_v8 }
  0x21   :  { %170 = vmatmul.mubr.bf16.vlgmr.msra.gmra.mrb[0].mxu0 %v15_v9 }
  0xf4   :  { %v121_v11 = vpop.f32.mrb[0].mxu0 }
  0xf5   :  { %v122_v12 = vadd.f32 %v135_v10, %v121_v11  ;;  %v171_v13 = vpop.f32.mrb[1].mxu0 }
  0xf6   :  { %v124_v14 = vpop.f32.mrb[2].mxu0 }
  0xf7   :  { %vm127_vm1 = vcmp.gt.f32.partialorder %v122_v12, 0.0  ;;  %v128_v15 = vmul.f32 0.1, %v122_v12  ;;  %v172_v16 = vpop.f32.mrb[3].mxu0 }
  0xf9   :  { %v129_v17 = vsel %vm127_vm1, %v122_v12, %v128_v15 }
  0xfa   :  { %130 = vst [vmem:[%s241_s3] sm:$0xff] %v129_v17 }

// kernel: _lambda_.104
= control target key start
LH: loop header
LB: loop body
LE: loop exit
PB: predicated region body
PF: predicated region fallthrough
CT: control target
= control target key end

     0   :  { %v614_v35 = vmov 0.0   ;;  %vm615_vm0 = vmmov 0   ;;  %vm333_vm1 = vcmask 523264   ;;  %s767_s1 = inlined_call_operand.vmem [shape: bf16[576,128], index: 1, kind: input, shape index: {}]   ;;  %s768_s0 = inlined_call_operand.vmem [shape: bf16[8,576], index: 0, kind: input, shape index: {}]   ;;  %s769_s2 = inlined_call_operand.vmem [shape: f32[1,128], index: 2, kind: input, shape index: {}]   ;;  %s770_s3 = inlined_call_operand.vmem [shape: f32[8,128], index: 3, kind: input, shape index: {}]   ;;  %s771_s4 = inlined_call_operand.vmem [shape: f32[8,128], index: 4, kind: output, shape index: {}]  }
   0x1   :  { %v573_v0 = vld [vmem:[%s767_s1 + $0x40] sm:$0xff]   ;;  %v577_v4 = vld [vmem:[%s767_s1 + $0x48] sm:$0xff]   ;;  %v581_v8 = vld [vmem:[%s767_s1 + $0x50] sm:$0xff]  }
   0x2   :  { %v574_v1 = vld [vmem:[%s767_s1] sm:$0xff]   ;;  %510 = vmatprep.subr.bf16.mxu0 %v573_v0  ;;  %v578_v5 = vld [vmem:[%s767_s1 + $0x8] sm:$0xff]   ;;  %v582_v9 = vld [vmem:[%s767_s1 + $0x10] sm:$0xff]  }
   0x3   :  { %v575_v2 = vld [vmem:[%s767_s1 + $0xc0] sm:$0xff]   ;;  %511 = vmatpush3.bf16.msra.mxu0 %v574_v1  ;;  %v579_v6 = vld [vmem:[%s767_s1 + $0xc8] sm:$0xff]   ;;  %v583_v10 = vld [vmem:[%s767_s1 + $0xd0] sm:$0xff]  }
   0x4   :  { %v576_v3 = vld [vmem:[%s767_s1 + $0x80] sm:$0xff]   ;;  %532 = vmatprep.subr.bf16.mxu1 %v575_v2  ;;  %512 = vmatprep.subr.bf16.mxu0 %v577_v4  ;;  %v580_v7 = vld [vmem:[%s767_s1 + $0x88] sm:$0xff]   ;;  %v584_v11 = vld [vmem:[%s767_s1 + $0x90] sm:$0xff]  }
   0x5   :  { %533 = vmatpush3.bf16.msra.mxu1 %v576_v3  ;;  %v585_v12 = vld [vmem:[%s767_s1 + $0x58] sm:$0xff]   ;;  %v589_v16 = vld [vmem:[%s767_s1 + $0x60] sm:$0xff]   ;;  %v593_v20 = vld [vmem:[%s767_s1 + $0x68] sm:$0xff]  }
   0x6   :  { %534 = vmatprep.subr.bf16.mxu1 %v579_v6  ;;  %v586_v13 = vld [vmem:[%s767_s1 + $0x18] sm:$0xff]   ;;  %v590_v17 = vld [vmem:[%s767_s1 + $0x20] sm:$0xff]   ;;  %v594_v21 = vld [vmem:[%s767_s1 + $0x28] sm:$0xff]  }
   0x7   :  { %513 = vmatpush3.bf16.msra.mxu0 %v578_v5  ;;  %v587_v14 = vld [vmem:[%s767_s1 + $0xd8] sm:$0xff]   ;;  %v591_v18 = vld [vmem:[%s767_s1 + $0xe0] sm:$0xff]   ;;  %v595_v22 = vld [vmem:[%s767_s1 + $0xe8] sm:$0xff]  }
   0x8   :  { %514 = vmatprep.subr.bf16.mxu0 %v581_v8  ;;  %v588_v15 = vld [vmem:[%s767_s1 + $0x98] sm:$0xff]   ;;  %v592_v19 = vld [vmem:[%s767_s1 + $0xa0] sm:$0xff]   ;;  %v596_v23 = vld [vmem:[%s767_s1 + $0xa8] sm:$0xff]  }
   0x9   :  { %535 = vmatpush3.bf16.msra.mxu1 %v580_v7  ;;  %v597_v24 = vld [vmem:[%s767_s1 + $0x70] sm:$0xff]   ;;  %v601_v28 = vld [vmem:[%s767_s1 + $0x78] sm:$0xff]   ;;  %v18_v31 = vld [vmem:[%s768_s0] sm:$0xff] }
   0xa   :  { %536 = vmatprep.subr.bf16.mxu1 %v583_v10  ;;  %v598_v25 = vld [vmem:[%s767_s1 + $0x30] sm:$0xff]   ;;  %v602_v29 = vld [vmem:[%s767_s1 + $0x38] sm:$0xff]   ;;  %v468_v32 = vcombine.low %v18_v31, %v18_v31  ;;  %v469_v33 = vcombine.high %v18_v31, %v18_v31  ;;  %v19_v36 = vld [vmem:[%s768_s0 + $0x8] sm:$0xff] }
   0xb   :  { %515 = vmatpush3.bf16.msra.mxu0 %v582_v9  ;;  %v599_v26 = vld [vmem:[%s767_s1 + $0xf0] sm:$0xff]   ;;  %v603_v30 = vld [vmem:[%s767_s1 + $0xf8] sm:$0xff]   ;;  %v470_v37 = vcombine.low %v19_v36, %v19_v36  ;;  %v471_v38 = vcombine.high %v19_v36, %v19_v36  ;;  %v610_v39 = vld [vmem:[%s767_s1 + $0x100] sm:$0xff]  }
   0xc   :  { %516 = vmatprep.subr.bf16.mxu0 %v585_v12  ;;  %v600_v27 = vld [vmem:[%s767_s1 + $0xb0] sm:$0xff]   ;;  %v607_v34 = vld [vmem:[%s767_s1 + $0xb8] sm:$0xff]   ;;  %369 = vmatprep.mubr.bf16.mxu0 %v469_v33  ;;  %v611_v40 = vld [vmem:[%s767_s1 + $0x108] sm:$0xff]  }
   0xd   :  { %537 = vmatpush3.bf16.msra.mxu1 %v584_v11  ;;  %409 = vmatprep.mubr.bf16.mxu1 %v471_v38  ;;  %v612_v41 = vld [vmem:[%s767_s1 + $0x110] sm:$0xff]   ;;  %v613_v42 = vld [vmem:[%s767_s1 + $0x118] sm:$0xff]   ;;  %v467_v45 = vld [vmem:[%s769_s2] ss:$0 sm:$0xff] }
   0xe   :  { %538 = vmatprep.subr.bf16.mxu1 %v587_v14  ;;  %v606_v43 = vld [vmem:[%s768_s0 + $0x10] ss:$0 sps:$4 sm:$0xff]   ;;  %v460_v62 = vld [vmem:[%s770_s3] sm:$0xff] }
   0xf   :  { %517 = vmatpush3.bf16.msra.mxu0 %v586_v13 }
  0x10   :  { %518 = vmatprep.subr.bf16.mxu0 %v589_v16 }
  0x11   :  { %539 = vmatpush3.bf16.msra.mxu1 %v588_v15 }
  0x12   :  { %540 = vmatprep.subr.bf16.mxu1 %v591_v18 }
  0x13   :  { %519 = vmatpush3.bf16.msra.mxu0 %v590_v17 }
  0x14   :  { %520 = vmatprep.subr.bf16.mxu0 %v593_v20 }
  0x15   :  { %541 = vmatpush3.bf16.msra.mxu1 %v592_v19 }
  0x16   :  { %542 = vmatprep.subr.bf16.mxu1 %v595_v22 }
  0x17   :  { %521 = vmatpush3.bf16.msra.mxu0 %v594_v21 }
  0x18   :  { %522 = vmatprep.subr.bf16.mxu0 %v597_v24 }
  0x19   :  { %543 = vmatpush3.bf16.msra.mxu1 %v596_v23 }
  0x1a   :  { %544 = vmatprep.subr.bf16.mxu1 %v599_v26 }
  0x1b   :  { %523 = vmatpush3.bf16.msra.mxu0 %v598_v25 }
  0x1c   :  { %524 = vmatprep.subr.bf16.mxu0 %v601_v28 }
  0x1d   :  { %545 = vmatpush3.bf16.msra.mxu1 %v600_v27 }
  0x1e   :  { %546 = vmatprep.subr.bf16.mxu1 %v603_v30 }
  0x1f   :  { %525 = vmatpush3.bf16.msra.mxu0 %v602_v29 }
  0x20   :  { %559 = vmatprep.subr.bf16.mxu0 %v614_v35 }
  0x21   :  { %547 = vmatpush3.bf16.msra.mxu1 %v607_v34 }
  0x22   :  { %370 = vmatmul.mubr.bf16.vlgmr.msra.gmra.mrb[0].mxu0 %v468_v32 }
  0x23   :  { %560 = vmatpush3.bf16.msra.mxu0 %v610_v39  ;;  %567 = vmatprep.mubr.msk.bf16.mxu0 %vm615_vm0, %v614_v35 }
  0x24   :  { %410 = vmatmul.mubr.bf16.vlgmr.msra.gmra.mrb[0].mxu1 %v470_v37  ;;  %561 = vmatprep.subr.bf16.mxu0 %v614_v35 }
  0x27   :  { %562 = vmatpush3.bf16.msra.mxu0 %v611_v40 }
  0x28   :  { %563 = vmatprep.subr.bf16.mxu0 %v614_v35 }
  0x2b   :  { %564 = vmatpush3.bf16.msra.mxu0 %v612_v41 }
  0x2c   :  { %565 = vmatprep.subr.bf16.mxu0 %v614_v35 }
  0x2f   :  { %566 = vmatpush3.bf16.msra.mxu0 %v613_v42 }
  0x32   :  { %568 = vmatmul.mubr.msk.bf16.vlgmr.msra.gmra.mrb[4].mxu0 %vm333_vm1, %v606_v43 }
  0xf5   :  { %v526_v44 = vpop.f32.mrb[0].mxu0 }
  0xf6   :  { %v527_v46 = vpop.f32.mrb[1].mxu0 }
  0xf7   :  { %v528_v47 = vadd.f32 %v527_v46, %v526_v44  ;;  %v529_v48 = vpop.f32.mrb[2].mxu0  ;;  %v548_v49 = vpop.f32.mrb[0].mxu1 }
  0xf8   :  { %v530_v50 = vpop.f32.mrb[3].mxu0  ;;  %v549_v51 = vpop.f32.mrb[1].mxu1 }
  0xf9   :  { %v372_v52 = vadd.f32 %v528_v47, %v467_v45  ;;  %v550_v53 = vadd.f32 %v549_v51, %v548_v49  ;;  %v551_v54 = vpop.f32.mrb[2].mxu1 }
  0xfa   :  { %v552_v55 = vpop.f32.mrb[3].mxu1 }
  0xfb   :  { %v412_v56 = vadd.f32 %v550_v53, %v372_v52 }
 0x105   :  { %v451_v57 = vpop.f32.mrb[4].mxu0 }
 0x106   :  { %v452_v58 = vadd.f32 %v451_v57, %v412_v56  ;;  %v569_v59 = vpop.f32.mrb[5].mxu0 }
 0x107   :  { %v454_v60 = vpop.f32.mrb[6].mxu0 }
 0x108   :  { %vm457_vm2 = vcmp.gt.f32.partialorder %v452_v58, 0.0  ;;  %v458_v61 = vmul.f32 0.1, %v452_v58  ;;  %v570_v63 = vpop.f32.mrb[7].mxu0 }
 0x10a   :  { %v459_v0 = vsel %vm457_vm2, %v452_v58, %v458_v61 }
 0x10b   :  { %v461_v1 = vadd.f32 %v460_v62, %v459_v0 }
 0x10d   :  { %462 = vst [vmem:[%s771_s4] sm:$0xff] %v461_v1 }

// kernel: _lambda_.113
= control target key start
LH: loop header
LB: loop body
LE: loop exit
PB: predicated region body
PF: predicated region fallthrough
CT: control target
= control target key end

     0   :  { %v162_v0 = vmov 0.0   ;;  %vm163_vm0 = vmmov 0   ;;  %vm71_vm1 = vcmask 785408   ;;  %s211_s1 = inlined_call_operand.vmem [shape: bf16[96,128], index: 1, kind: input, shape index: {}]   ;;  %s212_s0 = inlined_call_operand.vmem [shape: bf16[8,96], index: 0, kind: input, shape index: {}]   ;;  %s213_s2 = inlined_call_operand.vmem [shape: f32[1,128], index: 2, kind: input, shape index: {}]   ;;  %s214_s3 = inlined_call_operand.vmem [shape: f32[8,128], index: 3, kind: output, shape index: {}]  }
   0x1   :  { %138 = vmatprep.subr.bf16.mxu0 %v162_v0  ;;  %v156_v1 = vld [vmem:[%s211_s1] sm:$0xff]   ;;  %150 = vmatprep.mubr.msk.bf16.mxu0 %vm163_vm0, %v162_v0  ;;  %v157_v2 = vld [vmem:[%s211_s1 + $0x8] sm:$0xff]   ;;  %v158_v3 = vld [vmem:[%s211_s1 + $0x10] sm:$0xff]  }
   0x2   :  { %139 = vmatpush3.bf16.msra.mxu0 %v156_v1  ;;  %v159_v4 = vld [vmem:[%s211_s1 + $0x18] sm:$0xff]   ;;  %v160_v5 = vld [vmem:[%s211_s1 + $0x20] sm:$0xff]   ;;  %v161_v6 = vld [vmem:[%s211_s1 + $0x28] sm:$0xff]  }
   0x3   :  { %140 = vmatprep.subr.bf16.mxu0 %v162_v0  ;;  %v15_v7 = vld [vmem:[%s212_s0] sm:$0xf] }
   0x4   :  { %v123_v8 = vld [vmem:[%s213_s2] ss:$0 sm:$0xff] }
   0x6   :  { %141 = vmatpush3.bf16.msra.mxu0 %v157_v2 }
   0x7   :  { %142 = vmatprep.subr.bf16.mxu0 %v162_v0 }
   0xa   :  { %143 = vmatpush3.bf16.msra.mxu0 %v158_v3 }
   0xb   :  { %144 = vmatprep.subr.bf16.mxu0 %v162_v0 }
   0xe   :  { %145 = vmatpush3.bf16.msra.mxu0 %v159_v4 }
   0xf   :  { %146 = vmatprep.subr.bf16.mxu0 %v162_v0 }
  0x12   :  { %147 = vmatpush3.bf16.msra.mxu0 %v160_v5 }
  0x13   :  { %148 = vmatprep.subr.bf16.mxu0 %v162_v0 }
  0x16   :  { %149 = vmatpush3.bf16.msra.mxu0 %v161_v6 }
  0x19   :  { %151 = vmatmul.mubr.msk.bf16.vlgmr.msra.gmra.mrb[0].mxu0 %vm71_vm1, %v15_v7 }
  0xec   :  { %v109_v9 = vpop.f32.mrb[0].mxu0 }
  0xed   :  { %v110_v10 = vadd.f32 %v123_v8, %v109_v9  ;;  %v152_v11 = vpop.f32.mrb[1].mxu0 }
  0xee   :  { %v112_v12 = vpop.f32.mrb[2].mxu0 }
  0xef   :  { %vm115_vm2 = vcmp.gt.f32.partialorder %v110_v10, 0.0  ;;  %v116_v13 = vmul.f32 0.1, %v110_v10  ;;  %v153_v14 = vpop.f32.mrb[3].mxu0 }
  0xf1   :  { %v117_v15 = vsel %vm115_vm2, %v110_v10, %v116_v13 }
  0xf2   :  { %118 = vst [vmem:[%s214_s3] sm:$0xff] %v117_v15 }

// kernel: _lambda_.120
= control target key start
LH: loop header
LB: loop body
LE: loop exit
PB: predicated region body
PF: predicated region fallthrough
CT: control target
= control target key end

     0   :  { %v110_v0 = vmov 0.0   ;;  %vm111_vm0 = vmmov 0   ;;  %vm39_vm1 = vcmask 261120   ;;  %s147_s1 = inlined_call_operand.vmem [shape: bf16[32,128], index: 1, kind: input, shape index: {}]   ;;  %s148_s0 = inlined_call_operand.vmem [shape: bf16[8,32], index: 0, kind: input, shape index: {}]   ;;  %s149_s2 = inlined_call_operand.vmem [shape: f32[1,128], index: 2, kind: input, shape index: {}]   ;;  %s150_s3 = inlined_call_operand.vmem [shape: f32[8,128], index: 3, kind: output, shape index: {}]  }
   0x1   :  { %98 = vmatprep.subr.bf16.mxu0 %v110_v0  ;;  %v108_v1 = vld [vmem:[%s147_s1] sm:$0xff]   ;;  %102 = vmatprep.mubr.msk.bf16.mxu0 %vm111_vm0, %v110_v0  ;;  %v109_v2 = vld [vmem:[%s147_s1 + $0x8] sm:$0xff]  }
   0x2   :  { %99 = vmatpush3.bf16.msra.mxu0 %v108_v1  ;;  %v15_v3 = vld [vmem:[%s148_s0] sm:$0xf] }
   0x3   :  { %100 = vmatprep.subr.bf16.mxu0 %v110_v0  ;;  %v91_v4 = vld [vmem:[%s149_s2] ss:$0 sm:$0xff] }
   0x6   :  { %101 = vmatpush3.bf16.msra.mxu0 %v109_v2 }
   0x9   :  { %103 = vmatmul.mubr.msk.bf16.vlgmr.msra.gmra.mrb[0].mxu0 %vm39_vm1, %v15_v3 }
  0xdc   :  { %v77_v5 = vpop.f32.mrb[0].mxu0 }
  0xdd   :  { %v78_v6 = vadd.f32 %v91_v4, %v77_v5  ;;  %v104_v7 = vpop.f32.mrb[1].mxu0 }
  0xde   :  { %v80_v8 = vpop.f32.mrb[2].mxu0 }
  0xdf   :  { %vm83_vm2 = vcmp.gt.f32.partialorder %v78_v6, 0.0  ;;  %v84_v9 = vmul.f32 0.1, %v78_v6  ;;  %v105_v10 = vpop.f32.mrb[3].mxu0 }
  0xe1   :  { %v85_v11 = vsel %vm83_vm2, %v78_v6, %v84_v9 }
  0xe2   :  { %86 = vst [vmem:[%s150_s3] sm:$0xff] %v85_v11 }

// kernel: _lambda_.127
= control target key start
LH: loop header
LB: loop body
LE: loop exit
PB: predicated region body
PF: predicated region fallthrough
CT: control target
= control target key end

     0   :  { %vm52_vm0 = vcmask 261120   ;;  %s186_s1 = inlined_call_operand.vmem [shape: bf16[32,128], index: 1, kind: input, shape index: {}]   ;;  %s187_s0 = inlined_call_operand.vmem [shape: bf16[32,32], index: 0, kind: input, shape index: {}]   ;;  %s188_s2 = inlined_call_operand.vmem [shape: f32[1,128], index: 2, kind: input, shape index: {}]   ;;  %s189_s3 = inlined_call_operand.vmem [shape: f32[32,128], index: 3, kind: output, shape index: {}]  }
   0x1   :  { %v135_v0 = vld [vmem:[%s186_s1] sm:$0xff]   ;;  %v136_v1 = vld [vmem:[%s186_s1 + $0x8] sm:$0xff]  }
   0x2   :  { %127 = vmatprep.subr.bf16.mxu0 %v135_v0  ;;  %v137_v2 = vld [vmem:[%s187_s0] sm:$0xff]   ;;  %v138_v3 = vld [vmem:[%s187_s0 + $0x8] sm:$0xff]  }
   0x3   :  { %128 = vmatpush3.bf16.msra.mxu0 %v135_v0  ;;  %131 = vmatprep.mubr.msk.bf16.mxu0 %vm52_vm0, %v137_v2  ;;  %v116_v4 = vld [vmem:[%s188_s2] ss:$0 sm:$0xff] }
   0x4   :  { %129 = vmatprep.subr.bf16.mxu0 %v136_v1 }
   0x7   :  { %130 = vmatpush3.bf16.msra.mxu0 %v136_v1 }
   0xa   :  { %132 = vmatmul.mubr.msk.bf16.vlgmr.msra.gmra.mrb[0].mxu0 %vm52_vm0, %v138_v3 }
  0xdd   :  { %v133_v5 = vpop.f32.mrb[0].mxu0 }
  0xde   :  { %v102_v6 = vadd.f32 %v133_v5, %v116_v4  ;;  %v93_v7 = vpop.f32.mrb[1].mxu0 }
  0xdf   :  { %v94_v8 = vadd.f32 %v116_v4, %v93_v7  ;;  %v134_v9 = vpop.f32.mrb[2].mxu0 }
  0xe0   :  { %110 = vst [vmem:[%s189_s3 + $0x10] sm:$0xff] %v102_v6  ;;  %v105_v10 = vadd.f32 %v134_v9, %v116_v4  ;;  %v96_v11 = vpop.f32.mrb[3].mxu0 }
  0xe1   :  { %108 = vst [vmem:[%s189_s3] sm:$0xff] %v94_v8  ;;  %v97_v12 = vadd.f32 %v116_v4, %v96_v11 }
  0xe2   :  { %111 = vst [vmem:[%s189_s3 + $0x18] sm:$0xff] %v105_v10 }
  0xe3   :  { %109 = vst [vmem:[%s189_s3 + $0x8] sm:$0xff] %v97_v12 }

// kernel: _lambda_.121
= control target key start
LH: loop header
LB: loop body
LE: loop exit
PB: predicated region body
PF: predicated region fallthrough
CT: control target
= control target key end

     0   :  { %vm60_vm0 = vcmask 392192   ;;  %s214_s1 = inlined_call_operand.vmem [shape: bf16[48,128], index: 1, kind: input, shape index: {}]   ;;  %s215_s0 = inlined_call_operand.vmem [shape: bf16[32,48], index: 0, kind: input, shape index: {}]   ;;  %s216_s2 = inlined_call_operand.vmem [shape: f32[1,128], index: 2, kind: input, shape index: {}]   ;;  %s217_s3 = inlined_call_operand.vmem [shape: f32[32,128], index: 3, kind: output, shape index: {}]  }
   0x1   :  { %v159_v0 = vld [vmem:[%s214_s1] sm:$0xff]   ;;  %v160_v1 = vld [vmem:[%s214_s1 + $0x8] sm:$0xff]   ;;  %v161_v3 = vld [vmem:[%s214_s1 + $0x10] sm:$0xff]  }
   0x2   :  { %149 = vmatprep.subr.bf16.mxu0 %v159_v0  ;;  %v162_v2 = vld [vmem:[%s215_s0] sm:$0xff]   ;;  %v163_v4 = vld [vmem:[%s215_s0 + $0x8] sm:$0xff]  }
   0x3   :  { %150 = vmatpush3.bf16.msra.mxu0 %v159_v0  ;;  %155 = vmatprep.mubr.msk.bf16.mxu0 %vm60_vm0, %v162_v2  ;;  %v136_v5 = vld [vmem:[%s216_s2] ss:$0 sm:$0xff] }
   0x4   :  { %151 = vmatprep.subr.bf16.mxu0 %v160_v1 }
   0x7   :  { %152 = vmatpush3.bf16.msra.mxu0 %v160_v1 }
   0x8   :  { %153 = vmatprep.subr.bf16.mxu0 %v161_v3 }
   0xb   :  { %154 = vmatpush3.bf16.msra.mxu0 %v161_v3 }
   0xe   :  { %156 = vmatmul.mubr.msk.bf16.vlgmr.msra.gmra.mrb[0].mxu0 %vm60_vm0, %v163_v4 }
  0xe1   :  { %v157_v6 = vpop.f32.mrb[0].mxu0 }
  0xe2   :  { %v110_v7 = vadd.f32 %v157_v6, %v136_v5  ;;  %v101_v8 = vpop.f32.mrb[1].mxu0 }
  0xe3   :  { %v102_v9 = vadd.f32 %v136_v5, %v101_v8  ;;  %v158_v10 = vpop.f32.mrb[2].mxu0 }
  0xe4   :  { %vm118_vm1 = vcmp.gt.f32.partialorder %v110_v7, 0.0  ;;  %v122_v11 = vmul.f32 0.1, %v110_v7  ;;  %v113_v12 = vadd.f32 %v158_v10, %v136_v5  ;;  %v104_v13 = vpop.f32.mrb[3].mxu0 }
  0xe5   :  { %vm116_vm2 = vcmp.gt.f32.partialorder %v102_v9, 0.0  ;;  %v120_v14 = vmul.f32 0.1, %v102_v9  ;;  %v105_v15 = vadd.f32 %v136_v5, %v104_v13 }
  0xe6   :  { %v126_v16 = vsel %vm118_vm1, %v110_v7, %v122_v11  ;;  %vm119_vm3 = vcmp.gt.f32.partialorder %v113_v12, 0.0  ;;  %v123_v17 = vmul.f32 0.1, %v113_v12 }
  0xe7   :  { %130 = vst [vmem:[%s217_s3 + $0x10] sm:$0xff] %v126_v16  ;;  %v124_v18 = vsel %vm116_vm2, %v102_v9, %v120_v14  ;;  %vm117_vm4 = vcmp.gt.f32.partialorder %v105_v15, 0.0  ;;  %v121_v19 = vmul.f32 0.1, %v105_v15 }
  0xe8   :  { %128 = vst [vmem:[%s217_s3] sm:$0xff] %v124_v18  ;;  %v127_v20 = vsel %vm119_vm3, %v113_v12, %v123_v17 }
  0xe9   :  { %131 = vst [vmem:[%s217_s3 + $0x18] sm:$0xff] %v127_v20  ;;  %v125_v21 = vsel %vm117_vm4, %v105_v15, %v121_v19 }
  0xea   :  { %129 = vst [vmem:[%s217_s3 + $0x8] sm:$0xff] %v125_v21 }

// kernel: _lambda_.119
= control target key start
LH: loop header
LB: loop body
LE: loop exit
PB: predicated region body
PF: predicated region fallthrough
CT: control target
= control target key end

     0   :  { %v133_v0 = vmov 0.0   ;;  %vm134_vm0 = vmmov 0   ;;  %vm55_vm1 = vcmask 523264   ;;  %s176_s1 = inlined_call_operand.vmem [shape: bf16[64,128], index: 1, kind: input, shape index: {}]   ;;  %s177_s0 = inlined_call_operand.vmem [shape: bf16[8,64], index: 0, kind: input, shape index: {}]   ;;  %s178_s2 = inlined_call_operand.vmem [shape: f32[1,128], index: 2, kind: input, shape index: {}]   ;;  %s179_s3 = inlined_call_operand.vmem [shape: f32[8,128], index: 3, kind: output, shape index: {}]  }
   0x1   :  { %115 = vmatprep.subr.bf16.mxu0 %v133_v0  ;;  %v129_v1 = vld [vmem:[%s176_s1] sm:$0xff]   ;;  %123 = vmatprep.mubr.msk.bf16.mxu0 %vm134_vm0, %v133_v0  ;;  %v130_v2 = vld [vmem:[%s176_s1 + $0x8] sm:$0xff]   ;;  %v131_v3 = vld [vmem:[%s176_s1 + $0x10] sm:$0xff]  }
   0x2   :  { %116 = vmatpush3.bf16.msra.mxu0 %v129_v1  ;;  %v132_v4 = vld [vmem:[%s176_s1 + $0x18] sm:$0xff]   ;;  %v15_v5 = vld [vmem:[%s177_s0] sm:$0xf] }
   0x3   :  { %117 = vmatprep.subr.bf16.mxu0 %v133_v0  ;;  %v104_v6 = vld [vmem:[%s178_s2] ss:$0 sm:$0xff] }
   0x6   :  { %118 = vmatpush3.bf16.msra.mxu0 %v130_v2 }
   0x7   :  { %119 = vmatprep.subr.bf16.mxu0 %v133_v0 }
   0xa   :  { %120 = vmatpush3.bf16.msra.mxu0 %v131_v3 }
   0xb   :  { %121 = vmatprep.subr.bf16.mxu0 %v133_v0 }
   0xe   :  { %122 = vmatpush3.bf16.msra.mxu0 %v132_v4 }
  0x11   :  { %124 = vmatmul.mubr.msk.bf16.vlgmr.msra.gmra.mrb[0].mxu0 %vm55_vm1, %v15_v5 }
  0xe4   :  { %v93_v7 = vpop.f32.mrb[0].mxu0 }
  0xe5   :  { %v94_v8 = vadd.f32 %v104_v6, %v93_v7  ;;  %v125_v9 = vpop.f32.mrb[1].mxu0 }
  0xe6   :  { %v96_v10 = vpop.f32.mrb[2].mxu0 }
  0xe7   :  { %99 = vst [vmem:[%s179_s3] sm:$0xff] %v94_v8  ;;  %v126_v11 = vpop.f32.mrb[3].mxu0 }

// kernel: _lambda_.111
= control target key start
LH: loop header
LB: loop body
LE: loop exit
PB: predicated region body
PF: predicated region fallthrough
CT: control target
= control target key end

     0   :  { %v180_v0 = vmov 0.0   ;;  %vm181_vm0 = vmmov 0   ;;  %s235_s1 = inlined_call_operand.vmem [shape: bf16[128,128], index: 1, kind: input, shape index: {}]   ;;  %s236_s0 = inlined_call_operand.vmem [shape: bf16[8,128], index: 0, kind: input, shape index: {}]   ;;  %s237_s2 = inlined_call_operand.vmem [shape: f32[1,128], index: 2, kind: input, shape index: {}]   ;;  %s238_s3 = inlined_call_operand.vmem [shape: f32[8,128], index: 3, kind: output, shape index: {}]  }
   0x1   :  { %150 = vmatprep.subr.bf16.mxu0 %v180_v0  ;;  %v172_v1 = vld [vmem:[%s235_s1] sm:$0xff]   ;;  %166 = vmatprep.mubr.msk.bf16.mxu0 %vm181_vm0, %v180_v0  ;;  %v173_v2 = vld [vmem:[%s235_s1 + $0x8] sm:$0xff]   ;;  %v174_v3 = vld [vmem:[%s235_s1 + $0x10] sm:$0xff]  }
   0x2   :  { %151 = vmatpush3.bf16.msra.mxu0 %v172_v1  ;;  %v175_v4 = vld [vmem:[%s235_s1 + $0x18] sm:$0xff]   ;;  %v176_v5 = vld [vmem:[%s235_s1 + $0x20] sm:$0xff]   ;;  %v177_v6 = vld [vmem:[%s235_s1 + $0x28] sm:$0xff]  }
   0x3   :  { %152 = vmatprep.subr.bf16.mxu0 %v180_v0  ;;  %v178_v7 = vld [vmem:[%s235_s1 + $0x30] sm:$0xff]   ;;  %v179_v8 = vld [vmem:[%s235_s1 + $0x38] sm:$0xff]   ;;  %v15_v9 = vld [vmem:[%s236_s0] sm:$0xf] }
   0x4   :  { %v132_v10 = vld [vmem:[%s237_s2] ss:$0 sm:$0xff] }
   0x6   :  { %153 = vmatpush3.bf16.msra.mxu0 %v173_v2 }
   0x7   :  { %154 = vmatprep.subr.bf16.mxu0 %v180_v0 }
   0xa   :  { %155 = vmatpush3.bf16.msra.mxu0 %v174_v3 }
   0xb   :  { %156 = vmatprep.subr.bf16.mxu0 %v180_v0 }
   0xe   :  { %157 = vmatpush3.bf16.msra.mxu0 %v175_v4 }
   0xf   :  { %158 = vmatprep.subr.bf16.mxu0 %v180_v0 }
  0x12   :  { %159 = vmatpush3.bf16.msra.mxu0 %v176_v5 }
  0x13   :  { %160 = vmatprep.subr.bf16.mxu0 %v180_v0 }
  0x16   :  { %161 = vmatpush3.bf16.msra.mxu0 %v177_v6 }
  0x17   :  { %162 = vmatprep.subr.bf16.mxu0 %v180_v0 }
  0x1a   :  { %163 = vmatpush3.bf16.msra.mxu0 %v178_v7 }
  0x1b   :  { %164 = vmatprep.subr.bf16.mxu0 %v180_v0 }
  0x1e   :  { %165 = vmatpush3.bf16.msra.mxu0 %v179_v8 }
  0x21   :  { %167 = vmatmul.mubr.bf16.vlgmr.msra.gmra.mrb[0].mxu0 %v15_v9 }
  0xf4   :  { %v121_v11 = vpop.f32.mrb[0].mxu0 }
  0xf5   :  { %v122_v12 = vadd.f32 %v132_v10, %v121_v11  ;;  %v168_v13 = vpop.f32.mrb[1].mxu0 }
  0xf6   :  { %v124_v14 = vpop.f32.mrb[2].mxu0 }
  0xf7   :  { %127 = vst [vmem:[%s238_s3] sm:$0xff] %v122_v12  ;;  %v169_v15 = vpop.f32.mrb[3].mxu0 }

</bundles_post_ra>
